<compile_context>
chip_gen: v7x
topology: tpu7x:2x2x1
jax: 0.10.0
libtpu: 0.0.40
codegen_flags: <defaults>
</compile_context>

<pallas_src>
import functools

import jax
import jax.numpy as jnp
from jax import lax
from jax.experimental import pallas as pl
from jax.experimental.pallas import tpu as pltpu

HALO = 8   # leading halo rows per batch element (>= pad, multiple of 8)
CP = 48    # channel padding (multiple of 8, >= max channel count = 40)


# ----------------------------- Fused kernel --------------------------------

def _fused_kernel(x_ref, cw_ref, cb_ref, fw_ref, fb_ref, o_ref, s0, s1, *,
                  B, S, L, pad, NL, K):
    """Entire NetA forward in one invocation, everything resident in VMEM.

    x_ref : (B*S, Cp)        zero-padded input slab; batch b's L valid rows
                             start at row b*S + HALO, everything else is 0
    cw_ref: (NL*K, Cp, Cp)   conv weights, [l*K + k] = tap-k weight of layer l
    cb_ref: (NL, 1, Cp)      conv biases (padded lanes are 0)
    fw_ref: (L, Cp, Dout)    FC weight regrouped per position
    fb_ref: (1, Dout)        FC bias
    o_ref : (B, Dout)        output
    s0,s1 : (B*S, Cp) f32    ping-pong activation slabs (VMEM scratch)
    """
    Cp = x_ref.shape[1]
    Dout = o_ref.shape[1]
    M = (B - 1) * S + L          # rows of the batch-merged conv output band

    # Halo / tail rows are read by every layer's taps -> slabs must start at 0.
    s0[...] = jnp.zeros(s0.shape, s0.dtype)
    s1[...] = jnp.zeros(s1.shape, s1.dtype)

    # Band row j is a real conv output iff (j mod S) < L.  Rows in the
    # inter-batch gap would otherwise hold relu(bias) and corrupt the next
    # layer's halo reads, so they are masked back to 0 before the store.
    j = lax.broadcasted_iota(jnp.int32, (M, 1), 0)
    valid = (j % S < L).astype(jnp.float32)

    src = x_ref
    slabs = (s0, s1)
    for l in range(NL):
        dst = slabs[l % 2]
        acc = jnp.zeros((M, Cp), jnp.float32)
        # K shifted-tap matmuls, each batched over (batch, position) -> M rows.
        for k in range(K):
            tap = src[HALO - pad + k:HALO - pad + k + M, :]      # (M, Cp)
            acc = acc + jnp.dot(tap, cw_ref[l * K + k],
                                preferred_element_type=jnp.float32)
        acc = jnp.maximum(acc + cb_ref[l], 0.0) * valid
        dst[HALO:HALO + M, :] = acc          # stores start on a sublane tile
        src = dst

    # FC as a position-accumulated contraction (no lane-concat flatten): for
    # each sequence position i, gather the B rows of that position and feed
    # one (B, Cp) x (Cp, Dout) matmul.
    out = jnp.zeros((B, Dout), jnp.float32)
    for i in range(L):
        rows = jnp.concatenate(
            [src[b * S + HALO + i:b * S + HALO + i + 1, :] for b in range(B)],
            axis=0)                                              # (B, Cp)
        out = out + jnp.dot(rows, fw_ref[i],
                            preferred_element_type=jnp.float32)
    o_ref[...] = (out + fb_ref[...]).astype(o_ref.dtype)


# ------------------------- Host-side weight repack --------------------------

def prepare_params(convs, fc_w_t, fc_b, L, cp=CP):
    """One-time repack: zero-pad channels to `cp` lanes, flatten (layer, tap)
    into the leading weight axis, and regroup the FC weight from torch's
    flatten order (c*L + i) into per-position (i, c, d) blocks."""
    n = len(convs)
    K = convs[0][0].shape[0]
    cw = jnp.zeros((n, K, cp, cp), jnp.float32)
    cb = jnp.zeros((n, 1, cp), jnp.float32)
    for l, (w, b) in enumerate(convs):
        _, cin, cout = w.shape
        cw = cw.at[l, :, :cin, :cout].set(w)
        cb = cb.at[l, 0, :cout].set(b)
    cw = cw.reshape(n * K, cp, cp)

    c_last = convs[-1][0].shape[2]
    d_out = fc_w_t.shape[1]
    w3 = fc_w_t.reshape(c_last, L, d_out)                 # [c, i, :] torch order
    fw = jnp.zeros((L, cp, d_out), jnp.float32)
    fw = fw.at[:, :c_last, :].set(jnp.transpose(w3, (1, 0, 2)))   # [i, c, :]
    fb = fc_b.reshape(1, d_out)
    return {"cw": cw, "cb": cb, "fw": fw, "fb": fb, "n_layers": n,
            "K": K, "pad": (K - 1) // 2, "d_out": d_out, "cp": cp}


# ------------------------------- Forward ------------------------------------

def net_a_forward(x_ncl, p):
    """x_ncl: (B, d_in, L) PyTorch NCL layout -> (B, d_out)."""
    B, cin, L = x_ncl.shape
    K, pad, cp, d_out, n_layers = p["K"], p["pad"], p["cp"], p["d_out"], p["n_layers"]
    # Per-batch row stride: leading halo + valid rows + trailing halo, rounded
    # up to the 8-row sublane tile so every batch's store offset is aligned.
    S = ((HALO + L + pad) + 7) // 8 * 8
    R = B * S

    # Zero-padded, lane-compact input slab (single tiny XLA op).
    xt = jnp.transpose(x_ncl, (0, 2, 1)).astype(jnp.float32)     # (B, L, cin)
    x_slab = jnp.zeros((B, S, cp), jnp.float32)
    x_slab = x_slab.at[:, HALO:HALO + L, :cin].set(xt)
    x_slab = x_slab.reshape(R, cp)

    kernel = functools.partial(_fused_kernel, B=B, S=S, L=L, pad=pad,
                               NL=n_layers, K=K)
    vmem = lambda: pl.BlockSpec(memory_space=pltpu.MemorySpace.VMEM)

    return pl.pallas_call(
        kernel,
        out_shape=jax.ShapeDtypeStruct((B, d_out), jnp.float32),
        in_specs=[vmem(), vmem(), vmem(), vmem(), vmem()],
        out_specs=vmem(),
        scratch_shapes=[pltpu.VMEM((R, cp), jnp.float32),
                        pltpu.VMEM((R, cp), jnp.float32)],
    )(x_slab, p["cw"], p["cb"], p["fw"], p["fb"])


# ------------------------------ Reference -----------------------------------

def net_a_reference(x_ncl, params, pad):
    out = x_ncl
    for (w_kio, b) in params["convs"]:
        w_oik = jnp.transpose(w_kio, (2, 1, 0))           # (Cout, Cin, K)
        out = lax.conv_general_dilated(
            out, w_oik, window_strides=(1,), padding=[(pad, pad)],
            dimension_numbers=("NCH", "OIH", "NCH"))
        out = jax.nn.relu(out + b[None, :, None])
    out = out.reshape(out.shape[0], -1)                   # torch flatten order
    return out @ params["fc_w_t"] + params["fc_b"][None, :]


# --------------------------------- Main --------------------------------------

if __name__ == "__main__":
    # NetA(d_in, filters, d_out, k=7, pad=3); fc1 input = 5*filters*(d_out+2)
    # implies sequence length L = d_out + 2.
    B, d_in, filters, d_out = 2, 4, 8, 16
    kern, pad = 7, 3
    L = d_out + 2                                          # = 18

    key = jax.random.PRNGKey(0)
    keys = jax.random.split(key, 16)

    chans = [d_in, filters, 2 * filters, 3 * filters, 4 * filters, 5 * filters]
    convs = []
    ki = 0
    for li in range(5):
        cin, cout = chans[li], chans[li + 1]
        w = 0.1 * jax.random.normal(keys[ki], (kern, cin, cout), jnp.float32)
        ki += 1
        b = 0.05 * jax.random.normal(keys[ki], (cout,), jnp.float32)
        ki += 1
        convs.append((w, b))

    fin = 5 * filters * (d_out + 2)                        # = 720
    fc_w_t = 0.05 * jax.random.normal(keys[ki], (fin, d_out), jnp.float32)
    fc_b = 0.05 * jax.random.normal(keys[ki + 1], (d_out,), jnp.float32)

    raw_params = {"convs": convs, "fc_w_t": fc_w_t, "fc_b": fc_b}
    prepped = prepare_params(convs, fc_w_t, fc_b, L)       # one-time repack

    x = jax.random.normal(keys[ki + 2], (B, d_in, L), jnp.float32)

    out = jax.block_until_ready(net_a_forward(x, prepped))
    ref = jax.block_until_ready(net_a_reference(x, raw_params, pad))

    assert out.shape == (B, d_out), out.shape
    assert jnp.allclose(out, ref, rtol=1e-4, atol=1e-4), (
        float(jnp.max(jnp.abs(out - ref))))

    print("KERNEL_OK")
</pallas_src>

<mosaic_0001>
module attributes {stable_mosaic.version = 11 : i64} {
  func.func @_fused_kernel(%arg0: memref<64x48xf32, #tpu.memory_space<vmem>>, %arg1: memref<35x48x48xf32, #tpu.memory_space<vmem>>, %arg2: memref<5x1x48xf32, #tpu.memory_space<vmem>>, %arg3: memref<18x48x16xf32, #tpu.memory_space<vmem>>, %arg4: memref<1x16xf32, #tpu.memory_space<vmem>>, %arg5: memref<2x16xf32, #tpu.memory_space<vmem>>, %arg6: memref<64x48xf32, #tpu.memory_space<vmem>>, %arg7: memref<64x48xf32, #tpu.memory_space<vmem>>) attributes {dimension_semantics = [], scalar_prefetch = 0 : i64, scratch_operands = 2 : i64, tpu.core_type = #tpu.core_type<tc>} {
    %cst = arith.constant 0.000000e+00 : f32
    %0 = vector.broadcast %cst : f32 to vector<64x48xf32>
    %c0 = arith.constant 0 : index
    %c0_0 = arith.constant 0 : index
    %1 = vector.load %arg6[%c0, %c0_0] : memref<64x48xf32, #tpu.memory_space<vmem>>, vector<64x48xf32>
    tpu.vector_store %arg6[%c0, %c0_0], %0 {strides = array<i32>} : memref<64x48xf32, #tpu.memory_space<vmem>>, vector<64x48xf32>,
    %cst_1 = arith.constant 0.000000e+00 : f32
    %2 = vector.broadcast %cst_1 : f32 to vector<64x48xf32>
    %c0_2 = arith.constant 0 : index
    %c0_3 = arith.constant 0 : index
    %3 = vector.load %arg7[%c0_2, %c0_3] : memref<64x48xf32, #tpu.memory_space<vmem>>, vector<64x48xf32>
    tpu.vector_store %arg7[%c0_2, %c0_3], %2 {strides = array<i32>} : memref<64x48xf32, #tpu.memory_space<vmem>>, vector<64x48xf32>,
    %4 = tpu.iota {dimensions = array<i32: 0>} : vector<50x1xi32>
    %c32_i32 = arith.constant 32 : i32
    %c0_i32 = arith.constant 0 : i32
    %5 = arith.cmpi eq, %c32_i32, %c0_i32 : i32
    %c1_i32 = arith.constant 1 : i32
    %6 = arith.select %5, %c1_i32, %c32_i32 : i32
    %7 = vector.broadcast %6 : i32 to vector<50x1xi32>
    %8 = arith.remsi %4, %7 : vector<50x1xi32>
    %c0_i32_4 = arith.constant 0 : i32
    %9 = vector.broadcast %c0_i32_4 : i32 to vector<50x1xi32>
    %10 = arith.cmpi ne, %8, %9 : vector<50x1xi32>
    %c0_i32_5 = arith.constant 0 : i32
    %11 = vector.broadcast %c0_i32_5 : i32 to vector<50x1xi32>
    %12 = arith.cmpi slt, %8, %11 : vector<50x1xi32>
    %c0_i32_6 = arith.constant 0 : i32
    %13 = arith.cmpi slt, %6, %c0_i32_6 : i32
    %14 = vector.broadcast %13 : i1 to vector<50x1xi1>
    %15 = vector.broadcast %14 : vector<50x1xi1> to vector<50x1xi1>
    %16 = arith.xori %12, %15 : vector<50x1xi1>
    %17 = arith.andi %16, %10 : vector<50x1xi1>
    %18 = vector.broadcast %6 : i32 to vector<50x1xi32>
    %19 = arith.addi %8, %18 : vector<50x1xi32>
    %20 = arith.select %17, %19, %8 : vector<50x1xi1>, vector<50x1xi32>
    %c18_i32 = arith.constant 18 : i32
    %21 = vector.broadcast %c18_i32 : i32 to vector<50x1xi32>
    %22 = arith.cmpi slt, %20, %21 : vector<50x1xi32>
    %23 = arith.extui %22 : vector<50x1xi1> to vector<50x1xi32>
    %24 = arith.sitofp %23 : vector<50x1xi32> to vector<50x1xf32>
    %cst_7 = arith.constant 0.000000e+00 : f32
    %25 = vector.broadcast %cst_7 : f32 to vector<50x48xf32>
    %c5 = arith.constant 5 : index
    %c0_8 = arith.constant 0 : index
    %26 = vector.load %arg0[%c5, %c0_8] : memref<64x48xf32, #tpu.memory_space<vmem>>, vector<50x48xf32>
    %c0_9 = arith.constant 0 : index
    %c0_10 = arith.constant 0 : index
    %c0_11 = arith.constant 0 : index
    %27 = vector.load %arg1[%c0_9, %c0_10, %c0_11] : memref<35x48x48xf32, #tpu.memory_space<vmem>>, vector<1x48x48xf32>
    %28 = vector.shape_cast %27 : vector<1x48x48xf32> to vector<48x48xf32>
    %cst_12 = arith.constant dense<0.000000e+00> : vector<50x48xf32>
    %29 = tpu.matmul %26, %28, %cst_12 {dimension_numbers = #tpu.dot_dimension_numbers<[1], [0], [0], [1], [0, 0, 1, 1], [], []>} : vector<50x48xf32>, vector<48x48xf32>, vector<50x48xf32> -> vector<50x48xf32>
    %30 = arith.addf %25, %29 : vector<50x48xf32>
    %c6 = arith.constant 6 : index
    %c0_13 = arith.constant 0 : index
    %31 = vector.load %arg0[%c6, %c0_13] : memref<64x48xf32, #tpu.memory_space<vmem>>, vector<50x48xf32>
    %c1 = arith.constant 1 : index
    %c0_14 = arith.constant 0 : index
    %c0_15 = arith.constant 0 : index
    %32 = vector.load %arg1[%c1, %c0_14, %c0_15] : memref<35x48x48xf32, #tpu.memory_space<vmem>>, vector<1x48x48xf32>
    %33 = vector.shape_cast %32 : vector<1x48x48xf32> to vector<48x48xf32>
    %cst_16 = arith.constant dense<0.000000e+00> : vector<50x48xf32>
    %34 = tpu.matmul %31, %33, %cst_16 {dimension_numbers = #tpu.dot_dimension_numbers<[1], [0], [0], [1], [0, 0, 1, 1], [], []>} : vector<50x48xf32>, vector<48x48xf32>, vector<50x48xf32> -> vector<50x48xf32>
    %35 = arith.addf %30, %34 : vector<50x48xf32>
    %c7 = arith.constant 7 : index
    %c0_17 = arith.constant 0 : index
    %36 = vector.load %arg0[%c7, %c0_17] : memref<64x48xf32, #tpu.memory_space<vmem>>, vector<50x48xf32>
    %c2 = arith.constant 2 : index
    %c0_18 = arith.constant 0 : index
    %c0_19 = arith.constant 0 : index
    %37 = vector.load %arg1[%c2, %c0_18, %c0_19] : memref<35x48x48xf32, #tpu.memory_space<vmem>>, vector<1x48x48xf32>
    %38 = vector.shape_cast %37 : vector<1x48x48xf32> to vector<48x48xf32>
    %cst_20 = arith.constant dense<0.000000e+00> : vector<50x48xf32>
    %39 = tpu.matmul %36, %38, %cst_20 {dimension_numbers = #tpu.dot_dimension_numbers<[1], [0], [0], [1], [0, 0, 1, 1], [], []>} : vector<50x48xf32>, vector<48x48xf32>, vector<50x48xf32> -> vector<50x48xf32>
    %40 = arith.addf %35, %39 : vector<50x48xf32>
    %c8 = arith.constant 8 : index
    %c0_21 = arith.constant 0 : index
    %41 = vector.load %arg0[%c8, %c0_21] : memref<64x48xf32, #tpu.memory_space<vmem>>, vector<50x48xf32>
    %c3 = arith.constant 3 : index
    %c0_22 = arith.constant 0 : index
    %c0_23 = arith.constant 0 : index
    %42 = vector.load %arg1[%c3, %c0_22, %c0_23] : memref<35x48x48xf32, #tpu.memory_space<vmem>>, vector<1x48x48xf32>
    %43 = vector.shape_cast %42 : vector<1x48x48xf32> to vector<48x48xf32>
    %cst_24 = arith.constant dense<0.000000e+00> : vector<50x48xf32>
    %44 = tpu.matmul %41, %43, %cst_24 {dimension_numbers = #tpu.dot_dimension_numbers<[1], [0], [0], [1], [0, 0, 1, 1], [], []>} : vector<50x48xf32>, vector<48x48xf32>, vector<50x48xf32> -> vector<50x48xf32>
    %45 = arith.addf %40, %44 : vector<50x48xf32>
    %c9 = arith.constant 9 : index
    %c0_25 = arith.constant 0 : index
    %46 = vector.load %arg0[%c9, %c0_25] : memref<64x48xf32, #tpu.memory_space<vmem>>, vector<50x48xf32>
    %c4 = arith.constant 4 : index
    %c0_26 = arith.constant 0 : index
    %c0_27 = arith.constant 0 : index
    %47 = vector.load %arg1[%c4, %c0_26, %c0_27] : memref<35x48x48xf32, #tpu.memory_space<vmem>>, vector<1x48x48xf32>
    %48 = vector.shape_cast %47 : vector<1x48x48xf32> to vector<48x48xf32>
    %cst_28 = arith.constant dense<0.000000e+00> : vector<50x48xf32>
    %49 = tpu.matmul %46, %48, %cst_28 {dimension_numbers = #tpu.dot_dimension_numbers<[1], [0], [0], [1], [0, 0, 1, 1], [], []>} : vector<50x48xf32>, vector<48x48xf32>, vector<50x48xf32> -> vector<50x48xf32>
    %50 = arith.addf %45, %49 : vector<50x48xf32>
    %c10 = arith.constant 10 : index
    %c0_29 = arith.constant 0 : index
    %51 = vector.load %arg0[%c10, %c0_29] : memref<64x48xf32, #tpu.memory_space<vmem>>, vector<50x48xf32>
    %c5_30 = arith.constant 5 : index
    %c0_31 = arith.constant 0 : index
    %c0_32 = arith.constant 0 : index
    %52 = vector.load %arg1[%c5_30, %c0_31, %c0_32] : memref<35x48x48xf32, #tpu.memory_space<vmem>>, vector<1x48x48xf32>
    %53 = vector.shape_cast %52 : vector<1x48x48xf32> to vector<48x48xf32>
    %cst_33 = arith.constant dense<0.000000e+00> : vector<50x48xf32>
    %54 = tpu.matmul %51, %53, %cst_33 {dimension_numbers = #tpu.dot_dimension_numbers<[1], [0], [0], [1], [0, 0, 1, 1], [], []>} : vector<50x48xf32>, vector<48x48xf32>, vector<50x48xf32> -> vector<50x48xf32>
    %55 = arith.addf %50, %54 : vector<50x48xf32>
    %c11 = arith.constant 11 : index
    %c0_34 = arith.constant 0 : index
    %56 = vector.load %arg0[%c11, %c0_34] : memref<64x48xf32, #tpu.memory_space<vmem>>, vector<50x48xf32>
    %c6_35 = arith.constant 6 : index
    %c0_36 = arith.constant 0 : index
    %c0_37 = arith.constant 0 : index
    %57 = vector.load %arg1[%c6_35, %c0_36, %c0_37] : memref<35x48x48xf32, #tpu.memory_space<vmem>>, vector<1x48x48xf32>
    %58 = vector.shape_cast %57 : vector<1x48x48xf32> to vector<48x48xf32>
    %cst_38 = arith.constant dense<0.000000e+00> : vector<50x48xf32>
    %59 = tpu.matmul %56, %58, %cst_38 {dimension_numbers = #tpu.dot_dimension_numbers<[1], [0], [0], [1], [0, 0, 1, 1], [], []>} : vector<50x48xf32>, vector<48x48xf32>, vector<50x48xf32> -> vector<50x48xf32>
    %60 = arith.addf %55, %59 : vector<50x48xf32>
    %c0_39 = arith.constant 0 : index
    %c0_40 = arith.constant 0 : index
    %c0_41 = arith.constant 0 : index
    %61 = vector.load %arg2[%c0_39, %c0_40, %c0_41] : memref<5x1x48xf32, #tpu.memory_space<vmem>>, vector<1x1x48xf32>
    %62 = vector.shape_cast %61 : vector<1x1x48xf32> to vector<1x48xf32>
    %63 = vector.broadcast %62 : vector<1x48xf32> to vector<50x48xf32>
    %64 = arith.addf %60, %63 : vector<50x48xf32>
    %cst_42 = arith.constant 0.000000e+00 : f32
    %65 = vector.broadcast %cst_42 : f32 to vector<50x48xf32>
    %66 = arith.maximumf %64, %65 : vector<50x48xf32>
    %67 = vector.broadcast %24 : vector<50x1xf32> to vector<50x48xf32>
    %68 = arith.mulf %66, %67 : vector<50x48xf32>
    %c8_43 = arith.constant 8 : index
    %c0_44 = arith.constant 0 : index
    %69 = vector.load %arg6[%c8_43, %c0_44] : memref<64x48xf32, #tpu.memory_space<vmem>>, vector<50x48xf32>
    tpu.vector_store %arg6[%c8_43, %c0_44], %68 {strides = array<i32>} : memref<64x48xf32, #tpu.memory_space<vmem>>, vector<50x48xf32>,
    %cst_45 = arith.constant 0.000000e+00 : f32
    %70 = vector.broadcast %cst_45 : f32 to vector<50x48xf32>
    %c5_46 = arith.constant 5 : index
    %c0_47 = arith.constant 0 : index
    %71 = vector.load %arg6[%c5_46, %c0_47] : memref<64x48xf32, #tpu.memory_space<vmem>>, vector<50x48xf32>
    %c7_48 = arith.constant 7 : index
    %c0_49 = arith.constant 0 : index
    %c0_50 = arith.constant 0 : index
    %72 = vector.load %arg1[%c7_48, %c0_49, %c0_50] : memref<35x48x48xf32, #tpu.memory_space<vmem>>, vector<1x48x48xf32>
    %73 = vector.shape_cast %72 : vector<1x48x48xf32> to vector<48x48xf32>
    %cst_51 = arith.constant dense<0.000000e+00> : vector<50x48xf32>
    %74 = tpu.matmul %71, %73, %cst_51 {dimension_numbers = #tpu.dot_dimension_numbers<[1], [0], [0], [1], [0, 0, 1, 1], [], []>} : vector<50x48xf32>, vector<48x48xf32>, vector<50x48xf32> -> vector<50x48xf32>
    %75 = arith.addf %70, %74 : vector<50x48xf32>
    %c6_52 = arith.constant 6 : index
    %c0_53 = arith.constant 0 : index
    %76 = vector.load %arg6[%c6_52, %c0_53] : memref<64x48xf32, #tpu.memory_space<vmem>>, vector<50x48xf32>
    %c8_54 = arith.constant 8 : index
    %c0_55 = arith.constant 0 : index
    %c0_56 = arith.constant 0 : index
    %77 = vector.load %arg1[%c8_54, %c0_55, %c0_56] : memref<35x48x48xf32, #tpu.memory_space<vmem>>, vector<1x48x48xf32>
    %78 = vector.shape_cast %77 : vector<1x48x48xf32> to vector<48x48xf32>
    %cst_57 = arith.constant dense<0.000000e+00> : vector<50x48xf32>
    %79 = tpu.matmul %76, %78, %cst_57 {dimension_numbers = #tpu.dot_dimension_numbers<[1], [0], [0], [1], [0, 0, 1, 1], [], []>} : vector<50x48xf32>, vector<48x48xf32>, vector<50x48xf32> -> vector<50x48xf32>
    %80 = arith.addf %75, %79 : vector<50x48xf32>
    %c7_58 = arith.constant 7 : index
    %c0_59 = arith.constant 0 : index
    %81 = vector.load %arg6[%c7_58, %c0_59] : memref<64x48xf32, #tpu.memory_space<vmem>>, vector<50x48xf32>
    %c9_60 = arith.constant 9 : index
    %c0_61 = arith.constant 0 : index
    %c0_62 = arith.constant 0 : index
    %82 = vector.load %arg1[%c9_60, %c0_61, %c0_62] : memref<35x48x48xf32, #tpu.memory_space<vmem>>, vector<1x48x48xf32>
    %83 = vector.shape_cast %82 : vector<1x48x48xf32> to vector<48x48xf32>
    %cst_63 = arith.constant dense<0.000000e+00> : vector<50x48xf32>
    %84 = tpu.matmul %81, %83, %cst_63 {dimension_numbers = #tpu.dot_dimension_numbers<[1], [0], [0], [1], [0, 0, 1, 1], [], []>} : vector<50x48xf32>, vector<48x48xf32>, vector<50x48xf32> -> vector<50x48xf32>
    %85 = arith.addf %80, %84 : vector<50x48xf32>
    %c8_64 = arith.constant 8 : index
    %c0_65 = arith.constant 0 : index
    %86 = vector.load %arg6[%c8_64, %c0_65] : memref<64x48xf32, #tpu.memory_space<vmem>>, vector<50x48xf32>
    %c10_66 = arith.constant 10 : index
    %c0_67 = arith.constant 0 : index
    %c0_68 = arith.constant 0 : index
    %87 = vector.load %arg1[%c10_66, %c0_67, %c0_68] : memref<35x48x48xf32, #tpu.memory_space<vmem>>, vector<1x48x48xf32>
    %88 = vector.shape_cast %87 : vector<1x48x48xf32> to vector<48x48xf32>
    %cst_69 = arith.constant dense<0.000000e+00> : vector<50x48xf32>
    %89 = tpu.matmul %86, %88, %cst_69 {dimension_numbers = #tpu.dot_dimension_numbers<[1], [0], [0], [1], [0, 0, 1, 1], [], []>} : vector<50x48xf32>, vector<48x48xf32>, vector<50x48xf32> -> vector<50x48xf32>
    %90 = arith.addf %85, %89 : vector<50x48xf32>
    %c9_70 = arith.constant 9 : index
    %c0_71 = arith.constant 0 : index
    %91 = vector.load %arg6[%c9_70, %c0_71] : memref<64x48xf32, #tpu.memory_space<vmem>>, vector<50x48xf32>
    %c11_72 = arith.constant 11 : index
    %c0_73 = arith.constant 0 : index
    %c0_74 = arith.constant 0 : index
    %92 = vector.load %arg1[%c11_72, %c0_73, %c0_74] : memref<35x48x48xf32, #tpu.memory_space<vmem>>, vector<1x48x48xf32>
    %93 = vector.shape_cast %92 : vector<1x48x48xf32> to vector<48x48xf32>
    %cst_75 = arith.constant dense<0.000000e+00> : vector<50x48xf32>
    %94 = tpu.matmul %91, %93, %cst_75 {dimension_numbers = #tpu.dot_dimension_numbers<[1], [0], [0], [1], [0, 0, 1, 1], [], []>} : vector<50x48xf32>, vector<48x48xf32>, vector<50x48xf32> -> vector<50x48xf32>
    %95 = arith.addf %90, %94 : vector<50x48xf32>
    %c10_76 = arith.constant 10 : index
    %c0_77 = arith.constant 0 : index
    %96 = vector.load %arg6[%c10_76, %c0_77] : memref<64x48xf32, #tpu.memory_space<vmem>>, vector<50x48xf32>
    %c12 = arith.constant 12 : index
    %c0_78 = arith.constant 0 : index
    %c0_79 = arith.constant 0 : index
    %97 = vector.load %arg1[%c12, %c0_78, %c0_79] : memref<35x48x48xf32, #tpu.memory_space<vmem>>, vector<1x48x48xf32>
    %98 = vector.shape_cast %97 : vector<1x48x48xf32> to vector<48x48xf32>
    %cst_80 = arith.constant dense<0.000000e+00> : vector<50x48xf32>
    %99 = tpu.matmul %96, %98, %cst_80 {dimension_numbers = #tpu.dot_dimension_numbers<[1], [0], [0], [1], [0, 0, 1, 1], [], []>} : vector<50x48xf32>, vector<48x48xf32>, vector<50x48xf32> -> vector<50x48xf32>
    %100 = arith.addf %95, %99 : vector<50x48xf32>
    %c11_81 = arith.constant 11 : index
    %c0_82 = arith.constant 0 : index
    %101 = vector.load %arg6[%c11_81, %c0_82] : memref<64x48xf32, #tpu.memory_space<vmem>>, vector<50x48xf32>
    %c13 = arith.constant 13 : index
    %c0_83 = arith.constant 0 : index
    %c0_84 = arith.constant 0 : index
    %102 = vector.load %arg1[%c13, %c0_83, %c0_84] : memref<35x48x48xf32, #tpu.memory_space<vmem>>, vector<1x48x48xf32>
    %103 = vector.shape_cast %102 : vector<1x48x48xf32> to vector<48x48xf32>
    %cst_85 = arith.constant dense<0.000000e+00> : vector<50x48xf32>
    %104 = tpu.matmul %101, %103, %cst_85 {dimension_numbers = #tpu.dot_dimension_numbers<[1], [0], [0], [1], [0, 0, 1, 1], [], []>} : vector<50x48xf32>, vector<48x48xf32>, vector<50x48xf32> -> vector<50x48xf32>
    %105 = arith.addf %100, %104 : vector<50x48xf32>
    %c1_86 = arith.constant 1 : index
    %c0_87 = arith.constant 0 : index
    %c0_88 = arith.constant 0 : index
    %106 = vector.load %arg2[%c1_86, %c0_87, %c0_88] : memref<5x1x48xf32, #tpu.memory_space<vmem>>, vector<1x1x48xf32>
    %107 = vector.shape_cast %106 : vector<1x1x48xf32> to vector<1x48xf32>
    %108 = vector.broadcast %107 : vector<1x48xf32> to vector<50x48xf32>
    %109 = arith.addf %105, %108 : vector<50x48xf32>
    %cst_89 = arith.constant 0.000000e+00 : f32
    %110 = vector.broadcast %cst_89 : f32 to vector<50x48xf32>
    %111 = arith.maximumf %109, %110 : vector<50x48xf32>
    %112 = vector.broadcast %24 : vector<50x1xf32> to vector<50x48xf32>
    %113 = arith.mulf %111, %112 : vector<50x48xf32>
    %c8_90 = arith.constant 8 : index
    %c0_91 = arith.constant 0 : index
    %114 = vector.load %arg7[%c8_90, %c0_91] : memref<64x48xf32, #tpu.memory_space<vmem>>, vector<50x48xf32>
    tpu.vector_store %arg7[%c8_90, %c0_91], %113 {strides = array<i32>} : memref<64x48xf32, #tpu.memory_space<vmem>>, vector<50x48xf32>,
    %cst_92 = arith.constant 0.000000e+00 : f32
    %115 = vector.broadcast %cst_92 : f32 to vector<50x48xf32>
    %c5_93 = arith.constant 5 : index
    %c0_94 = arith.constant 0 : index
    %116 = vector.load %arg7[%c5_93, %c0_94] : memref<64x48xf32, #tpu.memory_space<vmem>>, vector<50x48xf32>
    %c14 = arith.constant 14 : index
    %c0_95 = arith.constant 0 : index
    %c0_96 = arith.constant 0 : index
    %117 = vector.load %arg1[%c14, %c0_95, %c0_96] : memref<35x48x48xf32, #tpu.memory_space<vmem>>, vector<1x48x48xf32>
    %118 = vector.shape_cast %117 : vector<1x48x48xf32> to vector<48x48xf32>
    %cst_97 = arith.constant dense<0.000000e+00> : vector<50x48xf32>
    %119 = tpu.matmul %116, %118, %cst_97 {dimension_numbers = #tpu.dot_dimension_numbers<[1], [0], [0], [1], [0, 0, 1, 1], [], []>} : vector<50x48xf32>, vector<48x48xf32>, vector<50x48xf32> -> vector<50x48xf32>
    %120 = arith.addf %115, %119 : vector<50x48xf32>
    %c6_98 = arith.constant 6 : index
    %c0_99 = arith.constant 0 : index
    %121 = vector.load %arg7[%c6_98, %c0_99] : memref<64x48xf32, #tpu.memory_space<vmem>>, vector<50x48xf32>
    %c15 = arith.constant 15 : index
    %c0_100 = arith.constant 0 : index
    %c0_101 = arith.constant 0 : index
    %122 = vector.load %arg1[%c15, %c0_100, %c0_101] : memref<35x48x48xf32, #tpu.memory_space<vmem>>, vector<1x48x48xf32>
    %123 = vector.shape_cast %122 : vector<1x48x48xf32> to vector<48x48xf32>
    %cst_102 = arith.constant dense<0.000000e+00> : vector<50x48xf32>
    %124 = tpu.matmul %121, %123, %cst_102 {dimension_numbers = #tpu.dot_dimension_numbers<[1], [0], [0], [1], [0, 0, 1, 1], [], []>} : vector<50x48xf32>, vector<48x48xf32>, vector<50x48xf32> -> vector<50x48xf32>
    %125 = arith.addf %120, %124 : vector<50x48xf32>
    %c7_103 = arith.constant 7 : index
    %c0_104 = arith.constant 0 : index
    %126 = vector.load %arg7[%c7_103, %c0_104] : memref<64x48xf32, #tpu.memory_space<vmem>>, vector<50x48xf32>
    %c16 = arith.constant 16 : index
    %c0_105 = arith.constant 0 : index
    %c0_106 = arith.constant 0 : index
    %127 = vector.load %arg1[%c16, %c0_105, %c0_106] : memref<35x48x48xf32, #tpu.memory_space<vmem>>, vector<1x48x48xf32>
    %128 = vector.shape_cast %127 : vector<1x48x48xf32> to vector<48x48xf32>
    %cst_107 = arith.constant dense<0.000000e+00> : vector<50x48xf32>
    %129 = tpu.matmul %126, %128, %cst_107 {dimension_numbers = #tpu.dot_dimension_numbers<[1], [0], [0], [1], [0, 0, 1, 1], [], []>} : vector<50x48xf32>, vector<48x48xf32>, vector<50x48xf32> -> vector<50x48xf32>
    %130 = arith.addf %125, %129 : vector<50x48xf32>
    %c8_108 = arith.constant 8 : index
    %c0_109 = arith.constant 0 : index
    %131 = vector.load %arg7[%c8_108, %c0_109] : memref<64x48xf32, #tpu.memory_space<vmem>>, vector<50x48xf32>
    %c17 = arith.constant 17 : index
    %c0_110 = arith.constant 0 : index
    %c0_111 = arith.constant 0 : index
    %132 = vector.load %arg1[%c17, %c0_110, %c0_111] : memref<35x48x48xf32, #tpu.memory_space<vmem>>, vector<1x48x48xf32>
    %133 = vector.shape_cast %132 : vector<1x48x48xf32> to vector<48x48xf32>
    %cst_112 = arith.constant dense<0.000000e+00> : vector<50x48xf32>
    %134 = tpu.matmul %131, %133, %cst_112 {dimension_numbers = #tpu.dot_dimension_numbers<[1], [0], [0], [1], [0, 0, 1, 1], [], []>} : vector<50x48xf32>, vector<48x48xf32>, vector<50x48xf32> -> vector<50x48xf32>
    %135 = arith.addf %130, %134 : vector<50x48xf32>
    %c9_113 = arith.constant 9 : index
    %c0_114 = arith.constant 0 : index
    %136 = vector.load %arg7[%c9_113, %c0_114] : memref<64x48xf32, #tpu.memory_space<vmem>>, vector<50x48xf32>
    %c18 = arith.constant 18 : index
    %c0_115 = arith.constant 0 : index
    %c0_116 = arith.constant 0 : index
    %137 = vector.load %arg1[%c18, %c0_115, %c0_116] : memref<35x48x48xf32, #tpu.memory_space<vmem>>, vector<1x48x48xf32>
    %138 = vector.shape_cast %137 : vector<1x48x48xf32> to vector<48x48xf32>
    %cst_117 = arith.constant dense<0.000000e+00> : vector<50x48xf32>
    %139 = tpu.matmul %136, %138, %cst_117 {dimension_numbers = #tpu.dot_dimension_numbers<[1], [0], [0], [1], [0, 0, 1, 1], [], []>} : vector<50x48xf32>, vector<48x48xf32>, vector<50x48xf32> -> vector<50x48xf32>
    %140 = arith.addf %135, %139 : vector<50x48xf32>
    %c10_118 = arith.constant 10 : index
    %c0_119 = arith.constant 0 : index
    %141 = vector.load %arg7[%c10_118, %c0_119] : memref<64x48xf32, #tpu.memory_space<vmem>>, vector<50x48xf32>
    %c19 = arith.constant 19 : index
    %c0_120 = arith.constant 0 : index
    %c0_121 = arith.constant 0 : index
    %142 = vector.load %arg1[%c19, %c0_120, %c0_121] : memref<35x48x48xf32, #tpu.memory_space<vmem>>, vector<1x48x48xf32>
    %143 = vector.shape_cast %142 : vector<1x48x48xf32> to vector<48x48xf32>
    %cst_122 = arith.constant dense<0.000000e+00> : vector<50x48xf32>
    %144 = tpu.matmul %141, %143, %cst_122 {dimension_numbers = #tpu.dot_dimension_numbers<[1], [0], [0], [1], [0, 0, 1, 1], [], []>} : vector<50x48xf32>, vector<48x48xf32>, vector<50x48xf32> -> vector<50x48xf32>
    %145 = arith.addf %140, %144 : vector<50x48xf32>
    %c11_123 = arith.constant 11 : index
    %c0_124 = arith.constant 0 : index
    %146 = vector.load %arg7[%c11_123, %c0_124] : memref<64x48xf32, #tpu.memory_space<vmem>>, vector<50x48xf32>
    %c20 = arith.constant 20 : index
    %c0_125 = arith.constant 0 : index
    %c0_126 = arith.constant 0 : index
    %147 = vector.load %arg1[%c20, %c0_125, %c0_126] : memref<35x48x48xf32, #tpu.memory_space<vmem>>, vector<1x48x48xf32>
    %148 = vector.shape_cast %147 : vector<1x48x48xf32> to vector<48x48xf32>
    %cst_127 = arith.constant dense<0.000000e+00> : vector<50x48xf32>
    %149 = tpu.matmul %146, %148, %cst_127 {dimension_numbers = #tpu.dot_dimension_numbers<[1], [0], [0], [1], [0, 0, 1, 1], [], []>} : vector<50x48xf32>, vector<48x48xf32>, vector<50x48xf32> -> vector<50x48xf32>
    %150 = arith.addf %145, %149 : vector<50x48xf32>
    %c2_128 = arith.constant 2 : index
    %c0_129 = arith.constant 0 : index
    %c0_130 = arith.constant 0 : index
    %151 = vector.load %arg2[%c2_128, %c0_129, %c0_130] : memref<5x1x48xf32, #tpu.memory_space<vmem>>, vector<1x1x48xf32>
    %152 = vector.shape_cast %151 : vector<1x1x48xf32> to vector<1x48xf32>
    %153 = vector.broadcast %152 : vector<1x48xf32> to vector<50x48xf32>
    %154 = arith.addf %150, %153 : vector<50x48xf32>
    %cst_131 = arith.constant 0.000000e+00 : f32
    %155 = vector.broadcast %cst_131 : f32 to vector<50x48xf32>
    %156 = arith.maximumf %154, %155 : vector<50x48xf32>
    %157 = vector.broadcast %24 : vector<50x1xf32> to vector<50x48xf32>
    %158 = arith.mulf %156, %157 : vector<50x48xf32>
    %c8_132 = arith.constant 8 : index
    %c0_133 = arith.constant 0 : index
    %159 = vector.load %arg6[%c8_132, %c0_133] : memref<64x48xf32, #tpu.memory_space<vmem>>, vector<50x48xf32>
    tpu.vector_store %arg6[%c8_132, %c0_133], %158 {strides = array<i32>} : memref<64x48xf32, #tpu.memory_space<vmem>>, vector<50x48xf32>,
    %cst_134 = arith.constant 0.000000e+00 : f32
    %160 = vector.broadcast %cst_134 : f32 to vector<50x48xf32>
    %c5_135 = arith.constant 5 : index
    %c0_136 = arith.constant 0 : index
    %161 = vector.load %arg6[%c5_135, %c0_136] : memref<64x48xf32, #tpu.memory_space<vmem>>, vector<50x48xf32>
    %c21 = arith.constant 21 : index
    %c0_137 = arith.constant 0 : index
    %c0_138 = arith.constant 0 : index
    %162 = vector.load %arg1[%c21, %c0_137, %c0_138] : memref<35x48x48xf32, #tpu.memory_space<vmem>>, vector<1x48x48xf32>
    %163 = vector.shape_cast %162 : vector<1x48x48xf32> to vector<48x48xf32>
    %cst_139 = arith.constant dense<0.000000e+00> : vector<50x48xf32>
    %164 = tpu.matmul %161, %163, %cst_139 {dimension_numbers = #tpu.dot_dimension_numbers<[1], [0], [0], [1], [0, 0, 1, 1], [], []>} : vector<50x48xf32>, vector<48x48xf32>, vector<50x48xf32> -> vector<50x48xf32>
    %165 = arith.addf %160, %164 : vector<50x48xf32>
    %c6_140 = arith.constant 6 : index
    %c0_141 = arith.constant 0 : index
    %166 = vector.load %arg6[%c6_140, %c0_141] : memref<64x48xf32, #tpu.memory_space<vmem>>, vector<50x48xf32>
    %c22 = arith.constant 22 : index
    %c0_142 = arith.constant 0 : index
    %c0_143 = arith.constant 0 : index
    %167 = vector.load %arg1[%c22, %c0_142, %c0_143] : memref<35x48x48xf32, #tpu.memory_space<vmem>>, vector<1x48x48xf32>
    %168 = vector.shape_cast %167 : vector<1x48x48xf32> to vector<48x48xf32>
    %cst_144 = arith.constant dense<0.000000e+00> : vector<50x48xf32>
    %169 = tpu.matmul %166, %168, %cst_144 {dimension_numbers = #tpu.dot_dimension_numbers<[1], [0], [0], [1], [0, 0, 1, 1], [], []>} : vector<50x48xf32>, vector<48x48xf32>, vector<50x48xf32> -> vector<50x48xf32>
    %170 = arith.addf %165, %169 : vector<50x48xf32>
    %c7_145 = arith.constant 7 : index
    %c0_146 = arith.constant 0 : index
    %171 = vector.load %arg6[%c7_145, %c0_146] : memref<64x48xf32, #tpu.memory_space<vmem>>, vector<50x48xf32>
    %c23 = arith.constant 23 : index
    %c0_147 = arith.constant 0 : index
    %c0_148 = arith.constant 0 : index
    %172 = vector.load %arg1[%c23, %c0_147, %c0_148] : memref<35x48x48xf32, #tpu.memory_space<vmem>>, vector<1x48x48xf32>
    %173 = vector.shape_cast %172 : vector<1x48x48xf32> to vector<48x48xf32>
    %cst_149 = arith.constant dense<0.000000e+00> : vector<50x48xf32>
    %174 = tpu.matmul %171, %173, %cst_149 {dimension_numbers = #tpu.dot_dimension_numbers<[1], [0], [0], [1], [0, 0, 1, 1], [], []>} : vector<50x48xf32>, vector<48x48xf32>, vector<50x48xf32> -> vector<50x48xf32>
    %175 = arith.addf %170, %174 : vector<50x48xf32>
    %c8_150 = arith.constant 8 : index
    %c0_151 = arith.constant 0 : index
    %176 = vector.load %arg6[%c8_150, %c0_151] : memref<64x48xf32, #tpu.memory_space<vmem>>, vector<50x48xf32>
    %c24 = arith.constant 24 : index
    %c0_152 = arith.constant 0 : index
    %c0_153 = arith.constant 0 : index
    %177 = vector.load %arg1[%c24, %c0_152, %c0_153] : memref<35x48x48xf32, #tpu.memory_space<vmem>>, vector<1x48x48xf32>
    %178 = vector.shape_cast %177 : vector<1x48x48xf32> to vector<48x48xf32>
    %cst_154 = arith.constant dense<0.000000e+00> : vector<50x48xf32>
    %179 = tpu.matmul %176, %178, %cst_154 {dimension_numbers = #tpu.dot_dimension_numbers<[1], [0], [0], [1], [0, 0, 1, 1], [], []>} : vector<50x48xf32>, vector<48x48xf32>, vector<50x48xf32> -> vector<50x48xf32>
    %180 = arith.addf %175, %179 : vector<50x48xf32>
    %c9_155 = arith.constant 9 : index
    %c0_156 = arith.constant 0 : index
    %181 = vector.load %arg6[%c9_155, %c0_156] : memref<64x48xf32, #tpu.memory_space<vmem>>, vector<50x48xf32>
    %c25 = arith.constant 25 : index
    %c0_157 = arith.constant 0 : index
    %c0_158 = arith.constant 0 : index
    %182 = vector.load %arg1[%c25, %c0_157, %c0_158] : memref<35x48x48xf32, #tpu.memory_space<vmem>>, vector<1x48x48xf32>
    %183 = vector.shape_cast %182 : vector<1x48x48xf32> to vector<48x48xf32>
    %cst_159 = arith.constant dense<0.000000e+00> : vector<50x48xf32>
    %184 = tpu.matmul %181, %183, %cst_159 {dimension_numbers = #tpu.dot_dimension_numbers<[1], [0], [0], [1], [0, 0, 1, 1], [], []>} : vector<50x48xf32>, vector<48x48xf32>, vector<50x48xf32> -> vector<50x48xf32>
    %185 = arith.addf %180, %184 : vector<50x48xf32>
    %c10_160 = arith.constant 10 : index
    %c0_161 = arith.constant 0 : index
    %186 = vector.load %arg6[%c10_160, %c0_161] : memref<64x48xf32, #tpu.memory_space<vmem>>, vector<50x48xf32>
    %c26 = arith.constant 26 : index
    %c0_162 = arith.constant 0 : index
    %c0_163 = arith.constant 0 : index
    %187 = vector.load %arg1[%c26, %c0_162, %c0_163] : memref<35x48x48xf32, #tpu.memory_space<vmem>>, vector<1x48x48xf32>
    %188 = vector.shape_cast %187 : vector<1x48x48xf32> to vector<48x48xf32>
    %cst_164 = arith.constant dense<0.000000e+00> : vector<50x48xf32>
    %189 = tpu.matmul %186, %188, %cst_164 {dimension_numbers = #tpu.dot_dimension_numbers<[1], [0], [0], [1], [0, 0, 1, 1], [], []>} : vector<50x48xf32>, vector<48x48xf32>, vector<50x48xf32> -> vector<50x48xf32>
    %190 = arith.addf %185, %189 : vector<50x48xf32>
    %c11_165 = arith.constant 11 : index
    %c0_166 = arith.constant 0 : index
    %191 = vector.load %arg6[%c11_165, %c0_166] : memref<64x48xf32, #tpu.memory_space<vmem>>, vector<50x48xf32>
    %c27 = arith.constant 27 : index
    %c0_167 = arith.constant 0 : index
    %c0_168 = arith.constant 0 : index
    %192 = vector.load %arg1[%c27, %c0_167, %c0_168] : memref<35x48x48xf32, #tpu.memory_space<vmem>>, vector<1x48x48xf32>
    %193 = vector.shape_cast %192 : vector<1x48x48xf32> to vector<48x48xf32>
    %cst_169 = arith.constant dense<0.000000e+00> : vector<50x48xf32>
    %194 = tpu.matmul %191, %193, %cst_169 {dimension_numbers = #tpu.dot_dimension_numbers<[1], [0], [0], [1], [0, 0, 1, 1], [], []>} : vector<50x48xf32>, vector<48x48xf32>, vector<50x48xf32> -> vector<50x48xf32>
    %195 = arith.addf %190, %194 : vector<50x48xf32>
    %c3_170 = arith.constant 3 : index
    %c0_171 = arith.constant 0 : index
    %c0_172 = arith.constant 0 : index
    %196 = vector.load %arg2[%c3_170, %c0_171, %c0_172] : memref<5x1x48xf32, #tpu.memory_space<vmem>>, vector<1x1x48xf32>
    %197 = vector.shape_cast %196 : vector<1x1x48xf32> to vector<1x48xf32>
    %198 = vector.broadcast %197 : vector<1x48xf32> to vector<50x48xf32>
    %199 = arith.addf %195, %198 : vector<50x48xf32>
    %cst_173 = arith.constant 0.000000e+00 : f32
    %200 = vector.broadcast %cst_173 : f32 to vector<50x48xf32>
    %201 = arith.maximumf %199, %200 : vector<50x48xf32>
    %202 = vector.broadcast %24 : vector<50x1xf32> to vector<50x48xf32>
    %203 = arith.mulf %201, %202 : vector<50x48xf32>
    %c8_174 = arith.constant 8 : index
    %c0_175 = arith.constant 0 : index
    %204 = vector.load %arg7[%c8_174, %c0_175] : memref<64x48xf32, #tpu.memory_space<vmem>>, vector<50x48xf32>
    tpu.vector_store %arg7[%c8_174, %c0_175], %203 {strides = array<i32>} : memref<64x48xf32, #tpu.memory_space<vmem>>, vector<50x48xf32>,
    %cst_176 = arith.constant 0.000000e+00 : f32
    %205 = vector.broadcast %cst_176 : f32 to vector<50x48xf32>
    %c5_177 = arith.constant 5 : index
    %c0_178 = arith.constant 0 : index
    %206 = vector.load %arg7[%c5_177, %c0_178] : memref<64x48xf32, #tpu.memory_space<vmem>>, vector<50x48xf32>
    %c28 = arith.constant 28 : index
    %c0_179 = arith.constant 0 : index
    %c0_180 = arith.constant 0 : index
    %207 = vector.load %arg1[%c28, %c0_179, %c0_180] : memref<35x48x48xf32, #tpu.memory_space<vmem>>, vector<1x48x48xf32>
    %208 = vector.shape_cast %207 : vector<1x48x48xf32> to vector<48x48xf32>
    %cst_181 = arith.constant dense<0.000000e+00> : vector<50x48xf32>
    %209 = tpu.matmul %206, %208, %cst_181 {dimension_numbers = #tpu.dot_dimension_numbers<[1], [0], [0], [1], [0, 0, 1, 1], [], []>} : vector<50x48xf32>, vector<48x48xf32>, vector<50x48xf32> -> vector<50x48xf32>
    %210 = arith.addf %205, %209 : vector<50x48xf32>
    %c6_182 = arith.constant 6 : index
    %c0_183 = arith.constant 0 : index
    %211 = vector.load %arg7[%c6_182, %c0_183] : memref<64x48xf32, #tpu.memory_space<vmem>>, vector<50x48xf32>
    %c29 = arith.constant 29 : index
    %c0_184 = arith.constant 0 : index
    %c0_185 = arith.constant 0 : index
    %212 = vector.load %arg1[%c29, %c0_184, %c0_185] : memref<35x48x48xf32, #tpu.memory_space<vmem>>, vector<1x48x48xf32>
    %213 = vector.shape_cast %212 : vector<1x48x48xf32> to vector<48x48xf32>
    %cst_186 = arith.constant dense<0.000000e+00> : vector<50x48xf32>
    %214 = tpu.matmul %211, %213, %cst_186 {dimension_numbers = #tpu.dot_dimension_numbers<[1], [0], [0], [1], [0, 0, 1, 1], [], []>} : vector<50x48xf32>, vector<48x48xf32>, vector<50x48xf32> -> vector<50x48xf32>
    %215 = arith.addf %210, %214 : vector<50x48xf32>
    %c7_187 = arith.constant 7 : index
    %c0_188 = arith.constant 0 : index
    %216 = vector.load %arg7[%c7_187, %c0_188] : memref<64x48xf32, #tpu.memory_space<vmem>>, vector<50x48xf32>
    %c30 = arith.constant 30 : index
    %c0_189 = arith.constant 0 : index
    %c0_190 = arith.constant 0 : index
    %217 = vector.load %arg1[%c30, %c0_189, %c0_190] : memref<35x48x48xf32, #tpu.memory_space<vmem>>, vector<1x48x48xf32>
    %218 = vector.shape_cast %217 : vector<1x48x48xf32> to vector<48x48xf32>
    %cst_191 = arith.constant dense<0.000000e+00> : vector<50x48xf32>
    %219 = tpu.matmul %216, %218, %cst_191 {dimension_numbers = #tpu.dot_dimension_numbers<[1], [0], [0], [1], [0, 0, 1, 1], [], []>} : vector<50x48xf32>, vector<48x48xf32>, vector<50x48xf32> -> vector<50x48xf32>
    %220 = arith.addf %215, %219 : vector<50x48xf32>
    %c8_192 = arith.constant 8 : index
    %c0_193 = arith.constant 0 : index
    %221 = vector.load %arg7[%c8_192, %c0_193] : memref<64x48xf32, #tpu.memory_space<vmem>>, vector<50x48xf32>
    %c31 = arith.constant 31 : index
    %c0_194 = arith.constant 0 : index
    %c0_195 = arith.constant 0 : index
    %222 = vector.load %arg1[%c31, %c0_194, %c0_195] : memref<35x48x48xf32, #tpu.memory_space<vmem>>, vector<1x48x48xf32>
    %223 = vector.shape_cast %222 : vector<1x48x48xf32> to vector<48x48xf32>
    %cst_196 = arith.constant dense<0.000000e+00> : vector<50x48xf32>
    %224 = tpu.matmul %221, %223, %cst_196 {dimension_numbers = #tpu.dot_dimension_numbers<[1], [0], [0], [1], [0, 0, 1, 1], [], []>} : vector<50x48xf32>, vector<48x48xf32>, vector<50x48xf32> -> vector<50x48xf32>
    %225 = arith.addf %220, %224 : vector<50x48xf32>
    %c9_197 = arith.constant 9 : index
    %c0_198 = arith.constant 0 : index
    %226 = vector.load %arg7[%c9_197, %c0_198] : memref<64x48xf32, #tpu.memory_space<vmem>>, vector<50x48xf32>
    %c32 = arith.constant 32 : index
    %c0_199 = arith.constant 0 : index
    %c0_200 = arith.constant 0 : index
    %227 = vector.load %arg1[%c32, %c0_199, %c0_200] : memref<35x48x48xf32, #tpu.memory_space<vmem>>, vector<1x48x48xf32>
    %228 = vector.shape_cast %227 : vector<1x48x48xf32> to vector<48x48xf32>
    %cst_201 = arith.constant dense<0.000000e+00> : vector<50x48xf32>
    %229 = tpu.matmul %226, %228, %cst_201 {dimension_numbers = #tpu.dot_dimension_numbers<[1], [0], [0], [1], [0, 0, 1, 1], [], []>} : vector<50x48xf32>, vector<48x48xf32>, vector<50x48xf32> -> vector<50x48xf32>
    %230 = arith.addf %225, %229 : vector<50x48xf32>
    %c10_202 = arith.constant 10 : index
    %c0_203 = arith.constant 0 : index
    %231 = vector.load %arg7[%c10_202, %c0_203] : memref<64x48xf32, #tpu.memory_space<vmem>>, vector<50x48xf32>
    %c33 = arith.constant 33 : index
    %c0_204 = arith.constant 0 : index
    %c0_205 = arith.constant 0 : index
    %232 = vector.load %arg1[%c33, %c0_204, %c0_205] : memref<35x48x48xf32, #tpu.memory_space<vmem>>, vector<1x48x48xf32>
    %233 = vector.shape_cast %232 : vector<1x48x48xf32> to vector<48x48xf32>
    %cst_206 = arith.constant dense<0.000000e+00> : vector<50x48xf32>
    %234 = tpu.matmul %231, %233, %cst_206 {dimension_numbers = #tpu.dot_dimension_numbers<[1], [0], [0], [1], [0, 0, 1, 1], [], []>} : vector<50x48xf32>, vector<48x48xf32>, vector<50x48xf32> -> vector<50x48xf32>
    %235 = arith.addf %230, %234 : vector<50x48xf32>
    %c11_207 = arith.constant 11 : index
    %c0_208 = arith.constant 0 : index
    %236 = vector.load %arg7[%c11_207, %c0_208] : memref<64x48xf32, #tpu.memory_space<vmem>>, vector<50x48xf32>
    %c34 = arith.constant 34 : index
    %c0_209 = arith.constant 0 : index
    %c0_210 = arith.constant 0 : index
    %237 = vector.load %arg1[%c34, %c0_209, %c0_210] : memref<35x48x48xf32, #tpu.memory_space<vmem>>, vector<1x48x48xf32>
    %238 = vector.shape_cast %237 : vector<1x48x48xf32> to vector<48x48xf32>
    %cst_211 = arith.constant dense<0.000000e+00> : vector<50x48xf32>
    %239 = tpu.matmul %236, %238, %cst_211 {dimension_numbers = #tpu.dot_dimension_numbers<[1], [0], [0], [1], [0, 0, 1, 1], [], []>} : vector<50x48xf32>, vector<48x48xf32>, vector<50x48xf32> -> vector<50x48xf32>
    %240 = arith.addf %235, %239 : vector<50x48xf32>
    %c4_212 = arith.constant 4 : index
    %c0_213 = arith.constant 0 : index
    %c0_214 = arith.constant 0 : index
    %241 = vector.load %arg2[%c4_212, %c0_213, %c0_214] : memref<5x1x48xf32, #tpu.memory_space<vmem>>, vector<1x1x48xf32>
    %242 = vector.shape_cast %241 : vector<1x1x48xf32> to vector<1x48xf32>
    %243 = vector.broadcast %242 : vector<1x48xf32> to vector<50x48xf32>
    %244 = arith.addf %240, %243 : vector<50x48xf32>
    %cst_215 = arith.constant 0.000000e+00 : f32
    %245 = vector.broadcast %cst_215 : f32 to vector<50x48xf32>
    %246 = arith.maximumf %244, %245 : vector<50x48xf32>
    %247 = vector.broadcast %24 : vector<50x1xf32> to vector<50x48xf32>
    %248 = arith.mulf %246, %247 : vector<50x48xf32>
    %c8_216 = arith.constant 8 : index
    %c0_217 = arith.constant 0 : index
    %249 = vector.load %arg6[%c8_216, %c0_217] : memref<64x48xf32, #tpu.memory_space<vmem>>, vector<50x48xf32>
    tpu.vector_store %arg6[%c8_216, %c0_217], %248 {strides = array<i32>} : memref<64x48xf32, #tpu.memory_space<vmem>>, vector<50x48xf32>,
    %cst_218 = arith.constant 0.000000e+00 : f32
    %250 = vector.broadcast %cst_218 : f32 to vector<2x16xf32>
    %c8_219 = arith.constant 8 : index
    %c0_220 = arith.constant 0 : index
    %251 = vector.load %arg6[%c8_219, %c0_220] : memref<64x48xf32, #tpu.memory_space<vmem>>, vector<1x48xf32>
    %c40 = arith.constant 40 : index
    %c0_221 = arith.constant 0 : index
    %252 = vector.load %arg6[%c40, %c0_221] : memref<64x48xf32, #tpu.memory_space<vmem>>, vector<1x48xf32>
    %253 = tpu.concatenate %251, %252 in 0 : vector<1x48xf32>, vector<1x48xf32> -> vector<2x48xf32>
    %c0_222 = arith.constant 0 : index
    %c0_223 = arith.constant 0 : index
    %c0_224 = arith.constant 0 : index
    %254 = vector.load %arg3[%c0_222, %c0_223, %c0_224] : memref<18x48x16xf32, #tpu.memory_space<vmem>>, vector<1x48x16xf32>
    %255 = vector.shape_cast %254 : vector<1x48x16xf32> to vector<48x16xf32>
    %cst_225 = arith.constant dense<0.000000e+00> : vector<2x16xf32>
    %256 = tpu.matmul %253, %255, %cst_225 {dimension_numbers = #tpu.dot_dimension_numbers<[1], [0], [0], [1], [0, 0, 1, 1], [], []>} : vector<2x48xf32>, vector<48x16xf32>, vector<2x16xf32> -> vector<2x16xf32>
    %257 = arith.addf %250, %256 : vector<2x16xf32>
    %c9_226 = arith.constant 9 : index
    %c0_227 = arith.constant 0 : index
    %258 = vector.load %arg6[%c9_226, %c0_227] : memref<64x48xf32, #tpu.memory_space<vmem>>, vector<1x48xf32>
    %c41 = arith.constant 41 : index
    %c0_228 = arith.constant 0 : index
    %259 = vector.load %arg6[%c41, %c0_228] : memref<64x48xf32, #tpu.memory_space<vmem>>, vector<1x48xf32>
    %260 = tpu.concatenate %258, %259 in 0 : vector<1x48xf32>, vector<1x48xf32> -> vector<2x48xf32>
    %c1_229 = arith.constant 1 : index
    %c0_230 = arith.constant 0 : index
    %c0_231 = arith.constant 0 : index
    %261 = vector.load %arg3[%c1_229, %c0_230, %c0_231] : memref<18x48x16xf32, #tpu.memory_space<vmem>>, vector<1x48x16xf32>
    %262 = vector.shape_cast %261 : vector<1x48x16xf32> to vector<48x16xf32>
    %cst_232 = arith.constant dense<0.000000e+00> : vector<2x16xf32>
    %263 = tpu.matmul %260, %262, %cst_232 {dimension_numbers = #tpu.dot_dimension_numbers<[1], [0], [0], [1], [0, 0, 1, 1], [], []>} : vector<2x48xf32>, vector<48x16xf32>, vector<2x16xf32> -> vector<2x16xf32>
    %264 = arith.addf %257, %263 : vector<2x16xf32>
    %c10_233 = arith.constant 10 : index
    %c0_234 = arith.constant 0 : index
    %265 = vector.load %arg6[%c10_233, %c0_234] : memref<64x48xf32, #tpu.memory_space<vmem>>, vector<1x48xf32>
    %c42 = arith.constant 42 : index
    %c0_235 = arith.constant 0 : index
    %266 = vector.load %arg6[%c42, %c0_235] : memref<64x48xf32, #tpu.memory_space<vmem>>, vector<1x48xf32>
    %267 = tpu.concatenate %265, %266 in 0 : vector<1x48xf32>, vector<1x48xf32> -> vector<2x48xf32>
    %c2_236 = arith.constant 2 : index
    %c0_237 = arith.constant 0 : index
    %c0_238 = arith.constant 0 : index
    %268 = vector.load %arg3[%c2_236, %c0_237, %c0_238] : memref<18x48x16xf32, #tpu.memory_space<vmem>>, vector<1x48x16xf32>
    %269 = vector.shape_cast %268 : vector<1x48x16xf32> to vector<48x16xf32>
    %cst_239 = arith.constant dense<0.000000e+00> : vector<2x16xf32>
    %270 = tpu.matmul %267, %269, %cst_239 {dimension_numbers = #tpu.dot_dimension_numbers<[1], [0], [0], [1], [0, 0, 1, 1], [], []>} : vector<2x48xf32>, vector<48x16xf32>, vector<2x16xf32> -> vector<2x16xf32>
    %271 = arith.addf %264, %270 : vector<2x16xf32>
    %c11_240 = arith.constant 11 : index
    %c0_241 = arith.constant 0 : index
    %272 = vector.load %arg6[%c11_240, %c0_241] : memref<64x48xf32, #tpu.memory_space<vmem>>, vector<1x48xf32>
    %c43 = arith.constant 43 : index
    %c0_242 = arith.constant 0 : index
    %273 = vector.load %arg6[%c43, %c0_242] : memref<64x48xf32, #tpu.memory_space<vmem>>, vector<1x48xf32>
    %274 = tpu.concatenate %272, %273 in 0 : vector<1x48xf32>, vector<1x48xf32> -> vector<2x48xf32>
    %c3_243 = arith.constant 3 : index
    %c0_244 = arith.constant 0 : index
    %c0_245 = arith.constant 0 : index
    %275 = vector.load %arg3[%c3_243, %c0_244, %c0_245] : memref<18x48x16xf32, #tpu.memory_space<vmem>>, vector<1x48x16xf32>
    %276 = vector.shape_cast %275 : vector<1x48x16xf32> to vector<48x16xf32>
    %cst_246 = arith.constant dense<0.000000e+00> : vector<2x16xf32>
    %277 = tpu.matmul %274, %276, %cst_246 {dimension_numbers = #tpu.dot_dimension_numbers<[1], [0], [0], [1], [0, 0, 1, 1], [], []>} : vector<2x48xf32>, vector<48x16xf32>, vector<2x16xf32> -> vector<2x16xf32>
    %278 = arith.addf %271, %277 : vector<2x16xf32>
    %c12_247 = arith.constant 12 : index
    %c0_248 = arith.constant 0 : index
    %279 = vector.load %arg6[%c12_247, %c0_248] : memref<64x48xf32, #tpu.memory_space<vmem>>, vector<1x48xf32>
    %c44 = arith.constant 44 : index
    %c0_249 = arith.constant 0 : index
    %280 = vector.load %arg6[%c44, %c0_249] : memref<64x48xf32, #tpu.memory_space<vmem>>, vector<1x48xf32>
    %281 = tpu.concatenate %279, %280 in 0 : vector<1x48xf32>, vector<1x48xf32> -> vector<2x48xf32>
    %c4_250 = arith.constant 4 : index
    %c0_251 = arith.constant 0 : index
    %c0_252 = arith.constant 0 : index
    %282 = vector.load %arg3[%c4_250, %c0_251, %c0_252] : memref<18x48x16xf32, #tpu.memory_space<vmem>>, vector<1x48x16xf32>
    %283 = vector.shape_cast %282 : vector<1x48x16xf32> to vector<48x16xf32>
    %cst_253 = arith.constant dense<0.000000e+00> : vector<2x16xf32>
    %284 = tpu.matmul %281, %283, %cst_253 {dimension_numbers = #tpu.dot_dimension_numbers<[1], [0], [0], [1], [0, 0, 1, 1], [], []>} : vector<2x48xf32>, vector<48x16xf32>, vector<2x16xf32> -> vector<2x16xf32>
    %285 = arith.addf %278, %284 : vector<2x16xf32>
    %c13_254 = arith.constant 13 : index
    %c0_255 = arith.constant 0 : index
    %286 = vector.load %arg6[%c13_254, %c0_255] : memref<64x48xf32, #tpu.memory_space<vmem>>, vector<1x48xf32>
    %c45 = arith.constant 45 : index
    %c0_256 = arith.constant 0 : index
    %287 = vector.load %arg6[%c45, %c0_256] : memref<64x48xf32, #tpu.memory_space<vmem>>, vector<1x48xf32>
    %288 = tpu.concatenate %286, %287 in 0 : vector<1x48xf32>, vector<1x48xf32> -> vector<2x48xf32>
    %c5_257 = arith.constant 5 : index
    %c0_258 = arith.constant 0 : index
    %c0_259 = arith.constant 0 : index
    %289 = vector.load %arg3[%c5_257, %c0_258, %c0_259] : memref<18x48x16xf32, #tpu.memory_space<vmem>>, vector<1x48x16xf32>
    %290 = vector.shape_cast %289 : vector<1x48x16xf32> to vector<48x16xf32>
    %cst_260 = arith.constant dense<0.000000e+00> : vector<2x16xf32>
    %291 = tpu.matmul %288, %290, %cst_260 {dimension_numbers = #tpu.dot_dimension_numbers<[1], [0], [0], [1], [0, 0, 1, 1], [], []>} : vector<2x48xf32>, vector<48x16xf32>, vector<2x16xf32> -> vector<2x16xf32>
    %292 = arith.addf %285, %291 : vector<2x16xf32>
    %c14_261 = arith.constant 14 : index
    %c0_262 = arith.constant 0 : index
    %293 = vector.load %arg6[%c14_261, %c0_262] : memref<64x48xf32, #tpu.memory_space<vmem>>, vector<1x48xf32>
    %c46 = arith.constant 46 : index
    %c0_263 = arith.constant 0 : index
    %294 = vector.load %arg6[%c46, %c0_263] : memref<64x48xf32, #tpu.memory_space<vmem>>, vector<1x48xf32>
    %295 = tpu.concatenate %293, %294 in 0 : vector<1x48xf32>, vector<1x48xf32> -> vector<2x48xf32>
    %c6_264 = arith.constant 6 : index
    %c0_265 = arith.constant 0 : index
    %c0_266 = arith.constant 0 : index
    %296 = vector.load %arg3[%c6_264, %c0_265, %c0_266] : memref<18x48x16xf32, #tpu.memory_space<vmem>>, vector<1x48x16xf32>
    %297 = vector.shape_cast %296 : vector<1x48x16xf32> to vector<48x16xf32>
    %cst_267 = arith.constant dense<0.000000e+00> : vector<2x16xf32>
    %298 = tpu.matmul %295, %297, %cst_267 {dimension_numbers = #tpu.dot_dimension_numbers<[1], [0], [0], [1], [0, 0, 1, 1], [], []>} : vector<2x48xf32>, vector<48x16xf32>, vector<2x16xf32> -> vector<2x16xf32>
    %299 = arith.addf %292, %298 : vector<2x16xf32>
    %c15_268 = arith.constant 15 : index
    %c0_269 = arith.constant 0 : index
    %300 = vector.load %arg6[%c15_268, %c0_269] : memref<64x48xf32, #tpu.memory_space<vmem>>, vector<1x48xf32>
    %c47 = arith.constant 47 : index
    %c0_270 = arith.constant 0 : index
    %301 = vector.load %arg6[%c47, %c0_270] : memref<64x48xf32, #tpu.memory_space<vmem>>, vector<1x48xf32>
    %302 = tpu.concatenate %300, %301 in 0 : vector<1x48xf32>, vector<1x48xf32> -> vector<2x48xf32>
    %c7_271 = arith.constant 7 : index
    %c0_272 = arith.constant 0 : index
    %c0_273 = arith.constant 0 : index
    %303 = vector.load %arg3[%c7_271, %c0_272, %c0_273] : memref<18x48x16xf32, #tpu.memory_space<vmem>>, vector<1x48x16xf32>
    %304 = vector.shape_cast %303 : vector<1x48x16xf32> to vector<48x16xf32>
    %cst_274 = arith.constant dense<0.000000e+00> : vector<2x16xf32>
    %305 = tpu.matmul %302, %304, %cst_274 {dimension_numbers = #tpu.dot_dimension_numbers<[1], [0], [0], [1], [0, 0, 1, 1], [], []>} : vector<2x48xf32>, vector<48x16xf32>, vector<2x16xf32> -> vector<2x16xf32>
    %306 = arith.addf %299, %305 : vector<2x16xf32>
    %c16_275 = arith.constant 16 : index
    %c0_276 = arith.constant 0 : index
    %307 = vector.load %arg6[%c16_275, %c0_276] : memref<64x48xf32, #tpu.memory_space<vmem>>, vector<1x48xf32>
    %c48 = arith.constant 48 : index
    %c0_277 = arith.constant 0 : index
    %308 = vector.load %arg6[%c48, %c0_277] : memref<64x48xf32, #tpu.memory_space<vmem>>, vector<1x48xf32>
    %309 = tpu.concatenate %307, %308 in 0 : vector<1x48xf32>, vector<1x48xf32> -> vector<2x48xf32>
    %c8_278 = arith.constant 8 : index
    %c0_279 = arith.constant 0 : index
    %c0_280 = arith.constant 0 : index
    %310 = vector.load %arg3[%c8_278, %c0_279, %c0_280] : memref<18x48x16xf32, #tpu.memory_space<vmem>>, vector<1x48x16xf32>
    %311 = vector.shape_cast %310 : vector<1x48x16xf32> to vector<48x16xf32>
    %cst_281 = arith.constant dense<0.000000e+00> : vector<2x16xf32>
    %312 = tpu.matmul %309, %311, %cst_281 {dimension_numbers = #tpu.dot_dimension_numbers<[1], [0], [0], [1], [0, 0, 1, 1], [], []>} : vector<2x48xf32>, vector<48x16xf32>, vector<2x16xf32> -> vector<2x16xf32>
    %313 = arith.addf %306, %312 : vector<2x16xf32>
    %c17_282 = arith.constant 17 : index
    %c0_283 = arith.constant 0 : index
    %314 = vector.load %arg6[%c17_282, %c0_283] : memref<64x48xf32, #tpu.memory_space<vmem>>, vector<1x48xf32>
    %c49 = arith.constant 49 : index
    %c0_284 = arith.constant 0 : index
    %315 = vector.load %arg6[%c49, %c0_284] : memref<64x48xf32, #tpu.memory_space<vmem>>, vector<1x48xf32>
    %316 = tpu.concatenate %314, %315 in 0 : vector<1x48xf32>, vector<1x48xf32> -> vector<2x48xf32>
    %c9_285 = arith.constant 9 : index
    %c0_286 = arith.constant 0 : index
    %c0_287 = arith.constant 0 : index
    %317 = vector.load %arg3[%c9_285, %c0_286, %c0_287] : memref<18x48x16xf32, #tpu.memory_space<vmem>>, vector<1x48x16xf32>
    %318 = vector.shape_cast %317 : vector<1x48x16xf32> to vector<48x16xf32>
    %cst_288 = arith.constant dense<0.000000e+00> : vector<2x16xf32>
    %319 = tpu.matmul %316, %318, %cst_288 {dimension_numbers = #tpu.dot_dimension_numbers<[1], [0], [0], [1], [0, 0, 1, 1], [], []>} : vector<2x48xf32>, vector<48x16xf32>, vector<2x16xf32> -> vector<2x16xf32>
    %320 = arith.addf %313, %319 : vector<2x16xf32>
    %c18_289 = arith.constant 18 : index
    %c0_290 = arith.constant 0 : index
    %321 = vector.load %arg6[%c18_289, %c0_290] : memref<64x48xf32, #tpu.memory_space<vmem>>, vector<1x48xf32>
    %c50 = arith.constant 50 : index
    %c0_291 = arith.constant 0 : index
    %322 = vector.load %arg6[%c50, %c0_291] : memref<64x48xf32, #tpu.memory_space<vmem>>, vector<1x48xf32>
    %323 = tpu.concatenate %321, %322 in 0 : vector<1x48xf32>, vector<1x48xf32> -> vector<2x48xf32>
    %c10_292 = arith.constant 10 : index
    %c0_293 = arith.constant 0 : index
    %c0_294 = arith.constant 0 : index
    %324 = vector.load %arg3[%c10_292, %c0_293, %c0_294] : memref<18x48x16xf32, #tpu.memory_space<vmem>>, vector<1x48x16xf32>
    %325 = vector.shape_cast %324 : vector<1x48x16xf32> to vector<48x16xf32>
    %cst_295 = arith.constant dense<0.000000e+00> : vector<2x16xf32>
    %326 = tpu.matmul %323, %325, %cst_295 {dimension_numbers = #tpu.dot_dimension_numbers<[1], [0], [0], [1], [0, 0, 1, 1], [], []>} : vector<2x48xf32>, vector<48x16xf32>, vector<2x16xf32> -> vector<2x16xf32>
    %327 = arith.addf %320, %326 : vector<2x16xf32>
    %c19_296 = arith.constant 19 : index
    %c0_297 = arith.constant 0 : index
    %328 = vector.load %arg6[%c19_296, %c0_297] : memref<64x48xf32, #tpu.memory_space<vmem>>, vector<1x48xf32>
    %c51 = arith.constant 51 : index
    %c0_298 = arith.constant 0 : index
    %329 = vector.load %arg6[%c51, %c0_298] : memref<64x48xf32, #tpu.memory_space<vmem>>, vector<1x48xf32>
    %330 = tpu.concatenate %328, %329 in 0 : vector<1x48xf32>, vector<1x48xf32> -> vector<2x48xf32>
    %c11_299 = arith.constant 11 : index
    %c0_300 = arith.constant 0 : index
    %c0_301 = arith.constant 0 : index
    %331 = vector.load %arg3[%c11_299, %c0_300, %c0_301] : memref<18x48x16xf32, #tpu.memory_space<vmem>>, vector<1x48x16xf32>
    %332 = vector.shape_cast %331 : vector<1x48x16xf32> to vector<48x16xf32>
    %cst_302 = arith.constant dense<0.000000e+00> : vector<2x16xf32>
    %333 = tpu.matmul %330, %332, %cst_302 {dimension_numbers = #tpu.dot_dimension_numbers<[1], [0], [0], [1], [0, 0, 1, 1], [], []>} : vector<2x48xf32>, vector<48x16xf32>, vector<2x16xf32> -> vector<2x16xf32>
    %334 = arith.addf %327, %333 : vector<2x16xf32>
    %c20_303 = arith.constant 20 : index
    %c0_304 = arith.constant 0 : index
    %335 = vector.load %arg6[%c20_303, %c0_304] : memref<64x48xf32, #tpu.memory_space<vmem>>, vector<1x48xf32>
    %c52 = arith.constant 52 : index
    %c0_305 = arith.constant 0 : index
    %336 = vector.load %arg6[%c52, %c0_305] : memref<64x48xf32, #tpu.memory_space<vmem>>, vector<1x48xf32>
    %337 = tpu.concatenate %335, %336 in 0 : vector<1x48xf32>, vector<1x48xf32> -> vector<2x48xf32>
    %c12_306 = arith.constant 12 : index
    %c0_307 = arith.constant 0 : index
    %c0_308 = arith.constant 0 : index
    %338 = vector.load %arg3[%c12_306, %c0_307, %c0_308] : memref<18x48x16xf32, #tpu.memory_space<vmem>>, vector<1x48x16xf32>
    %339 = vector.shape_cast %338 : vector<1x48x16xf32> to vector<48x16xf32>
    %cst_309 = arith.constant dense<0.000000e+00> : vector<2x16xf32>
    %340 = tpu.matmul %337, %339, %cst_309 {dimension_numbers = #tpu.dot_dimension_numbers<[1], [0], [0], [1], [0, 0, 1, 1], [], []>} : vector<2x48xf32>, vector<48x16xf32>, vector<2x16xf32> -> vector<2x16xf32>
    %341 = arith.addf %334, %340 : vector<2x16xf32>
    %c21_310 = arith.constant 21 : index
    %c0_311 = arith.constant 0 : index
    %342 = vector.load %arg6[%c21_310, %c0_311] : memref<64x48xf32, #tpu.memory_space<vmem>>, vector<1x48xf32>
    %c53 = arith.constant 53 : index
    %c0_312 = arith.constant 0 : index
    %343 = vector.load %arg6[%c53, %c0_312] : memref<64x48xf32, #tpu.memory_space<vmem>>, vector<1x48xf32>
    %344 = tpu.concatenate %342, %343 in 0 : vector<1x48xf32>, vector<1x48xf32> -> vector<2x48xf32>
    %c13_313 = arith.constant 13 : index
    %c0_314 = arith.constant 0 : index
    %c0_315 = arith.constant 0 : index
    %345 = vector.load %arg3[%c13_313, %c0_314, %c0_315] : memref<18x48x16xf32, #tpu.memory_space<vmem>>, vector<1x48x16xf32>
    %346 = vector.shape_cast %345 : vector<1x48x16xf32> to vector<48x16xf32>
    %cst_316 = arith.constant dense<0.000000e+00> : vector<2x16xf32>
    %347 = tpu.matmul %344, %346, %cst_316 {dimension_numbers = #tpu.dot_dimension_numbers<[1], [0], [0], [1], [0, 0, 1, 1], [], []>} : vector<2x48xf32>, vector<48x16xf32>, vector<2x16xf32> -> vector<2x16xf32>
    %348 = arith.addf %341, %347 : vector<2x16xf32>
    %c22_317 = arith.constant 22 : index
    %c0_318 = arith.constant 0 : index
    %349 = vector.load %arg6[%c22_317, %c0_318] : memref<64x48xf32, #tpu.memory_space<vmem>>, vector<1x48xf32>
    %c54 = arith.constant 54 : index
    %c0_319 = arith.constant 0 : index
    %350 = vector.load %arg6[%c54, %c0_319] : memref<64x48xf32, #tpu.memory_space<vmem>>, vector<1x48xf32>
    %351 = tpu.concatenate %349, %350 in 0 : vector<1x48xf32>, vector<1x48xf32> -> vector<2x48xf32>
    %c14_320 = arith.constant 14 : index
    %c0_321 = arith.constant 0 : index
    %c0_322 = arith.constant 0 : index
    %352 = vector.load %arg3[%c14_320, %c0_321, %c0_322] : memref<18x48x16xf32, #tpu.memory_space<vmem>>, vector<1x48x16xf32>
    %353 = vector.shape_cast %352 : vector<1x48x16xf32> to vector<48x16xf32>
    %cst_323 = arith.constant dense<0.000000e+00> : vector<2x16xf32>
    %354 = tpu.matmul %351, %353, %cst_323 {dimension_numbers = #tpu.dot_dimension_numbers<[1], [0], [0], [1], [0, 0, 1, 1], [], []>} : vector<2x48xf32>, vector<48x16xf32>, vector<2x16xf32> -> vector<2x16xf32>
    %355 = arith.addf %348, %354 : vector<2x16xf32>
    %c23_324 = arith.constant 23 : index
    %c0_325 = arith.constant 0 : index
    %356 = vector.load %arg6[%c23_324, %c0_325] : memref<64x48xf32, #tpu.memory_space<vmem>>, vector<1x48xf32>
    %c55 = arith.constant 55 : index
    %c0_326 = arith.constant 0 : index
    %357 = vector.load %arg6[%c55, %c0_326] : memref<64x48xf32, #tpu.memory_space<vmem>>, vector<1x48xf32>
    %358 = tpu.concatenate %356, %357 in 0 : vector<1x48xf32>, vector<1x48xf32> -> vector<2x48xf32>
    %c15_327 = arith.constant 15 : index
    %c0_328 = arith.constant 0 : index
    %c0_329 = arith.constant 0 : index
    %359 = vector.load %arg3[%c15_327, %c0_328, %c0_329] : memref<18x48x16xf32, #tpu.memory_space<vmem>>, vector<1x48x16xf32>
    %360 = vector.shape_cast %359 : vector<1x48x16xf32> to vector<48x16xf32>
    %cst_330 = arith.constant dense<0.000000e+00> : vector<2x16xf32>
    %361 = tpu.matmul %358, %360, %cst_330 {dimension_numbers = #tpu.dot_dimension_numbers<[1], [0], [0], [1], [0, 0, 1, 1], [], []>} : vector<2x48xf32>, vector<48x16xf32>, vector<2x16xf32> -> vector<2x16xf32>
    %362 = arith.addf %355, %361 : vector<2x16xf32>
    %c24_331 = arith.constant 24 : index
    %c0_332 = arith.constant 0 : index
    %363 = vector.load %arg6[%c24_331, %c0_332] : memref<64x48xf32, #tpu.memory_space<vmem>>, vector<1x48xf32>
    %c56 = arith.constant 56 : index
    %c0_333 = arith.constant 0 : index
    %364 = vector.load %arg6[%c56, %c0_333] : memref<64x48xf32, #tpu.memory_space<vmem>>, vector<1x48xf32>
    %365 = tpu.concatenate %363, %364 in 0 : vector<1x48xf32>, vector<1x48xf32> -> vector<2x48xf32>
    %c16_334 = arith.constant 16 : index
    %c0_335 = arith.constant 0 : index
    %c0_336 = arith.constant 0 : index
    %366 = vector.load %arg3[%c16_334, %c0_335, %c0_336] : memref<18x48x16xf32, #tpu.memory_space<vmem>>, vector<1x48x16xf32>
    %367 = vector.shape_cast %366 : vector<1x48x16xf32> to vector<48x16xf32>
    %cst_337 = arith.constant dense<0.000000e+00> : vector<2x16xf32>
    %368 = tpu.matmul %365, %367, %cst_337 {dimension_numbers = #tpu.dot_dimension_numbers<[1], [0], [0], [1], [0, 0, 1, 1], [], []>} : vector<2x48xf32>, vector<48x16xf32>, vector<2x16xf32> -> vector<2x16xf32>
    %369 = arith.addf %362, %368 : vector<2x16xf32>
    %c25_338 = arith.constant 25 : index
    %c0_339 = arith.constant 0 : index
    %370 = vector.load %arg6[%c25_338, %c0_339] : memref<64x48xf32, #tpu.memory_space<vmem>>, vector<1x48xf32>
    %c57 = arith.constant 57 : index
    %c0_340 = arith.constant 0 : index
    %371 = vector.load %arg6[%c57, %c0_340] : memref<64x48xf32, #tpu.memory_space<vmem>>, vector<1x48xf32>
    %372 = tpu.concatenate %370, %371 in 0 : vector<1x48xf32>, vector<1x48xf32> -> vector<2x48xf32>
    %c17_341 = arith.constant 17 : index
    %c0_342 = arith.constant 0 : index
    %c0_343 = arith.constant 0 : index
    %373 = vector.load %arg3[%c17_341, %c0_342, %c0_343] : memref<18x48x16xf32, #tpu.memory_space<vmem>>, vector<1x48x16xf32>
    %374 = vector.shape_cast %373 : vector<1x48x16xf32> to vector<48x16xf32>
    %cst_344 = arith.constant dense<0.000000e+00> : vector<2x16xf32>
    %375 = tpu.matmul %372, %374, %cst_344 {dimension_numbers = #tpu.dot_dimension_numbers<[1], [0], [0], [1], [0, 0, 1, 1], [], []>} : vector<2x48xf32>, vector<48x16xf32>, vector<2x16xf32> -> vector<2x16xf32>
    %376 = arith.addf %369, %375 : vector<2x16xf32>
    %c0_345 = arith.constant 0 : index
    %c0_346 = arith.constant 0 : index
    %377 = vector.load %arg4[%c0_345, %c0_346] : memref<1x16xf32, #tpu.memory_space<vmem>>, vector<1x16xf32>
    %378 = vector.broadcast %377 : vector<1x16xf32> to vector<2x16xf32>
    %379 = arith.addf %376, %378 : vector<2x16xf32>
    %c0_347 = arith.constant 0 : index
    %c0_348 = arith.constant 0 : index
    %380 = vector.load %arg5[%c0_347, %c0_348] : memref<2x16xf32, #tpu.memory_space<vmem>>, vector<2x16xf32>
    tpu.vector_store %arg5[%c0_347, %c0_348], %379 {strides = array<i32>} : memref<2x16xf32, #tpu.memory_space<vmem>>, vector<2x16xf32>,
    return
  }
}

</mosaic_0001>

<bundles_post_ra>
// kernel: tpu_custom_call.1
= control target key start
LH: loop header
LB: loop body
LE: loop exit
PB: predicated region body
PF: predicated region fallthrough
CT: control target
= control target key end

     0   :  { %10 = vsyncpa [#allocation5], 0  ;;  %s11407_s0 = inlined_call_operand.vmem [shape: f32[64,48], index: 0, kind: input, shape index: {}]   ;;  %s11408_s1 = inlined_call_operand.hbm [shape: f32[35,48,48], index: 1, kind: input, shape index: {}]   ;;  %s11409_s2 = inlined_call_operand.vmem [shape: f32[5,1,48], index: 2, kind: input, shape index: {}]   ;;  %s11410_s3 = inlined_call_operand.vmem [shape: f32[18,48,16], index: 3, kind: input, shape index: {}]   ;;  %s11411_s4 = inlined_call_operand.vmem [shape: f32[1,16], index: 4, kind: input, shape index: {}]   ;;  %s11412_s5 = inlined_call_operand.hbm [shape: f32[2,16], index: 5, kind: output, shape index: {}]  }
   0x1   :  { %11 = vsyncpa [#allocation6], 0  ;;  %s9748_s18 = smov [#allocation4]   ;;  %s9700_s22 = scalar_lea.hbm %s11408_s1, 26880 }
   0x2   :  { %s19_s19 = sshll.u32 %s9748_s18, 4  ;;  %p9701_p0 = scmp.ne.s32.totalorder %s11408_s1, %s9700_s22  ;;  %s20_s19 = int_to_ptr.vmem [resolvable:$true] %s19_s19 }
   0x3   :  { %p9704_p1 = scmp.lt.u32.totalorder %s9700_s22, %s11408_s1 }
   0x5   :  { %p9706_p2 = pnand %p9704_p1, %p9701_p0 }
   0x7   :  { %9709 = shalt.err (!%p9706_p2)
}
   0x8   :  { %s9710_s27 = scalar_lea.vmem %s20_s19, 26880  ;;  %p9715_p4 = scmp.lt.s32.totalorder %s20_s19, %s20_s19 }
   0x9   :  { %p9711_p3 = scmp.ne.s32.totalorder %s20_s19, %s9710_s27  ;;  %p9716_p5 = scmp.lt.s32.totalorder %s9710_s27, %s9710_s27 }
   0xb   :  { %p9717_p6 = por %p9716_p5, %p9715_p4 }
   0xd   :  { %p9718_p7 = pnand %p9717_p6, %p9711_p3 }
   0xf   :  { %9721 = shalt.err (!%p9718_p7)
}
  0x10   :  { %s9749_s28 = smov 128   ;;  %s9750_s29 = smov 8  }
  0x11   :  { %25 = dma.hbm_to_vmem [thread:$0]  %s11408_s1, 26880, %s20_s19, [#allocation5], %s9749_s28, %s9749_s28, %s9750_s29  }
  0x12   :  { %9744 = dma.done.wait [#allocation5], 26880  }
  0x13   :  { %9745 = vsyncadd [#allocation5], 4294940416  ;;  %vm35_vm0 = vcmask 392192   ;;  %v9751_v0 = vmov 0.0|0.0   ;;  %v9752_v1 = vmov 0.0   ;;  %vm9753_vm1 = vmmov 0  }
  0x14   :  { %9216 = vmatprep.subr.bf16.mxu0 %v9751_v0  ;;  %9225 = vmatprep.subr.bf16.mxu1 %v9751_v0  ;;  %36 = vst.msk [vmem:[#allocation2] sm:$0xff] %vm35_vm0, %v9752_v1  ;;  %37 = vst.msk [vmem:[#allocation2 + $0x8] sm:$0xff] %vm35_vm0, %v9752_v1  ;;  %v186_v2 = vld [vmem:[#allocation4 + $0x30] sm:$0xff]  ;;  %v187_v3 = vld [vmem:[#allocation4 + $0x38] sm:$0xff]  ;;  %vm1178_vm4 = vcmask 386048   ;;  %vm5249_vm5 = vcmask 1040384  }
  0x15   :  { %38 = vst.msk [vmem:[#allocation2 + $0x10] sm:$0xff] %vm35_vm0, %v9752_v1  ;;  %39 = vst.msk [vmem:[#allocation2 + $0x18] sm:$0xff] %vm35_vm0, %v9752_v1  ;;  %7803 = vmatprep.mubr.msk.f32.mxu0 %vm9753_vm1, %v9752_v1  ;;  %7836 = vmatprep.mubr.msk.f32.mxu1 %vm9753_vm1, %v9752_v1  ;;  %v172_v4 = vld [vmem:[#allocation4] sm:$0xff]  ;;  %v9217_v5 = vpack.c.bf16 %v187_v3, %v186_v2  ;;  %v173_v6 = vld [vmem:[#allocation4 + $0x8] sm:$0xff]  ;;  %s9754_s29 = smov [#allocation7]   ;;  %vm6816_vm6 = vcmask 123904  }
  0x16   :  { %40 = vst.msk [vmem:[#allocation2 + $0x20] sm:$0xff] %vm35_vm0, %v9752_v1  ;;  %41 = vst.msk [vmem:[#allocation2 + $0x28] sm:$0xff] %vm35_vm0, %v9752_v1  ;;  %v188_v7 = vld [vmem:[#allocation4 + $0x40] sm:$0xff]  ;;  %v189_v8 = vld [vmem:[#allocation4 + $0x48] sm:$0xff]  ;;  %v9226_v9 = vpack.c.bf16 %v173_v6, %v172_v4  ;;  %s6824_s30 = sshll.u32 %s9754_s29, 4  ;;  %s6825_s30 = int_to_ptr.vmem [resolvable:$true] %s6824_s30 }
  0x17   :  { %42 = vst.msk [vmem:[#allocation2 + $0x30] sm:$0xff] %vm35_vm0, %v9752_v1  ;;  %43 = vst.msk [vmem:[#allocation2 + $0x38] sm:$0xff] %vm35_vm0, %v9752_v1  ;;  %v174_v10 = vld [vmem:[#allocation4 + $0x10] sm:$0xff]  ;;  %v175_v11 = vld [vmem:[#allocation4 + $0x18] sm:$0xff]  ;;  %9218 = vmatpush3.bf16.msra.mxu0 %v9217_v5  ;;  %v9220_v12 = vpack.c.bf16 %v189_v8, %v188_v7  ;;  %s9722_s6 = scalar_lea.vmem %s6825_s30, 32  ;;  %p9727_p9 = scmp.lt.s32.totalorder %s6825_s30, %s6825_s30 }
  0x18   :  { %44 = vst.msk [vmem:[#allocation3] sm:$0xff] %vm35_vm0, %v9752_v1  ;;  %45 = vst.msk [vmem:[#allocation3 + $0x8] sm:$0xff] %vm35_vm0, %v9752_v1  ;;  %9227 = vmatpush3.bf16.msra.mxu1 %v9226_v9  ;;  %9219 = vmatprep.subr.bf16.mxu0 %v9751_v0  ;;  %v9229_v13 = vpack.c.bf16 %v175_v11, %v174_v10  ;;  %v190_v14 = vld [vmem:[#allocation4 + $0x50] sm:$0xff]  ;;  %v191_v15 = vld [vmem:[#allocation4 + $0x58] sm:$0xff]  ;;  %p9723_p8 = scmp.ne.s32.totalorder %s6825_s30, %s9722_s6  ;;  %p9728_p10 = scmp.lt.s32.totalorder %s9722_s6, %s9722_s6 }
  0x19   :  { %46 = vst.msk [vmem:[#allocation3 + $0x10] sm:$0xff] %vm35_vm0, %v9752_v1  ;;  %47 = vst.msk [vmem:[#allocation3 + $0x18] sm:$0xff] %vm35_vm0, %v9752_v1  ;;  %9228 = vmatprep.subr.bf16.mxu1 %v9751_v0  ;;  %v176_v16 = vld [vmem:[#allocation4 + $0x20] sm:$0xff]  ;;  %v177_v17 = vld [vmem:[#allocation4 + $0x28] sm:$0xff]  ;;  %v9223_v18 = vpack.c.bf16 %v191_v15, %v190_v14 }
  0x1a   :  { %48 = vst.msk [vmem:[#allocation3 + $0x20] sm:$0xff] %vm35_vm0, %v9752_v1  ;;  %49 = vst.msk [vmem:[#allocation3 + $0x28] sm:$0xff] %vm35_vm0, %v9752_v1  ;;  %v9232_v19 = vpack.c.bf16 %v177_v17, %v176_v16  ;;  %v442_v20 = vld [vmem:[#allocation4 + $0x60] sm:$0xff]  ;;  %v443_v21 = vld [vmem:[#allocation4 + $0x68] sm:$0xff]  ;;  %p9729_p11 = por %p9728_p10, %p9727_p9 }
  0x1b   :  { %50 = vst.msk [vmem:[#allocation3 + $0x30] sm:$0xff] %vm35_vm0, %v9752_v1  ;;  %51 = vst.msk [vmem:[#allocation3 + $0x38] sm:$0xff] %vm35_vm0, %v9752_v1  ;;  %9221 = vmatpush3.bf16.msra.mxu0 %v9220_v12  ;;  %v584_v22 = vld [vmem:[#allocation4 + $0x90] sm:$0xff]  ;;  %v585_v23 = vld [vmem:[#allocation4 + $0x98] sm:$0xff]  ;;  %v9235_v25 = vpack.c.bf16 %v443_v21, %v442_v20 }
  0x1c   :  { %9230 = vmatpush3.bf16.msra.mxu1 %v9229_v13  ;;  %9222 = vmatprep.subr.bf16.mxu0 %v9751_v0  ;;  %v178_v24 = vld [vmem:[%s11407_s0 + $0x6] sm:$0xff]  ;;  %v444_v27 = vld [vmem:[#allocation4 + $0x70] sm:$0xff]  ;;  %v445_v28 = vld [vmem:[#allocation4 + $0x78] sm:$0xff]  ;;  %v9244_v29 = vpack.c.bf16 %v585_v23, %v584_v22  ;;  %p9730_p12 = pnand %p9729_p11, %p9723_p8 }
  0x1d   :  { %9231 = vmatprep.subr.bf16.mxu1 %v9751_v0  ;;  %v165_v26 = vld [vmem:[%s11407_s0 + $0x5] sm:$0xff]  ;;  %v179_v32 = vld [vmem:[%s11407_s0 + $0xe] sm:$0xff]  ;;  %v9238_v34 = vpack.c.bf16 %v445_v28, %v444_v27  ;;  %v589_v39 = vld [vmem:[#allocation4 + $0xb8] sm:$0xff] }
  0x1e   :  { %v586_v30 = vld [vmem:[#allocation4 + $0xa0] sm:$0xff]  ;;  %v587_v31 = vld [vmem:[#allocation4 + $0xa8] sm:$0xff]  ;;  %v588_v38 = vld [vmem:[#allocation4 + $0xb0] sm:$0xff] }
  0x1f   :  { %9224 = vmatpush3.bf16.msra.mxu0 %v9223_v18  ;;  %v166_v33 = vld [vmem:[%s11407_s0 + $0xd] sm:$0xff]  ;;  %v446_v35 = vld [vmem:[#allocation4 + $0x80] sm:$0xff]  ;;  %v9247_v37 = vpack.c.bf16 %v587_v31, %v586_v30  ;;  %v180_v40 = vld [vmem:[%s11407_s0 + $0x16] sm:$0xff]  ;;  %v9250_v43 = vpack.c.bf16 %v589_v39, %v588_v38 }
  0x20   :  { %9233 = vmatpush3.bf16.msra.mxu1 %v9232_v19  ;;  %9234 = vmatprep.subr.bf16.mxu0 %v9751_v0  ;;  %v447_v36 = vld [vmem:[#allocation4 + $0x88] sm:$0xff]  ;;  %v167_v41 = vld [vmem:[%s11407_s0 + $0x15] sm:$0xff]  ;;  %v181_v44 = vld [vmem:[%s11407_s0 + $0x1e] sm:$0xff] }
  0x21   :  { %9243 = vmatprep.subr.bf16.mxu1 %v9751_v0  ;;  %v9241_v42 = vpack.c.bf16 %v447_v36, %v446_v35  ;;  %v168_v45 = vld [vmem:[%s11407_s0 + $0x1d] sm:$0xff]  ;;  %v182_v46 = vld [vmem:[%s11407_s0 + $0x26] sm:$0xff]  ;;  %v183_v48 = vld [vmem:[%s11407_s0 + $0x2e] sm:$0xff] }
  0x22   :  { %7804 = vmatmul.mubr.msk.f32.vlgmr.msra.gmra.mrb[0].mxu0 %vm35_vm0, %v178_v24  ;;  %v169_v47 = vld [vmem:[%s11407_s0 + $0x25] sm:$0xff]  ;;  %v170_v49 = vld [vmem:[%s11407_s0 + $0x2d] sm:$0xff]  ;;  %v184_v50 = vld [vmem:[%s11407_s0 + $0x36] sm:$0x3] }
  0x23   :  { %7837 = vmatmul.mubr.msk.f32.vlgmr.msra.gmra.mrb[0].mxu1 %vm35_vm0, %v165_v26  ;;  %9236 = vmatpush3.bf16.msra.mxu0 %v9235_v25  ;;  %v171_v51 = vld [vmem:[%s11407_s0 + $0x35] sm:$0x3]  ;;  %v726_v52 = vld [vmem:[#allocation4 + $0xc0] sm:$0xff]  ;;  %v727_v53 = vld [vmem:[#allocation4 + $0xc8] sm:$0xff] }
  0x24   :  { %7806 = vmatprep.mubr.msk.f32.mxu0 %vm9753_vm1, %v9752_v1  ;;  %7839 = vmatprep.mubr.msk.f32.mxu1 %vm9753_vm1, %v9752_v1  ;;  %v868_v54 = vld [vmem:[#allocation4 + $0xf0] sm:$0xff]  ;;  %v869_v55 = vld [vmem:[#allocation4 + $0xf8] sm:$0xff]  ;;  %v434_v56 = vld [vmem:[%s11407_s0 + $0x7] sm:$0xff]  ;;  %v9253_v57 = vpack.c.bf16 %v727_v53, %v726_v52 }
  0x25   :  { %9237 = vmatprep.subr.bf16.mxu0 %v9751_v0  ;;  %9245 = vmatpush3.bf16.msra.mxu1 %v9244_v29  ;;  %v576_v58 = vld [vmem:[%s11407_s0 + $0x8] sm:$0xff]  ;;  %v728_v59 = vld [vmem:[#allocation4 + $0xd0] sm:$0xff]  ;;  %v729_v60 = vld [vmem:[#allocation4 + $0xd8] sm:$0xff]  ;;  %v9262_v61 = vpack.c.bf16 %v869_v55, %v868_v54 }
  0x26   :  { %7807 = vmatmul.mubr.msk.f32.gmra.mrb[2].mxu0 %vm35_vm0, %v179_v32  ;;  %9246 = vmatprep.subr.bf16.mxu1 %v9751_v0  ;;  %v870_v62 = vld [vmem:[#allocation4 + $0x100] sm:$0xff]  ;;  %v871_v63 = vld [vmem:[#allocation4 + $0x108] sm:$0xff]  ;;  %v577_v3 = vld [vmem:[%s11407_s0 + $0x10] sm:$0xff]  ;;  %v9256_v4 = vpack.c.bf16 %v729_v60, %v728_v59 }
  0x27   :  { %7840 = vmatmul.mubr.msk.f32.gmra.mrb[2].mxu1 %vm35_vm0, %v166_v33  ;;  %7809 = vmatprep.mubr.msk.f32.mxu0 %vm9753_vm1, %v9752_v1  ;;  %v435_v2 = vld [vmem:[%s11407_s0 + $0xf] sm:$0xff]  ;;  %v730_v5 = vld [vmem:[#allocation4 + $0xe0] sm:$0xff]  ;;  %v9265_v7 = vpack.c.bf16 %v871_v63, %v870_v62  ;;  %v873_v9 = vld [vmem:[#allocation4 + $0x118] sm:$0xff] }
  0x28   :  { %7842 = vmatprep.mubr.msk.f32.mxu1 %vm9753_vm1, %v9752_v1  ;;  %9239 = vmatpush3.bf16.msra.mxu0 %v9238_v34  ;;  %v731_v6 = vld [vmem:[#allocation4 + $0xe8] sm:$0xff]  ;;  %v872_v8 = vld [vmem:[#allocation4 + $0x110] sm:$0xff]  ;;  %v578_v11 = vld [vmem:[%s11407_s0 + $0x18] sm:$0xff] }
  0x29   :  { %9240 = vmatprep.subr.bf16.mxu0 %v9751_v0  ;;  %9248 = vmatpush3.bf16.msra.mxu1 %v9247_v37  ;;  %v436_v10 = vld [vmem:[%s11407_s0 + $0x17] sm:$0xff]  ;;  %v9259_v12 = vpack.c.bf16 %v731_v6, %v730_v5  ;;  %v9268_v13 = vpack.c.bf16 %v873_v9, %v872_v8  ;;  %v437_v14 = vld [vmem:[%s11407_s0 + $0x1f] sm:$0xff]  ;;  %v438_v16 = vld [vmem:[%s11407_s0 + $0x27] sm:$0xff] }
  0x2a   :  { %7810 = vmatmul.mubr.msk.f32.gmra.mrb[4].mxu0 %vm35_vm0, %v180_v40  ;;  %9249 = vmatprep.subr.bf16.mxu1 %v9751_v0  ;;  %v579_v15 = vld [vmem:[%s11407_s0 + $0x20] sm:$0xff]  ;;  %v580_v17 = vld [vmem:[%s11407_s0 + $0x28] sm:$0xff]  ;;  %v581_v19 = vld [vmem:[%s11407_s0 + $0x30] sm:$0xff] }
  0x2b   :  { %7843 = vmatmul.mubr.msk.f32.gmra.mrb[4].mxu1 %vm35_vm0, %v167_v41  ;;  %7812 = vmatprep.mubr.msk.f32.mxu0 %vm9753_vm1, %v9752_v1  ;;  %v439_v18 = vld [vmem:[%s11407_s0 + $0x2f] sm:$0xff]  ;;  %v440_v20 = vld [vmem:[%s11407_s0 + $0x37] sm:$0x3]  ;;  %v1010_v22 = vld [vmem:[#allocation4 + $0x120] sm:$0xff] }
  0x2c   :  { %7845 = vmatprep.mubr.msk.f32.mxu1 %vm9753_vm1, %v9752_v1  ;;  %9242 = vmatpush3.bf16.msra.mxu0 %v9241_v42  ;;  %v582_v21 = vld [vmem:[%s11407_s0 + $0x38] sm:$0x3]  ;;  %v1011_v23 = vld [vmem:[#allocation4 + $0x128] sm:$0xff]  ;;  %v1012_v27 = vld [vmem:[#allocation4 + $0x130] sm:$0xff] }
  0x2d   :  { %9251 = vmatpush3.bf16.msra.mxu1 %v9250_v43  ;;  %9252 = vmatprep.subr.bf16.mxu0 %v9751_v0  ;;  %v718_v24 = vld [vmem:[%s11407_s0 + $0x9] sm:$0xff]  ;;  %v9271_v25 = vpack.c.bf16 %v1011_v23, %v1010_v22  ;;  %v1013_v28 = vld [vmem:[#allocation4 + $0x138] sm:$0xff]  ;;  %v1014_v32 = vld [vmem:[#allocation4 + $0x140] sm:$0xff] }
  0x2e   :  { %7813 = vmatmul.mubr.msk.f32.gmra.mrb[6].mxu0 %vm35_vm0, %v181_v44  ;;  %9261 = vmatprep.subr.bf16.mxu1 %v9751_v0  ;;  %v860_v26 = vld [vmem:[%s11407_s0 + $0xa] sm:$0xff]  ;;  %v861_v30 = vld [vmem:[%s11407_s0 + $0x12] sm:$0xff]  ;;  %v9274_v31 = vpack.c.bf16 %v1013_v28, %v1012_v27  ;;  %v862_v35 = vld [vmem:[%s11407_s0 + $0x1a] sm:$0xff] }
  0x2f   :  { %7846 = vmatmul.mubr.msk.f32.gmra.mrb[6].mxu1 %vm35_vm0, %v168_v45  ;;  %7815 = vmatprep.mubr.msk.f32.mxu0 %vm9753_vm1, %v9752_v1  ;;  %v719_v29 = vld [vmem:[%s11407_s0 + $0x11] sm:$0xff]  ;;  %v1015_v33 = vld [vmem:[#allocation4 + $0x148] sm:$0xff]  ;;  %v720_v34 = vld [vmem:[%s11407_s0 + $0x19] sm:$0xff] }
  0x30   :  { %7848 = vmatprep.mubr.msk.f32.mxu1 %vm9753_vm1, %v9752_v1  ;;  %v9277_v36 = vpack.c.bf16 %v1015_v33, %v1014_v32  ;;  %v721_v37 = vld [vmem:[%s11407_s0 + $0x21] sm:$0xff]  ;;  %v722_v39 = vld [vmem:[%s11407_s0 + $0x29] sm:$0xff]  ;;  %v723_v41 = vld [vmem:[%s11407_s0 + $0x31] sm:$0xff] }
  0x31   :  { %v863_v38 = vld [vmem:[%s11407_s0 + $0x22] sm:$0xff]  ;;  %v864_v40 = vld [vmem:[%s11407_s0 + $0x2a] sm:$0xff]  ;;  %v865_v42 = vld [vmem:[%s11407_s0 + $0x32] sm:$0xff] }
  0x32   :  { %7816 = vmatmul.mubr.msk.f32.gmra.mrb[8].mxu0 %vm35_vm0, %v182_v46  ;;  %v724_v43 = vld [vmem:[%s11407_s0 + $0x39] sm:$0x3]  ;;  %v1002_v45 = vld [vmem:[%s11407_s0 + $0xb] sm:$0xff]  ;;  %v1202_v52 = vld [vmem:[#allocation4 + $0x180] sm:$0xff] }
  0x33   :  { %7849 = vmatmul.mubr.msk.f32.gmra.mrb[8].mxu1 %vm35_vm0, %v169_v47  ;;  %7818 = vmatprep.mubr.msk.f32.mxu0 %vm9753_vm1, %v9752_v1  ;;  %v866_v44 = vld [vmem:[%s11407_s0 + $0x3a] sm:$0x3]  ;;  %v1203_v53 = vld [vmem:[#allocation4 + $0x188] sm:$0xff]  ;;  %v1188_v55 = vld [vmem:[#allocation4 + $0x150] sm:$0xff] }
  0x34   :  { %7851 = vmatprep.mubr.msk.f32.mxu1 %vm9753_vm1, %v9752_v1  ;;  %v1003_v46 = vld [vmem:[%s11407_s0 + $0x13] sm:$0xff]  ;;  %v1004_v47 = vld [vmem:[%s11407_s0 + $0x1b] sm:$0xff]  ;;  %v9280_v54 = vpack.c.bf16 %v1203_v53, %v1202_v52  ;;  %v1191_v62 = vld [vmem:[#allocation4 + $0x168] sm:$0xff] }
  0x35   :  { %v1205_v59 = vld [vmem:[#allocation4 + $0x198] sm:$0xff]  ;;  %v1190_v60 = vld [vmem:[#allocation4 + $0x160] sm:$0xff] }
  0x36   :  { %7819 = vmatmul.mubr.msk.f32.gmra.mrb[10].mxu0 %vm35_vm0, %v183_v48  ;;  %v1005_v48 = vld [vmem:[%s11407_s0 + $0x23] sm:$0xff]  ;;  %v9292_v63 = vpack.c.bf16 %v1191_v62, %v1190_v60  ;;  %v1193_v6 = vld [vmem:[#allocation4 + $0x178] sm:$0xff] }
  0x37   :  { %7852 = vmatmul.mubr.msk.f32.gmra.mrb[10].mxu1 %vm35_vm0, %v170_v49  ;;  %7821 = vmatprep.mubr.msk.f32.mxu0 %vm9753_vm1, %v9752_v1  ;;  %v1006_v49 = vld [vmem:[%s11407_s0 + $0x2b] sm:$0xff] }
  0x38   :  { %7854 = vmatprep.mubr.msk.f32.mxu1 %vm9753_vm1, %v9752_v1 }
  0x3a   :  { %7822 = vmatmul.mubr.msk.f32.gmra.mrb[12].mxu0 %vm35_vm0, %v184_v50  ;;  %v1007_v50 = vld [vmem:[%s11407_s0 + $0x33] sm:$0xff] }
  0x3b   :  { %7855 = vmatmul.mubr.msk.f32.gmra.mrb[12].mxu1 %vm35_vm0, %v171_v51  ;;  %7869 = vmatprep.mubr.msk.f32.mxu0 %vm9753_vm1, %v9752_v1  ;;  %v1008_v51 = vld [vmem:[%s11407_s0 + $0x3b] sm:$0x3] }
  0x3c   :  { %7902 = vmatprep.mubr.msk.f32.mxu1 %vm9753_vm1, %v9752_v1 }
  0x3e   :  { %7870 = vmatmul.mubr.msk.f32.vlgmr.msra.gmra.mrb[14].mxu0 %vm35_vm0, %v434_v56  ;;  %v1189_v56 = vld [vmem:[#allocation4 + $0x158] sm:$0xff] }
  0x3f   :  { %9254 = vmatpush3.bf16.msra.mxu0 %v9253_v57  ;;  %7903 = vmatmul.mubr.msk.f32.vlgmr.msra.gmra.mrb[14].mxu1 %vm35_vm0, %v576_v58  ;;  %v9289_v57 = vpack.c.bf16 %v1189_v56, %v1188_v55  ;;  %v1204_v58 = vld [vmem:[#allocation4 + $0x190] sm:$0xff] }
  0x40   :  { %7872 = vmatprep.mubr.msk.f32.mxu0 %vm9753_vm1, %v9752_v1  ;;  %7905 = vmatprep.mubr.msk.f32.mxu1 %vm9753_vm1, %v9752_v1 }
  0x41   :  { %9255 = vmatprep.subr.bf16.mxu0 %v9751_v0  ;;  %9263 = vmatpush3.bf16.msra.mxu1 %v9262_v61  ;;  %v9283_v61 = vpack.c.bf16 %v1205_v59, %v1204_v58 }
  0x42   :  { %7873 = vmatmul.mubr.msk.f32.gmra.mrb[16].mxu0 %vm35_vm0, %v435_v2  ;;  %9264 = vmatprep.subr.bf16.mxu1 %v9751_v0  ;;  %v1206_v2 = vld [vmem:[#allocation4 + $0x1a0] sm:$0xff] }
  0x43   :  { %7906 = vmatmul.mubr.msk.f32.gmra.mrb[16].mxu1 %vm35_vm0, %v577_v3  ;;  %7875 = vmatprep.mubr.msk.f32.mxu0 %vm9753_vm1, %v9752_v1  ;;  %v1207_v3 = vld [vmem:[#allocation4 + $0x1a8] sm:$0xff] }
  0x44   :  { %7908 = vmatprep.mubr.msk.f32.mxu1 %vm9753_vm1, %v9752_v1  ;;  %9257 = vmatpush3.bf16.msra.mxu0 %v9256_v4  ;;  %v1192_v4 = vld [vmem:[#allocation4 + $0x170] sm:$0xff]  ;;  %v9286_v5 = vpack.c.bf16 %v1207_v3, %v1206_v2 }
  0x45   :  { %9258 = vmatprep.subr.bf16.mxu0 %v9751_v0  ;;  %9266 = vmatpush3.bf16.msra.mxu1 %v9265_v7  ;;  %v9295_v7 = vpack.c.bf16 %v1193_v6, %v1192_v4 }
  0x46   :  { %7876 = vmatmul.mubr.msk.f32.gmra.mrb[18].mxu0 %vm35_vm0, %v436_v10  ;;  %9267 = vmatprep.subr.bf16.mxu1 %v9751_v0 }
  0x47   :  { %7909 = vmatmul.mubr.msk.f32.gmra.mrb[18].mxu1 %vm35_vm0, %v578_v11  ;;  %7878 = vmatprep.mubr.msk.f32.mxu0 %vm9753_vm1, %v9752_v1 }
  0x48   :  { %7911 = vmatprep.mubr.msk.f32.mxu1 %vm9753_vm1, %v9752_v1  ;;  %9260 = vmatpush3.bf16.msra.mxu0 %v9259_v12 }
  0x49   :  { %9269 = vmatpush3.bf16.msra.mxu1 %v9268_v13  ;;  %9270 = vmatprep.subr.bf16.mxu0 %v9751_v0 }
  0x4a   :  { %7879 = vmatmul.mubr.msk.f32.gmra.mrb[20].mxu0 %vm35_vm0, %v437_v14  ;;  %9279 = vmatprep.subr.bf16.mxu1 %v9751_v0 }
  0x4b   :  { %7912 = vmatmul.mubr.msk.f32.gmra.mrb[20].mxu1 %vm35_vm0, %v579_v15  ;;  %7881 = vmatprep.mubr.msk.f32.mxu0 %vm9753_vm1, %v9752_v1 }
  0x4c   :  { %7914 = vmatprep.mubr.msk.f32.mxu1 %vm9753_vm1, %v9752_v1 }
  0x4e   :  { %7882 = vmatmul.mubr.msk.f32.gmra.mrb[22].mxu0 %vm35_vm0, %v438_v16 }
  0x4f   :  { %7915 = vmatmul.mubr.msk.f32.gmra.mrb[22].mxu1 %vm35_vm0, %v580_v17  ;;  %7884 = vmatprep.mubr.msk.f32.mxu0 %vm9753_vm1, %v9752_v1 }
  0x50   :  { %7917 = vmatprep.mubr.msk.f32.mxu1 %vm9753_vm1, %v9752_v1 }
  0x52   :  { %7885 = vmatmul.mubr.msk.f32.gmra.mrb[24].mxu0 %vm35_vm0, %v439_v18 }
  0x53   :  { %7918 = vmatmul.mubr.msk.f32.gmra.mrb[24].mxu1 %vm35_vm0, %v581_v19  ;;  %7887 = vmatprep.mubr.msk.f32.mxu0 %vm9753_vm1, %v9752_v1 }
  0x54   :  { %7920 = vmatprep.mubr.msk.f32.mxu1 %vm9753_vm1, %v9752_v1 }
  0x56   :  { %7888 = vmatmul.mubr.msk.f32.gmra.mrb[26].mxu0 %vm35_vm0, %v440_v20 }
  0x57   :  { %7921 = vmatmul.mubr.msk.f32.gmra.mrb[26].mxu1 %vm35_vm0, %v582_v21  ;;  %7935 = vmatprep.mubr.msk.f32.mxu0 %vm9753_vm1, %v9752_v1 }
  0x58   :  { %7968 = vmatprep.mubr.msk.f32.mxu1 %vm9753_vm1, %v9752_v1 }
  0x5a   :  { %7936 = vmatmul.mubr.msk.f32.vlgmr.msra.gmra.mrb[28].mxu0 %vm35_vm0, %v718_v24 }
  0x5b   :  { %9272 = vmatpush3.bf16.msra.mxu0 %v9271_v25  ;;  %7969 = vmatmul.mubr.msk.f32.vlgmr.msra.gmra.mrb[28].mxu1 %vm35_vm0, %v860_v26 }
  0x5c   :  { %7938 = vmatprep.mubr.msk.f32.mxu0 %vm9753_vm1, %v9752_v1  ;;  %7971 = vmatprep.mubr.msk.f32.mxu1 %vm9753_vm1, %v9752_v1 }
  0x5d   :  { %9273 = vmatprep.subr.bf16.mxu0 %v9751_v0  ;;  %9281 = vmatpush3.bf16.msra.mxu1 %v9280_v54 }
  0x5e   :  { %7939 = vmatmul.mubr.msk.f32.gmra.mrb[30].mxu0 %vm35_vm0, %v719_v29  ;;  %9282 = vmatprep.subr.bf16.mxu1 %v9751_v0 }
  0x5f   :  { %7972 = vmatmul.mubr.msk.f32.gmra.mrb[30].mxu1 %vm35_vm0, %v861_v30  ;;  %7941 = vmatprep.mubr.msk.f32.mxu0 %vm9753_vm1, %v9752_v1 }
  0x60   :  { %7974 = vmatprep.mubr.msk.f32.mxu1 %vm9753_vm1, %v9752_v1  ;;  %9275 = vmatpush3.bf16.msra.mxu0 %v9274_v31 }
  0x61   :  { %9276 = vmatprep.subr.bf16.mxu0 %v9751_v0  ;;  %9284 = vmatpush3.bf16.msra.mxu1 %v9283_v61 }
  0x62   :  { %7942 = vmatmul.mubr.msk.f32.gmra.mrb[32].mxu0 %vm35_vm0, %v720_v34  ;;  %9285 = vmatprep.subr.bf16.mxu1 %v9751_v0 }
  0x63   :  { %7975 = vmatmul.mubr.msk.f32.gmra.mrb[32].mxu1 %vm35_vm0, %v862_v35  ;;  %7944 = vmatprep.mubr.msk.f32.mxu0 %vm9753_vm1, %v9752_v1 }
  0x64   :  { %7977 = vmatprep.mubr.msk.f32.mxu1 %vm9753_vm1, %v9752_v1  ;;  %9278 = vmatpush3.bf16.msra.mxu0 %v9277_v36 }
  0x65   :  { %9288 = vmatprep.subr.bf16.mxu0 %v9751_v0  ;;  %9287 = vmatpush3.bf16.msra.mxu1 %v9286_v5 }
  0x66   :  { %7945 = vmatmul.mubr.msk.f32.gmra.mrb[34].mxu0 %vm35_vm0, %v721_v37  ;;  %9297 = vmatprep.subr.bf16.mxu1 %v9751_v0 }
  0x67   :  { %7978 = vmatmul.mubr.msk.f32.gmra.mrb[34].mxu1 %vm35_vm0, %v863_v38  ;;  %7947 = vmatprep.mubr.msk.f32.mxu0 %vm9753_vm1, %v9752_v1 }
  0x68   :  { %7980 = vmatprep.mubr.msk.f32.mxu1 %vm9753_vm1, %v9752_v1 }
  0x6a   :  { %7948 = vmatmul.mubr.msk.f32.gmra.mrb[36].mxu0 %vm35_vm0, %v722_v39 }
  0x6b   :  { %7981 = vmatmul.mubr.msk.f32.gmra.mrb[36].mxu1 %vm35_vm0, %v864_v40  ;;  %7950 = vmatprep.mubr.msk.f32.mxu0 %vm9753_vm1, %v9752_v1 }
  0x6c   :  { %7983 = vmatprep.mubr.msk.f32.mxu1 %vm9753_vm1, %v9752_v1 }
  0x6e   :  { %7951 = vmatmul.mubr.msk.f32.gmra.mrb[38].mxu0 %vm35_vm0, %v723_v41 }
  0x6f   :  { %7984 = vmatmul.mubr.msk.f32.gmra.mrb[38].mxu1 %vm35_vm0, %v865_v42  ;;  %7953 = vmatprep.mubr.msk.f32.mxu0 %vm9753_vm1, %v9752_v1 }
  0x70   :  { %7986 = vmatprep.mubr.msk.f32.mxu1 %vm9753_vm1, %v9752_v1 }
  0x72   :  { %7954 = vmatmul.mubr.msk.f32.gmra.mrb[40].mxu0 %vm35_vm0, %v724_v43 }
  0x73   :  { %7987 = vmatmul.mubr.msk.f32.gmra.mrb[40].mxu1 %vm35_vm0, %v866_v44  ;;  %8001 = vmatprep.mubr.msk.f32.mxu0 %vm9753_vm1, %v9752_v1 }
  0x74   :  { %8034 = vmatprep.mubr.msk.f32.mxu1 %vm9753_vm1, %v9752_v1 }
  0x76   :  { %8002 = vmatmul.mubr.msk.f32.vlgmr.msra.gmra.mrb[42].mxu0 %vm35_vm0, %v1002_v45 }
  0x77   :  { %8004 = vmatprep.mubr.msk.f32.mxu0 %vm9753_vm1, %v9752_v1  ;;  %9290 = vmatpush3.bf16.msra.mxu0 %v9289_v57 }
  0x78   :  { %9291 = vmatprep.subr.bf16.mxu0 %v9751_v0 }
  0x7a   :  { %8005 = vmatmul.mubr.msk.f32.gmra.mrb[44].mxu0 %vm35_vm0, %v1003_v46 }
  0x7b   :  { %8007 = vmatprep.mubr.msk.f32.mxu0 %vm9753_vm1, %v9752_v1  ;;  %9293 = vmatpush3.bf16.msra.mxu0 %v9292_v63 }
  0x7c   :  { %9294 = vmatprep.subr.bf16.mxu0 %v9751_v0 }
  0x7e   :  { %8008 = vmatmul.mubr.msk.f32.gmra.mrb[46].mxu0 %vm35_vm0, %v1004_v47 }
  0x7f   :  { %8010 = vmatprep.mubr.msk.f32.mxu0 %vm9753_vm1, %v9752_v1  ;;  %9296 = vmatpush3.bf16.msra.mxu0 %v9295_v7 }
  0x80   :  { %9306 = vmatprep.subr.bf16.mxu0 %v9751_v0 }
  0x82   :  { %8011 = vmatmul.mubr.msk.f32.gmra.mrb[48].mxu0 %vm35_vm0, %v1005_v48 }
  0x83   :  { %8013 = vmatprep.mubr.msk.f32.mxu0 %vm9753_vm1, %v9752_v1 }
  0x86   :  { %8014 = vmatmul.mubr.msk.f32.gmra.mrb[50].mxu0 %vm35_vm0, %v1006_v49 }
  0x87   :  { %8016 = vmatprep.mubr.msk.f32.mxu0 %vm9753_vm1, %v9752_v1 }
  0x8a   :  { %8017 = vmatmul.mubr.msk.f32.gmra.mrb[52].mxu0 %vm35_vm0, %v1007_v50 }
  0x8b   :  { %8019 = vmatprep.mubr.msk.f32.mxu0 %vm9753_vm1, %v9752_v1 }
  0x8e   :  { %8020 = vmatmul.mubr.msk.f32.gmra.mrb[54].mxu0 %vm35_vm0, %v1008_v51 }
  0x8f   :  { %8067 = vmatprep.mubr.msk.f32.mxu0 %vm9753_vm1, %v9752_v1 }
  0xf5   :  { %v279_v8 = vpop.f32.mrb[0].mxu0 }
  0xf6   :  { %v7805_v9 = vpop.f32.mrb[1].mxu0  ;;  %v400_v10 = vpop.f32.mrb[0].mxu1 }
  0xf7   :  { %v7838_v11 = vpop.f32.mrb[1].mxu1  ;;  %v401_v12 = vadd.f32 %v400_v10, %v279_v8 }
  0xf9   :  { %v284_v13 = vpop.f32.mrb[2].mxu0 }
  0xfa   :  { %v7808_v14 = vpop.f32.mrb[3].mxu0  ;;  %v405_v15 = vpop.f32.mrb[2].mxu1 }
  0xfb   :  { %v406_v16 = vadd.f32 %v405_v15, %v284_v13  ;;  %v7841_v17 = vpop.f32.mrb[3].mxu1 }
  0xfd   :  { %v289_v18 = vpop.f32.mrb[4].mxu0 }
  0xfe   :  { %v7811_v19 = vpop.f32.mrb[5].mxu0  ;;  %v410_v20 = vpop.f32.mrb[4].mxu1 }
  0xff   :  { %v411_v21 = vadd.f32 %v410_v20, %v289_v18  ;;  %v7844_v22 = vpop.f32.mrb[5].mxu1 }
 0x101   :  { %v294_v23 = vpop.f32.mrb[6].mxu0 }
 0x102   :  { %v7814_v24 = vpop.f32.mrb[7].mxu0  ;;  %v415_v25 = vpop.f32.mrb[6].mxu1 }
 0x103   :  { %v416_v26 = vadd.f32 %v415_v25, %v294_v23  ;;  %v7847_v27 = vpop.f32.mrb[7].mxu1 }
 0x105   :  { %v299_v28 = vpop.f32.mrb[8].mxu0 }
 0x106   :  { %v7817_v29 = vpop.f32.mrb[9].mxu0  ;;  %v420_v30 = vpop.f32.mrb[8].mxu1 }
 0x107   :  { %v421_v31 = vadd.f32 %v420_v30, %v299_v28  ;;  %v7850_v32 = vpop.f32.mrb[9].mxu1 }
 0x109   :  { %v304_v33 = vpop.f32.mrb[10].mxu0 }
 0x10a   :  { %v7820_v34 = vpop.f32.mrb[11].mxu0  ;;  %v425_v35 = vpop.f32.mrb[10].mxu1 }
 0x10b   :  { %v426_v36 = vadd.f32 %v425_v35, %v304_v33  ;;  %v7853_v37 = vpop.f32.mrb[11].mxu1 }
 0x10d   :  { %v309_v38 = vpop.f32.mrb[12].mxu0 }
 0x10e   :  { %v7823_v39 = vpop.f32.mrb[13].mxu0  ;;  %v430_v40 = vpop.f32.mrb[12].mxu1 }
 0x10f   :  { %v431_v41 = vadd.f32 %v430_v40, %v309_v38  ;;  %v7856_v42 = vpop.f32.mrb[13].mxu1 }
 0x111   :  { %v535_v43 = vpop.f32.mrb[14].mxu0 }
 0x112   :  { %v569_v44 = vadd.f32 %v535_v43, %v401_v12  ;;  %v7871_v45 = vpop.f32.mrb[15].mxu0  ;;  %v677_v46 = vpop.f32.mrb[14].mxu1 }
 0x113   :  { %v7904_v47 = vpop.f32.mrb[15].mxu1 }
 0x114   :  { %v711_v48 = vadd.f32 %v677_v46, %v569_v44 }
 0x115   :  { %v540_v49 = vpop.f32.mrb[16].mxu0 }
 0x116   :  { %v570_v50 = vadd.f32 %v540_v49, %v406_v16  ;;  %v7874_v51 = vpop.f32.mrb[17].mxu0  ;;  %v682_v52 = vpop.f32.mrb[16].mxu1 }
 0x117   :  { %v7907_v53 = vpop.f32.mrb[17].mxu1 }
 0x118   :  { %v712_v54 = vadd.f32 %v682_v52, %v570_v50 }
 0x119   :  { %v545_v55 = vpop.f32.mrb[18].mxu0 }
 0x11a   :  { %v571_v56 = vadd.f32 %v545_v55, %v411_v21  ;;  %v7877_v57 = vpop.f32.mrb[19].mxu0  ;;  %v687_v58 = vpop.f32.mrb[18].mxu1 }
 0x11b   :  { %v7910_v59 = vpop.f32.mrb[19].mxu1  ;;  %v52_v57 = vlaneseq }
 0x11c   :  { %v713_v60 = vadd.f32 %v687_v58, %v571_v56 }
 0x11d   :  { %v550_v61 = vpop.f32.mrb[20].mxu0 }
 0x11e   :  { %v572_v62 = vadd.f32 %v550_v61, %v416_v26  ;;  %v7880_v63 = vpop.f32.mrb[21].mxu0  ;;  %v692_v2 = vpop.f32.mrb[20].mxu1 }
 0x11f   :  { %v7913_v3 = vpop.f32.mrb[21].mxu1 }
 0x120   :  { %v714_v4 = vadd.f32 %v692_v2, %v572_v62  ;;  %v53_v2 = vshrl.u32 %v52_v57, 7 }
 0x121   :  { %v555_v5 = vpop.f32.mrb[22].mxu0 }
 0x122   :  { %v573_v6 = vadd.f32 %v555_v5, %v421_v31  ;;  %v7883_v7 = vpop.f32.mrb[23].mxu0  ;;  %v697_v8 = vpop.f32.mrb[22].mxu1 }
 0x123   :  { %v7916_v9 = vpop.f32.mrb[23].mxu1 }
 0x124   :  { %v715_v10 = vadd.f32 %v697_v8, %v573_v6  ;;  %v10163_v6 = vld [vmem:[%s11409_s2] ss:$0 sm:$0xff]  ;;  %v55_v9 = vadd.s32 16, %v53_v2 }
 0x125   :  { %v560_v11 = vpop.f32.mrb[24].mxu0 }
 0x126   :  { %v574_v12 = vadd.f32 %v560_v11, %v426_v36  ;;  %v7886_v13 = vpop.f32.mrb[25].mxu0  ;;  %v702_v14 = vpop.f32.mrb[24].mxu1 }
 0x127   :  { %v7919_v15 = vpop.f32.mrb[25].mxu1 }
 0x128   :  { %v716_v16 = vadd.f32 %v702_v14, %v574_v12  ;;  %v78_v15 = vand.u32 31, %v55_v9 }
 0x129   :  { %v565_v17 = vpop.f32.mrb[26].mxu0 }
 0x12a   :  { %v575_v18 = vadd.f32 %v565_v17, %v431_v41  ;;  %v7889_v19 = vpop.f32.mrb[27].mxu0  ;;  %v707_v20 = vpop.f32.mrb[26].mxu1  ;;  %vm146_vm2 = vcmp.lt.s32.totalorder %v78_v15, 18 }
 0x12b   :  { %v7922_v21 = vpop.f32.mrb[27].mxu1 }
 0x12c   :  { %v717_v22 = vadd.f32 %v707_v20, %v575_v18  ;;  %v1458_v21 = vld [vmem:[#allocation4 + $0x1b0] sm:$0xff] }
 0x12d   :  { %v819_v23 = vpop.f32.mrb[28].mxu0 }
 0x12e   :  { %v853_v24 = vadd.f32 %v819_v23, %v711_v48  ;;  %v7937_v25 = vpop.f32.mrb[29].mxu0  ;;  %v961_v26 = vpop.f32.mrb[28].mxu1  ;;  %v1600_v23 = vld [vmem:[#allocation4 + $0x1e0] sm:$0xff] }
 0x12f   :  { %v7970_v27 = vpop.f32.mrb[29].mxu1 }
 0x130   :  { %v995_v28 = vadd.f32 %v961_v26, %v853_v24  ;;  %v1601_v24 = vld [vmem:[#allocation4 + $0x1e8] sm:$0xff]  ;;  %v10171_v26 = vsel %vm146_vm2, 1.0, %v9752_v1 }
 0x131   :  { %v824_v29 = vpop.f32.mrb[30].mxu0 }
 0x132   :  { %v854_v30 = vadd.f32 %v824_v29, %v712_v54  ;;  %v7940_v31 = vpop.f32.mrb[31].mxu0  ;;  %v966_v32 = vpop.f32.mrb[30].mxu1 }
 0x133   :  { %v7973_v33 = vpop.f32.mrb[31].mxu1 }
 0x134   :  { %v996_v34 = vadd.f32 %v966_v32, %v854_v30  ;;  %v1460_v32 = vld [vmem:[#allocation4 + $0x1c0] sm:$0xff]  ;;  %v1461_v33 = vld [vmem:[#allocation4 + $0x1c8] sm:$0xff] }
 0x135   :  { %v829_v35 = vpop.f32.mrb[32].mxu0 }
 0x136   :  { %v855_v36 = vadd.f32 %v829_v35, %v713_v60  ;;  %v7943_v37 = vpop.f32.mrb[33].mxu0  ;;  %v971_v38 = vpop.f32.mrb[32].mxu1  ;;  %v1602_v35 = vld [vmem:[#allocation4 + $0x1f0] sm:$0xff] }
 0x137   :  { %v7976_v39 = vpop.f32.mrb[33].mxu1 }
 0x138   :  { %v997_v40 = vadd.f32 %v971_v38, %v855_v36  ;;  %v1603_v38 = vld [vmem:[#allocation4 + $0x1f8] sm:$0xff] }
 0x139   :  { %v834_v41 = vpop.f32.mrb[34].mxu0 }
 0x13a   :  { %v856_v42 = vadd.f32 %v834_v41, %v714_v4  ;;  %v7946_v43 = vpop.f32.mrb[35].mxu0  ;;  %v976_v44 = vpop.f32.mrb[34].mxu1 }
 0x13b   :  { %v7979_v45 = vpop.f32.mrb[35].mxu1 }
 0x13c   :  { %v998_v46 = vadd.f32 %v976_v44, %v856_v42  ;;  %v59_v42 = vadd.s32 48, %v53_v2 }
 0x13d   :  { %v839_v47 = vpop.f32.mrb[36].mxu0 }
 0x13e   :  { %v857_v48 = vadd.f32 %v839_v47, %v715_v10  ;;  %v7949_v49 = vpop.f32.mrb[37].mxu0  ;;  %v981_v50 = vpop.f32.mrb[36].mxu1  ;;  %v9310_v47 = vpack.c.bf16 %v1603_v38, %v1602_v35 }
 0x13f   :  { %v7982_v51 = vpop.f32.mrb[37].mxu1 }
 0x140   :  { %v999_v52 = vadd.f32 %v981_v50, %v857_v48 }
 0x141   :  { %v844_v53 = vpop.f32.mrb[38].mxu0 }
 0x142   :  { %v858_v54 = vadd.f32 %v844_v53, %v716_v16  ;;  %v7952_v55 = vpop.f32.mrb[39].mxu0  ;;  %v986_v56 = vpop.f32.mrb[38].mxu1  ;;  %v1462_v53 = vld [vmem:[#allocation4 + $0x1d0] sm:$0xff] }
 0x143   :  { %v7985_v58 = vpop.f32.mrb[39].mxu1  ;;  %v1604_v55 = vld [vmem:[#allocation4 + $0x200] sm:$0xff] }
 0x144   :  { %v10156_v59 = vadd.f32 %v986_v56, %v858_v54  ;;  %v1463_v54 = vld [vmem:[#allocation4 + $0x1d8] sm:$0xff]  ;;  %v1605_v56 = vld [vmem:[#allocation4 + $0x208] sm:$0xff] }
 0x145   :  { %v849_v60 = vpop.f32.mrb[40].mxu0  ;;  %v9313_v2 = vpack.c.bf16 %v1605_v56, %v1604_v55  ;;  %v2028_v56 = vld [vmem:[#allocation4 + $0x280] sm:$0xff] }
 0x146   :  { %v859_v61 = vadd.f32 %v849_v60, %v717_v22  ;;  %v7955_v62 = vpop.f32.mrb[41].mxu0  ;;  %v991_v63 = vpop.f32.mrb[40].mxu1  ;;  %v1459_v22 = vld [vmem:[#allocation4 + $0x1b8] sm:$0xff] }
 0x147   :  { %v7988_v3 = vpop.f32.mrb[41].mxu1  ;;  %v9298_v31 = vpack.c.bf16 %v1459_v22, %v1458_v21  ;;  %v1884_v22 = vld [vmem:[#allocation4 + $0x240] sm:$0xff] }
 0x148   :  { %v10158_v4 = vadd.f32 %v991_v63, %v859_v61  ;;  %v106_v61 = vand.u32 31, %v59_v42  ;;  %v9304_v63 = vpack.c.bf16 %v1463_v54, %v1462_v53  ;;  %v2027_v53 = vld [vmem:[#allocation4 + $0x278] sm:$0xff] }
 0x149   :  { %v1103_v5 = vpop.f32.mrb[42].mxu0 }
 0x14a   :  { %v1137_v7 = vadd.f32 %v1103_v5, %v995_v28  ;;  %v8003_v8 = vpop.f32.mrb[43].mxu0  ;;  %vm150_vm3 = vcmp.lt.s32.totalorder %v106_v61, 18 }
 0x14c   :  { %v1151_v10 = vadd.f32 %v10163_v6, %v1137_v7 }
 0x14d   :  { %v1108_v11 = vpop.f32.mrb[44].mxu0 }
 0x14e   :  { %v1158_v12 = vmax.f32 %v1151_v10, 0.0  ;;  %v1138_v13 = vadd.f32 %v1108_v11, %v996_v34  ;;  %v8006_v14 = vpop.f32.mrb[45].mxu0  ;;  %v9307_v34 = vpack.c.bf16 %v1601_v24, %v1600_v23  ;;  %v10207_v11 = vsel %vm150_vm3, 1.0, %v9752_v1  ;;  %v1885_v23 = vld [vmem:[#allocation4 + $0x248] sm:$0xff] }
 0x150   :  { %1172 = vst.msk [vmem:[#allocation2 + $0x8] sm:$0xff] %vm35_vm0, %v1158_v12  ;;  %v1152_v16 = vadd.f32 %v10163_v6, %v1138_v13 }
 0x151   :  { %v1113_v17 = vpop.f32.mrb[46].mxu0 }
 0x152   :  { %v1159_v18 = vmax.f32 %v1152_v16, 0.0  ;;  %v1139_v19 = vadd.f32 %v1113_v17, %v997_v40  ;;  %v8009_v20 = vpop.f32.mrb[47].mxu0 }
 0x154   :  { %1173 = vst.msk [vmem:[#allocation2 + $0x10] sm:$0xff] %vm35_vm0, %v1159_v18  ;;  %v1153_v25 = vadd.f32 %v10163_v6, %v1139_v19  ;;  %v1742_v18 = vld [vmem:[#allocation4 + $0x210] sm:$0xff]  ;;  %v1743_v19 = vld [vmem:[#allocation4 + $0x218] sm:$0xff] }
 0x155   :  { %v1118_v27 = vpop.f32.mrb[48].mxu0  ;;  %v9316_v24 = vpack.c.bf16 %v1743_v19, %v1742_v18 }
 0x156   :  { %v1160_v28 = vmax.f32 %v1153_v25, 0.0  ;;  %v1140_v29 = vadd.f32 %v1118_v27, %v998_v46  ;;  %v8012_v30 = vpop.f32.mrb[49].mxu0  ;;  %v9301_v46 = vpack.c.bf16 %v1461_v33, %v1460_v32  ;;  %v1744_v25 = vld [vmem:[#allocation4 + $0x220] sm:$0xff]  ;;  %v1887_v32 = vld [vmem:[#allocation4 + $0x258] sm:$0xff] }
 0x157   :  { %v1194_v36 = vld [vmem:[#allocation2 + $0x6] sm:$0xff]  ;;  %v9325_v30 = vpack.c.bf16 %v1885_v23, %v1884_v22  ;;  %v2218_v22 = vld [vmem:[#allocation4 + $0x2d0] sm:$0xff]  ;;  %v2219_v23 = vld [vmem:[#allocation4 + $0x2d8] sm:$0xff] }
 0x158   :  { %v1180_v37 = vld [vmem:[#allocation2 + $0x5] sm:$0xff]  ;;  %v1167_v39 = vmul.f32 %v10171_v26, %v1160_v28  ;;  %v1154_v40 = vadd.f32 %v10163_v6, %v1140_v29  ;;  %8035 = vmatmul.mubr.msk.f32.vlgmr.msra.gmra.mrb[42].mxu1 %vm35_vm0, %v1194_v36 }
 0x159   :  { %8068 = vmatmul.mubr.msk.f32.vlgmr.msra.gmra.mrb[56].mxu0 %vm35_vm0, %v1180_v37  ;;  %v1123_v41 = vpop.f32.mrb[50].mxu0  ;;  %8037 = vmatprep.mubr.msk.f32.mxu1 %vm9753_vm1, %v9752_v1  ;;  %v1450_v27 = vld [vmem:[#allocation2 + $0x7] sm:$0xff]  ;;  %v1747_v37 = vld [vmem:[#allocation4 + $0x238] sm:$0xff] }
 0x15a   :  { %8070 = vmatprep.mubr.msk.f32.mxu0 %vm9753_vm1, %v9752_v1  ;;  %1174 = vst.msk [vmem:[#allocation2 + $0x18] sm:$0xff] %vm35_vm0, %v1167_v39  ;;  %v1161_v43 = vmax.f32 %v1154_v40, 0.0  ;;  %v1141_v44 = vadd.f32 %v1123_v41, %v999_v52  ;;  %9299 = vmatpush3.bf16.msra.mxu1 %v9298_v31  ;;  %v8015_v45 = vpop.f32.mrb[51].mxu0  ;;  %v1592_v28 = vld [vmem:[#allocation2 + $0x8] sm:$0xff]  ;;  %v1886_v31 = vld [vmem:[#allocation4 + $0x250] sm:$0xff]  ;;  %v1888_v39 = vld [vmem:[#allocation4 + $0x260] sm:$0xff] }
 0x15b   :  { %9308 = vmatpush3.bf16.msra.mxu0 %v9307_v34  ;;  %v1195_v48 = vld [vmem:[#allocation2 + $0xe] sm:$0xff]  ;;  %9300 = vmatprep.subr.bf16.mxu1 %v9751_v0  ;;  %v9328_v38 = vpack.c.bf16 %v1887_v32, %v1886_v31 }
 0x15c   :  { %v1181_v49 = vld [vmem:[#allocation2 + $0xd] sm:$0xff]  ;;  %9309 = vmatprep.subr.bf16.mxu0 %v9751_v0  ;;  %v1168_v50 = vmul.f32 0.0, %v1161_v43  ;;  %v1155_v51 = vadd.f32 %v10163_v6, %v1141_v44  ;;  %8038 = vmatmul.mubr.msk.f32.gmra.mrb[44].mxu1 %vm35_vm0, %v1195_v48 }
 0x15d   :  { %8071 = vmatmul.mubr.msk.f32.gmra.mrb[58].mxu0 %vm35_vm0, %v1181_v49  ;;  %v1128_v52 = vpop.f32.mrb[52].mxu0  ;;  %8040 = vmatprep.mubr.msk.f32.mxu1 %vm9753_vm1, %v9752_v1  ;;  %v1745_v29 = vld [vmem:[#allocation4 + $0x228] sm:$0xff]  ;;  %v1746_v34 = vld [vmem:[#allocation4 + $0x230] sm:$0xff] }
 0x15e   :  { %8073 = vmatprep.mubr.msk.f32.mxu0 %vm9753_vm1, %v9752_v1  ;;  %1175 = vst.msk [vmem:[#allocation2 + $0x20] sm:$0xff] %vm35_vm0, %v1168_v50  ;;  %v1162_v57 = vmax.f32 %v1155_v51, 0.0  ;;  %v1142_v58 = vadd.f32 %v1128_v52, %v10156_v59  ;;  %v8018_v60 = vpop.f32.mrb[53].mxu0  ;;  %9302 = vmatpush3.bf16.msra.mxu1 %v9301_v46  ;;  %v9319_v33 = vpack.c.bf16 %v1745_v29, %v1744_v25  ;;  %v1451_v35 = vld [vmem:[#allocation2 + $0xf] sm:$0xff]  ;;  %v2204_v25 = vld [vmem:[#allocation4 + $0x2a0] sm:$0xff] }
 0x15f   :  { %9311 = vmatpush3.bf16.msra.mxu0 %v9310_v47  ;;  %9303 = vmatprep.subr.bf16.mxu1 %v9751_v0  ;;  %v1593_v36 = vld [vmem:[#allocation2 + $0x10] sm:$0xff]  ;;  %v1889_v40 = vld [vmem:[#allocation4 + $0x268] sm:$0xff]  ;;  %v9322_v41 = vpack.c.bf16 %v1747_v37, %v1746_v34  ;;  %v2220_v29 = vld [vmem:[#allocation4 + $0x2e0] sm:$0xff] }
 0x160   :  { %9312 = vmatprep.subr.bf16.mxu0 %v9751_v0  ;;  %1176 = vst.msk [vmem:[#allocation2 + $0x28] sm:$0xff] %vm35_vm0, %v1162_v57  ;;  %v1156_v62 = vadd.f32 %v10163_v6, %v1142_v58  ;;  %v9331_v44 = vpack.c.bf16 %v1889_v40, %v1888_v39  ;;  %v2026_v51 = vld [vmem:[#allocation4 + $0x270] sm:$0xff]  ;;  %v2029_v60 = vld [vmem:[#allocation4 + $0x288] sm:$0xff]  ;;  %v2208_v37 = vld [vmem:[#allocation4 + $0x2c0] sm:$0xff] }
 0x161   :  { %v1133_v3 = vpop.f32.mrb[54].mxu0  ;;  %v1196_v5 = vld [vmem:[#allocation2 + $0x16] sm:$0xff]  ;;  %v9334_v55 = vpack.c.bf16 %v2027_v53, %v2026_v51  ;;  %v1734_v57 = vld [vmem:[#allocation2 + $0x9] sm:$0xff]  ;;  %v9337_v61 = vpack.c.bf16 %v2029_v60, %v2028_v56 }
 0x162   :  { %v1182_v7 = vld [vmem:[#allocation2 + $0x15] sm:$0xff]  ;;  %v1163_v8 = vmax.f32 %v1156_v62, 0.0  ;;  %v1143_v59 = vadd.f32 %v1133_v3, %v10158_v4  ;;  %8041 = vmatmul.mubr.msk.f32.gmra.mrb[46].mxu1 %vm35_vm0, %v1196_v5  ;;  %v8021_v9 = vpop.f32.mrb[55].mxu0  ;;  %v1876_v58 = vld [vmem:[#allocation2 + $0xa] sm:$0xff] }
 0x163   :  { %8074 = vmatmul.mubr.msk.f32.gmra.mrb[60].mxu0 %vm35_vm0, %v1182_v7  ;;  %8043 = vmatprep.mubr.msk.f32.mxu1 %vm9753_vm1, %v9752_v1  ;;  %v1452_v42 = vld [vmem:[#allocation2 + $0x17] sm:$0xff]  ;;  %v2209_v39 = vld [vmem:[#allocation4 + $0x2c8] sm:$0xff] }
 0x164   :  { %8076 = vmatprep.mubr.msk.f32.mxu0 %vm9753_vm1, %v9752_v1  ;;  %1177 = vst.msk [vmem:[#allocation2 + $0x30] sm:$0xff] %vm35_vm0, %v1163_v8  ;;  %v1157_v10 = vadd.f32 %v10163_v6, %v1143_v59  ;;  %9305 = vmatpush3.bf16.msra.mxu1 %v9304_v63  ;;  %v1594_v43 = vld [vmem:[#allocation2 + $0x18] sm:$0xff]  ;;  %v2030_v62 = vld [vmem:[#allocation4 + $0x290] sm:$0xff]  ;;  %v9358_v40 = vpack.c.bf16 %v2209_v39, %v2208_v37 }
 0x165   :  { %9314 = vmatpush3.bf16.msra.mxu0 %v9313_v2  ;;  %v1197_v4 = vld [vmem:[#allocation2 + $0x1e] sm:$0xff]  ;;  %9315 = vmatprep.subr.bf16.mxu1 %v9751_v0  ;;  %v1735_v63 = vld [vmem:[#allocation2 + $0x11] sm:$0xff] }
 0x166   :  { %v1183_v12 = vld [vmem:[#allocation2 + $0x1d] sm:$0xff]  ;;  %9324 = vmatprep.subr.bf16.mxu0 %v9751_v0  ;;  %v1164_v13 = vmax.f32 %v1157_v10, 0.0  ;;  %8044 = vmatmul.mubr.msk.f32.gmra.mrb[48].mxu1 %vm35_vm0, %v1197_v4  ;;  %v1877_v2 = vld [vmem:[#allocation2 + $0x12] sm:$0xff] }
 0x167   :  { %8077 = vmatmul.mubr.msk.f32.gmra.mrb[62].mxu0 %vm35_vm0, %v1183_v12  ;;  %8046 = vmatprep.mubr.msk.f32.mxu1 %vm9753_vm1, %v9752_v1  ;;  %v1198_v14 = vld [vmem:[#allocation2 + $0x26] sm:$0xff]  ;;  %v2031_v3 = vld [vmem:[#allocation4 + $0x298] sm:$0xff]  ;;  %v2206_v32 = vld [vmem:[#allocation4 + $0x2b0] sm:$0xff] }
 0x168   :  { %8079 = vmatprep.mubr.msk.f32.mxu0 %vm9753_vm1, %v9752_v1  ;;  %v1171_v6 = vmul.f32 %v10207_v11, %v1164_v13  ;;  %v1184_v15 = vld [vmem:[#allocation2 + $0x25] sm:$0xff]  ;;  %v9340_v5 = vpack.c.bf16 %v2031_v3, %v2030_v62  ;;  %v1736_v7 = vld [vmem:[#allocation2 + $0x19] sm:$0xff] }
 0x169   :  { %v1453_v45 = vld [vmem:[#allocation2 + $0x1f] sm:$0xff]  ;;  %v1454_v47 = vld [vmem:[#allocation2 + $0x27] sm:$0xff] }
 0x16a   :  { %1179 = vst.msk [vmem:[#allocation2 + $0x38] sm:$0x3] %vm1178_vm4, %v1171_v6  ;;  %8047 = vmatmul.mubr.msk.f32.gmra.mrb[50].mxu1 %vm35_vm0, %v1198_v14  ;;  %v1595_v46 = vld [vmem:[#allocation2 + $0x20] sm:$0xff]  ;;  %v1596_v48 = vld [vmem:[#allocation2 + $0x28] sm:$0xff]  ;;  %v1882_v6 = vld [vmem:[#allocation2 + $0x3a] sm:$0x3] }
 0x16b   :  { %8080 = vmatmul.mubr.msk.f32.gmra.mrb[64].mxu0 %vm35_vm0, %v1184_v15  ;;  %8049 = vmatprep.mubr.msk.f32.mxu1 %vm9753_vm1, %v9752_v1  ;;  %v1199_v16 = vld [vmem:[#allocation2 + $0x2e] sm:$0xff]  ;;  %v1200_v20 = vld [vmem:[#allocation2 + $0x36] sm:$0x3]  ;;  %v1878_v8 = vld [vmem:[#allocation2 + $0x1a] sm:$0xff] }
 0x16c   :  { %8082 = vmatprep.mubr.msk.f32.mxu0 %vm9753_vm1, %v9752_v1  ;;  %v1185_v17 = vld [vmem:[#allocation2 + $0x2d] sm:$0xff]  ;;  %v1186_v21 = vld [vmem:[#allocation2 + $0x35] sm:$0x3]  ;;  %v1737_v59 = vld [vmem:[#allocation2 + $0x21] sm:$0xff] }
 0x16d   :  { %v1455_v49 = vld [vmem:[#allocation2 + $0x2f] sm:$0xff]  ;;  %v1879_v9 = vld [vmem:[#allocation2 + $0x22] sm:$0xff] }
 0x16e   :  { %8050 = vmatmul.mubr.msk.f32.gmra.mrb[52].mxu1 %vm35_vm0, %v1199_v16  ;;  %v1597_v50 = vld [vmem:[#allocation2 + $0x30] sm:$0xff]  ;;  %v2021_v18 = vld [vmem:[#allocation2 + $0x23] sm:$0xff] }
 0x16f   :  { %8083 = vmatmul.mubr.msk.f32.gmra.mrb[66].mxu0 %vm35_vm0, %v1185_v17  ;;  %8052 = vmatprep.mubr.msk.f32.mxu1 %vm9753_vm1, %v9752_v1  ;;  %v1738_v10 = vld [vmem:[#allocation2 + $0x29] sm:$0xff]  ;;  %v2019_v16 = vld [vmem:[#allocation2 + $0x13] sm:$0xff]  ;;  %v2020_v17 = vld [vmem:[#allocation2 + $0x1b] sm:$0xff] }
 0x170   :  { %8085 = vmatprep.mubr.msk.f32.mxu0 %vm9753_vm1, %v9752_v1  ;;  %v1880_v4 = vld [vmem:[#allocation2 + $0x2a] sm:$0xff] }
 0x171   :  { %v1456_v52 = vld [vmem:[#allocation2 + $0x37] sm:$0x3]  ;;  %v1740_v14 = vld [vmem:[#allocation2 + $0x39] sm:$0x3]  ;;  %v2018_v15 = vld [vmem:[#allocation2 + $0xb] sm:$0xff] }
 0x172   :  { %8053 = vmatmul.mubr.msk.f32.gmra.mrb[54].mxu1 %vm35_vm0, %v1200_v20  ;;  %v1598_v54 = vld [vmem:[#allocation2 + $0x38] sm:$0x3]  ;;  %v2022_v19 = vld [vmem:[#allocation2 + $0x2b] sm:$0xff] }
 0x173   :  { %8086 = vmatmul.mubr.msk.f32.gmra.mrb[68].mxu0 %vm35_vm0, %v1186_v21  ;;  %8100 = vmatprep.mubr.msk.f32.mxu1 %vm9753_vm1, %v9752_v1  ;;  %v1739_v12 = vld [vmem:[#allocation2 + $0x31] sm:$0xff]  ;;  %v2024_v21 = vld [vmem:[#allocation2 + $0x3b] sm:$0x3] }
 0x174   :  { %8133 = vmatprep.mubr.msk.f32.mxu0 %vm9753_vm1, %v9752_v1  ;;  %v1881_v13 = vld [vmem:[#allocation2 + $0x32] sm:$0xff] }
 0x175   :  { %v2023_v20 = vld [vmem:[#allocation2 + $0x33] sm:$0xff] }
 0x176   :  { %8101 = vmatmul.mubr.msk.f32.vlgmr.msra.gmra.mrb[56].mxu1 %vm35_vm0, %v1450_v27  ;;  %v2205_v27 = vld [vmem:[#allocation4 + $0x2a8] sm:$0xff] }
 0x177   :  { %8134 = vmatmul.mubr.msk.f32.vlgmr.msra.gmra.mrb[70].mxu0 %vm35_vm0, %v1592_v28  ;;  %9317 = vmatpush3.bf16.msra.mxu1 %v9316_v24  ;;  %v9343_v24 = vpack.c.bf16 %v2219_v23, %v2218_v22  ;;  %v9352_v28 = vpack.c.bf16 %v2205_v27, %v2204_v25 }
 0x178   :  { %8103 = vmatprep.mubr.msk.f32.mxu1 %vm9753_vm1, %v9752_v1  ;;  %8136 = vmatprep.mubr.msk.f32.mxu0 %vm9753_vm1, %v9752_v1 }
 0x179   :  { %9318 = vmatprep.subr.bf16.mxu1 %v9751_v0  ;;  %9326 = vmatpush3.bf16.msra.mxu0 %v9325_v30  ;;  %v2221_v30 = vld [vmem:[#allocation4 + $0x2e8] sm:$0xff] }
 0x17a   :  { %8104 = vmatmul.mubr.msk.f32.gmra.mrb[58].mxu1 %vm35_vm0, %v1451_v35  ;;  %9327 = vmatprep.subr.bf16.mxu0 %v9751_v0  ;;  %v9346_v31 = vpack.c.bf16 %v2221_v30, %v2220_v29  ;;  %v2222_v35 = vld [vmem:[#allocation4 + $0x2f0] sm:$0xff] }
 0x17b   :  { %8137 = vmatmul.mubr.msk.f32.gmra.mrb[72].mxu0 %vm35_vm0, %v1593_v36  ;;  %8106 = vmatprep.mubr.msk.f32.mxu1 %vm9753_vm1, %v9752_v1  ;;  %v2223_v36 = vld [vmem:[#allocation4 + $0x2f8] sm:$0xff] }
 0x17c   :  { %8139 = vmatprep.mubr.msk.f32.mxu0 %vm9753_vm1, %v9752_v1  ;;  %9320 = vmatpush3.bf16.msra.mxu1 %v9319_v33  ;;  %v2207_v33 = vld [vmem:[#allocation4 + $0x2b8] sm:$0xff] }
 0x17d   :  { %9321 = vmatprep.subr.bf16.mxu1 %v9751_v0  ;;  %9329 = vmatpush3.bf16.msra.mxu0 %v9328_v38  ;;  %v9355_v34 = vpack.c.bf16 %v2207_v33, %v2206_v32  ;;  %v9349_v38 = vpack.c.bf16 %v2223_v36, %v2222_v35 }
 0x17e   :  { %8107 = vmatmul.mubr.msk.f32.gmra.mrb[60].mxu1 %vm35_vm0, %v1452_v42  ;;  %9330 = vmatprep.subr.bf16.mxu0 %v9751_v0 }
 0x17f   :  { %8140 = vmatmul.mubr.msk.f32.gmra.mrb[74].mxu0 %vm35_vm0, %v1594_v43  ;;  %8109 = vmatprep.mubr.msk.f32.mxu1 %vm9753_vm1, %v9752_v1 }
 0x180   :  { %8142 = vmatprep.mubr.msk.f32.mxu0 %vm9753_vm1, %v9752_v1  ;;  %9323 = vmatpush3.bf16.msra.mxu1 %v9322_v41 }
 0x181   :  { %9332 = vmatpush3.bf16.msra.mxu0 %v9331_v44  ;;  %9333 = vmatprep.subr.bf16.mxu1 %v9751_v0 }
 0x182   :  { %8110 = vmatmul.mubr.msk.f32.gmra.mrb[62].mxu1 %vm35_vm0, %v1453_v45  ;;  %9342 = vmatprep.subr.bf16.mxu0 %v9751_v0 }
 0x183   :  { %8143 = vmatmul.mubr.msk.f32.gmra.mrb[76].mxu0 %vm35_vm0, %v1595_v46  ;;  %8112 = vmatprep.mubr.msk.f32.mxu1 %vm9753_vm1, %v9752_v1 }
 0x184   :  { %8145 = vmatprep.mubr.msk.f32.mxu0 %vm9753_vm1, %v9752_v1 }
 0x186   :  { %8113 = vmatmul.mubr.msk.f32.gmra.mrb[64].mxu1 %vm35_vm0, %v1454_v47 }
 0x187   :  { %8146 = vmatmul.mubr.msk.f32.gmra.mrb[78].mxu0 %vm35_vm0, %v1596_v48  ;;  %8115 = vmatprep.mubr.msk.f32.mxu1 %vm9753_vm1, %v9752_v1 }
 0x188   :  { %8148 = vmatprep.mubr.msk.f32.mxu0 %vm9753_vm1, %v9752_v1 }
 0x18a   :  { %8116 = vmatmul.mubr.msk.f32.gmra.mrb[66].mxu1 %vm35_vm0, %v1455_v49 }
 0x18b   :  { %8149 = vmatmul.mubr.msk.f32.gmra.mrb[80].mxu0 %vm35_vm0, %v1597_v50  ;;  %8118 = vmatprep.mubr.msk.f32.mxu1 %vm9753_vm1, %v9752_v1 }
 0x18c   :  { %8151 = vmatprep.mubr.msk.f32.mxu0 %vm9753_vm1, %v9752_v1 }
 0x18e   :  { %8119 = vmatmul.mubr.msk.f32.gmra.mrb[68].mxu1 %vm35_vm0, %v1456_v52 }
 0x18f   :  { %8152 = vmatmul.mubr.msk.f32.gmra.mrb[82].mxu0 %vm35_vm0, %v1598_v54  ;;  %8166 = vmatprep.mubr.msk.f32.mxu1 %vm9753_vm1, %v9752_v1 }
 0x190   :  { %8199 = vmatprep.mubr.msk.f32.mxu0 %vm9753_vm1, %v9752_v1 }
 0x192   :  { %8167 = vmatmul.mubr.msk.f32.vlgmr.msra.gmra.mrb[70].mxu1 %vm35_vm0, %v1734_v57 }
 0x193   :  { %8200 = vmatmul.mubr.msk.f32.vlgmr.msra.gmra.mrb[84].mxu0 %vm35_vm0, %v1876_v58  ;;  %9335 = vmatpush3.bf16.msra.mxu1 %v9334_v55 }
 0x194   :  { %8169 = vmatprep.mubr.msk.f32.mxu1 %vm9753_vm1, %v9752_v1  ;;  %8202 = vmatprep.mubr.msk.f32.mxu0 %vm9753_vm1, %v9752_v1 }
 0x195   :  { %9336 = vmatprep.subr.bf16.mxu1 %v9751_v0  ;;  %9344 = vmatpush3.bf16.msra.mxu0 %v9343_v24 }
 0x196   :  { %8170 = vmatmul.mubr.msk.f32.gmra.mrb[72].mxu1 %vm35_vm0, %v1735_v63  ;;  %9345 = vmatprep.subr.bf16.mxu0 %v9751_v0 }
 0x197   :  { %8203 = vmatmul.mubr.msk.f32.gmra.mrb[86].mxu0 %vm35_vm0, %v1877_v2  ;;  %8172 = vmatprep.mubr.msk.f32.mxu1 %vm9753_vm1, %v9752_v1 }
 0x198   :  { %8205 = vmatprep.mubr.msk.f32.mxu0 %vm9753_vm1, %v9752_v1  ;;  %9338 = vmatpush3.bf16.msra.mxu1 %v9337_v61 }
 0x199   :  { %9339 = vmatprep.subr.bf16.mxu1 %v9751_v0  ;;  %9347 = vmatpush3.bf16.msra.mxu0 %v9346_v31 }
 0x19a   :  { %8173 = vmatmul.mubr.msk.f32.gmra.mrb[74].mxu1 %vm35_vm0, %v1736_v7  ;;  %9348 = vmatprep.subr.bf16.mxu0 %v9751_v0 }
 0x19b   :  { %8206 = vmatmul.mubr.msk.f32.gmra.mrb[88].mxu0 %vm35_vm0, %v1878_v8  ;;  %8175 = vmatprep.mubr.msk.f32.mxu1 %vm9753_vm1, %v9752_v1 }
 0x19c   :  { %8208 = vmatprep.mubr.msk.f32.mxu0 %vm9753_vm1, %v9752_v1  ;;  %9341 = vmatpush3.bf16.msra.mxu1 %v9340_v5 }
 0x19d   :  { %9351 = vmatprep.subr.bf16.mxu1 %v9751_v0  ;;  %9350 = vmatpush3.bf16.msra.mxu0 %v9349_v38 }
 0x19e   :  { %8176 = vmatmul.mubr.msk.f32.gmra.mrb[76].mxu1 %vm35_vm0, %v1737_v59  ;;  %9360 = vmatprep.subr.bf16.mxu0 %v9751_v0 }
 0x19f   :  { %8209 = vmatmul.mubr.msk.f32.gmra.mrb[90].mxu0 %vm35_vm0, %v1879_v9  ;;  %8178 = vmatprep.mubr.msk.f32.mxu1 %vm9753_vm1, %v9752_v1 }
 0x1a0   :  { %8211 = vmatprep.mubr.msk.f32.mxu0 %vm9753_vm1, %v9752_v1 }
 0x1a2   :  { %8179 = vmatmul.mubr.msk.f32.gmra.mrb[78].mxu1 %vm35_vm0, %v1738_v10 }
 0x1a3   :  { %8212 = vmatmul.mubr.msk.f32.gmra.mrb[92].mxu0 %vm35_vm0, %v1880_v4  ;;  %8181 = vmatprep.mubr.msk.f32.mxu1 %vm9753_vm1, %v9752_v1 }
 0x1a4   :  { %8214 = vmatprep.mubr.msk.f32.mxu0 %vm9753_vm1, %v9752_v1 }
 0x1a6   :  { %8182 = vmatmul.mubr.msk.f32.gmra.mrb[80].mxu1 %vm35_vm0, %v1739_v12 }
 0x1a7   :  { %8215 = vmatmul.mubr.msk.f32.gmra.mrb[94].mxu0 %vm35_vm0, %v1881_v13  ;;  %8184 = vmatprep.mubr.msk.f32.mxu1 %vm9753_vm1, %v9752_v1 }
 0x1a8   :  { %8217 = vmatprep.mubr.msk.f32.mxu0 %vm9753_vm1, %v9752_v1 }
 0x1aa   :  { %8185 = vmatmul.mubr.msk.f32.gmra.mrb[82].mxu1 %vm35_vm0, %v1740_v14 }
 0x1ab   :  { %8218 = vmatmul.mubr.msk.f32.gmra.mrb[96].mxu0 %vm35_vm0, %v1882_v6  ;;  %8232 = vmatprep.mubr.msk.f32.mxu1 %vm9753_vm1, %v9752_v1 }
 0x1ac   :  { %8265 = vmatprep.mubr.msk.f32.mxu0 %vm9753_vm1, %v9752_v1 }
 0x1ae   :  { %8233 = vmatmul.mubr.msk.f32.vlgmr.msra.gmra.mrb[84].mxu1 %vm35_vm0, %v2018_v15 }
 0x1af   :  { %8235 = vmatprep.mubr.msk.f32.mxu1 %vm9753_vm1, %v9752_v1  ;;  %9353 = vmatpush3.bf16.msra.mxu1 %v9352_v28 }
 0x1b0   :  { %9354 = vmatprep.subr.bf16.mxu1 %v9751_v0 }
 0x1b2   :  { %8236 = vmatmul.mubr.msk.f32.gmra.mrb[86].mxu1 %vm35_vm0, %v2019_v16 }
 0x1b3   :  { %8238 = vmatprep.mubr.msk.f32.mxu1 %vm9753_vm1, %v9752_v1  ;;  %9356 = vmatpush3.bf16.msra.mxu1 %v9355_v34 }
 0x1b4   :  { %9357 = vmatprep.subr.bf16.mxu1 %v9751_v0 }
 0x1b6   :  { %8239 = vmatmul.mubr.msk.f32.gmra.mrb[88].mxu1 %vm35_vm0, %v2020_v17 }
 0x1b7   :  { %8241 = vmatprep.mubr.msk.f32.mxu1 %vm9753_vm1, %v9752_v1  ;;  %9359 = vmatpush3.bf16.msra.mxu1 %v9358_v40 }
 0x1b8   :  { %9369 = vmatprep.subr.bf16.mxu1 %v9751_v0 }
 0x1ba   :  { %8242 = vmatmul.mubr.msk.f32.gmra.mrb[90].mxu1 %vm35_vm0, %v2021_v18 }
 0x1bb   :  { %8244 = vmatprep.mubr.msk.f32.mxu1 %vm9753_vm1, %v9752_v1 }
 0x1be   :  { %8245 = vmatmul.mubr.msk.f32.gmra.mrb[92].mxu1 %vm35_vm0, %v2022_v19 }
 0x1bf   :  { %8247 = vmatprep.mubr.msk.f32.mxu1 %vm9753_vm1, %v9752_v1 }
 0x1c2   :  { %8248 = vmatmul.mubr.msk.f32.gmra.mrb[94].mxu1 %vm35_vm0, %v2023_v20 }
 0x1c3   :  { %8250 = vmatprep.mubr.msk.f32.mxu1 %vm9753_vm1, %v9752_v1 }
 0x1c6   :  { %8251 = vmatmul.mubr.msk.f32.gmra.mrb[96].mxu1 %vm35_vm0, %v2024_v21 }
 0x1c7   :  { %8298 = vmatprep.mubr.msk.f32.mxu1 %vm9753_vm1, %v9752_v1 }
 0x22b   :  { %v1295_v41 = vpop.f32.mrb[42].mxu1 }
 0x22c   :  { %v1416_v42 = vpop.f32.mrb[56].mxu0  ;;  %v8036_v44 = vpop.f32.mrb[43].mxu1 }
 0x22d   :  { %v1417_v43 = vadd.f32 %v1416_v42, %v1295_v41  ;;  %v8069_v45 = vpop.f32.mrb[57].mxu0 }
 0x22f   :  { %v1300_v46 = vpop.f32.mrb[44].mxu1 }
 0x230   :  { %v1421_v47 = vpop.f32.mrb[58].mxu0  ;;  %v8039_v49 = vpop.f32.mrb[45].mxu1 }
 0x231   :  { %v1422_v48 = vadd.f32 %v1421_v47, %v1300_v46  ;;  %v8072_v50 = vpop.f32.mrb[59].mxu0 }
 0x235   :  { %v1305_v51 = vpop.f32.mrb[46].mxu1 }
 0x236   :  { %v1426_v53 = vpop.f32.mrb[60].mxu0  ;;  %v8042_v54 = vpop.f32.mrb[47].mxu1 }
 0x237   :  { %v1427_v52 = vadd.f32 %v1426_v53, %v1305_v51  ;;  %v8075_v55 = vpop.f32.mrb[61].mxu0 }
 0x239   :  { %v1310_v56 = vpop.f32.mrb[48].mxu1 }
 0x23a   :  { %v1431_v57 = vpop.f32.mrb[62].mxu0  ;;  %v8045_v60 = vpop.f32.mrb[49].mxu1 }
 0x23b   :  { %v1432_v58 = vadd.f32 %v1431_v57, %v1310_v56  ;;  %v8078_v61 = vpop.f32.mrb[63].mxu0 }
 0x23d   :  { %v1315_v62 = vpop.f32.mrb[50].mxu1 }
 0x23e   :  { %v1436_v63 = vpop.f32.mrb[64].mxu0  ;;  %v8048_v3 = vpop.f32.mrb[51].mxu1 }
 0x23f   :  { %v1437_v2 = vadd.f32 %v1436_v63, %v1315_v62  ;;  %v8081_v5 = vpop.f32.mrb[65].mxu0 }
 0x241   :  { %v1320_v7 = vpop.f32.mrb[52].mxu1 }
 0x242   :  { %v1441_v8 = vpop.f32.mrb[66].mxu0  ;;  %v8051_v9 = vpop.f32.mrb[53].mxu1 }
 0x243   :  { %v1442_v59 = vadd.f32 %v1441_v8, %v1320_v7  ;;  %v8084_v10 = vpop.f32.mrb[67].mxu0 }
 0x245   :  { %v1325_v4 = vpop.f32.mrb[54].mxu1 }
 0x246   :  { %v1446_v12 = vpop.f32.mrb[68].mxu0  ;;  %v8054_v6 = vpop.f32.mrb[55].mxu1 }
 0x247   :  { %v1447_v13 = vadd.f32 %v1446_v12, %v1325_v4  ;;  %v8087_v14 = vpop.f32.mrb[69].mxu0 }
 0x249   :  { %v1551_v15 = vpop.f32.mrb[56].mxu1 }
 0x24a   :  { %v1693_v16 = vpop.f32.mrb[70].mxu0  ;;  %v1585_v17 = vadd.f32 %v1551_v15, %v1417_v43  ;;  %v8102_v18 = vpop.f32.mrb[57].mxu1 }
 0x24b   :  { %v8135_v19 = vpop.f32.mrb[71].mxu0 }
 0x24c   :  { %v1727_v20 = vadd.f32 %v1693_v16, %v1585_v17 }
 0x24d   :  { %v1556_v21 = vpop.f32.mrb[58].mxu1 }
 0x24e   :  { %v1698_v22 = vpop.f32.mrb[72].mxu0  ;;  %v1586_v23 = vadd.f32 %v1556_v21, %v1422_v48  ;;  %v8105_v24 = vpop.f32.mrb[59].mxu1 }
 0x24f   :  { %v8138_v25 = vpop.f32.mrb[73].mxu0 }
 0x250   :  { %v1728_v27 = vadd.f32 %v1698_v22, %v1586_v23 }
 0x251   :  { %v1561_v28 = vpop.f32.mrb[60].mxu1 }
 0x252   :  { %v1703_v29 = vpop.f32.mrb[74].mxu0  ;;  %v1587_v30 = vadd.f32 %v1561_v28, %v1427_v52  ;;  %v8108_v31 = vpop.f32.mrb[61].mxu1 }
 0x253   :  { %v8141_v32 = vpop.f32.mrb[75].mxu0 }
 0x254   :  { %v1729_v33 = vadd.f32 %v1703_v29, %v1587_v30 }
 0x255   :  { %v1566_v34 = vpop.f32.mrb[62].mxu1 }
 0x256   :  { %v1708_v35 = vpop.f32.mrb[76].mxu0  ;;  %v1588_v36 = vadd.f32 %v1566_v34, %v1432_v58  ;;  %v8111_v37 = vpop.f32.mrb[63].mxu1 }
 0x257   :  { %v8144_v38 = vpop.f32.mrb[77].mxu0 }
 0x258   :  { %v1730_v39 = vadd.f32 %v1708_v35, %v1588_v36 }
 0x259   :  { %v1571_v40 = vpop.f32.mrb[64].mxu1 }
 0x25a   :  { %v1713_v41 = vpop.f32.mrb[78].mxu0  ;;  %v1589_v42 = vadd.f32 %v1571_v40, %v1437_v2  ;;  %v8114_v43 = vpop.f32.mrb[65].mxu1 }
 0x25b   :  { %v8147_v44 = vpop.f32.mrb[79].mxu0 }
 0x25c   :  { %v1731_v45 = vadd.f32 %v1713_v41, %v1589_v42  ;;  %v10364_v41 = vld [vmem:[%s11409_s2 + $0x1] ss:$0 sm:$0xff] }
 0x25d   :  { %v1576_v46 = vpop.f32.mrb[66].mxu1 }
 0x25e   :  { %v1718_v47 = vpop.f32.mrb[80].mxu0  ;;  %v1590_v48 = vadd.f32 %v1576_v46, %v1442_v59  ;;  %v8117_v49 = vpop.f32.mrb[67].mxu1 }
 0x25f   :  { %v8150_v50 = vpop.f32.mrb[81].mxu0 }
 0x260   :  { %v1732_v51 = vadd.f32 %v1718_v47, %v1590_v48 }
 0x261   :  { %v1581_v53 = vpop.f32.mrb[68].mxu1 }
 0x262   :  { %v1723_v52 = vpop.f32.mrb[82].mxu0  ;;  %v1591_v54 = vadd.f32 %v1581_v53, %v1447_v13  ;;  %v8120_v55 = vpop.f32.mrb[69].mxu1 }
 0x263   :  { %v8153_v56 = vpop.f32.mrb[83].mxu0  ;;  %v2475_v55 = vld [vmem:[#allocation4 + $0x308] sm:$0xff] }
 0x264   :  { %v1733_v57 = vadd.f32 %v1723_v52, %v1591_v54  ;;  %v2474_v54 = vld [vmem:[#allocation4 + $0x300] sm:$0xff]  ;;  %v2616_v56 = vld [vmem:[#allocation4 + $0x330] sm:$0xff] }
 0x265   :  { %v1835_v58 = vpop.f32.mrb[70].mxu1 }
 0x266   :  { %v1977_v60 = vpop.f32.mrb[84].mxu0  ;;  %v1869_v61 = vadd.f32 %v1835_v58, %v1727_v20  ;;  %v8168_v62 = vpop.f32.mrb[71].mxu1 }
 0x267   :  { %v8201_v63 = vpop.f32.mrb[85].mxu0 }
 0x268   :  { %v2011_v2 = vadd.f32 %v1977_v60, %v1869_v61 }
 0x269   :  { %v1840_v3 = vpop.f32.mrb[72].mxu1 }
 0x26a   :  { %v1982_v5 = vpop.f32.mrb[86].mxu0  ;;  %v1870_v7 = vadd.f32 %v1840_v3, %v1728_v27  ;;  %v8171_v8 = vpop.f32.mrb[73].mxu1  ;;  %v2476_v3 = vld [vmem:[#allocation4 + $0x310] sm:$0xff] }
 0x26b   :  { %v8204_v59 = vpop.f32.mrb[87].mxu0  ;;  %v2618_v8 = vld [vmem:[#allocation4 + $0x340] sm:$0xff] }
 0x26c   :  { %v2012_v9 = vadd.f32 %v1982_v5, %v1870_v7  ;;  %v2477_v5 = vld [vmem:[#allocation4 + $0x318] sm:$0xff] }
 0x26d   :  { %v1845_v10 = vpop.f32.mrb[74].mxu1 }
 0x26e   :  { %v1987_v4 = vpop.f32.mrb[88].mxu0  ;;  %v1871_v12 = vadd.f32 %v1845_v10, %v1729_v33  ;;  %v8174_v6 = vpop.f32.mrb[75].mxu1  ;;  %v2619_v10 = vld [vmem:[#allocation4 + $0x348] sm:$0xff] }
 0x26f   :  { %v8207_v13 = vpop.f32.mrb[89].mxu0 }
 0x270   :  { %v2013_v14 = vadd.f32 %v1987_v4, %v1871_v12 }
 0x271   :  { %v1850_v15 = vpop.f32.mrb[76].mxu1 }
 0x272   :  { %v1992_v16 = vpop.f32.mrb[90].mxu0  ;;  %v1872_v17 = vadd.f32 %v1850_v15, %v1730_v39  ;;  %v8177_v18 = vpop.f32.mrb[77].mxu1 }
 0x273   :  { %v8210_v19 = vpop.f32.mrb[91].mxu0 }
 0x274   :  { %v2014_v20 = vadd.f32 %v1992_v16, %v1872_v17  ;;  %v9364_v16 = vpack.c.bf16 %v2477_v5, %v2476_v3  ;;  %v9373_v17 = vpack.c.bf16 %v2619_v10, %v2618_v8  ;;  %v2762_v3 = vld [vmem:[#allocation4 + $0x380] sm:$0xff]  ;;  %v2763_v8 = vld [vmem:[#allocation4 + $0x388] sm:$0xff]  ;;  %v2905_v10 = vld [vmem:[#allocation4 + $0x3b8] sm:$0xff] }
 0x275   :  { %v1855_v21 = vpop.f32.mrb[78].mxu1 }
 0x276   :  { %v1997_v22 = vpop.f32.mrb[92].mxu0  ;;  %v1873_v23 = vadd.f32 %v1855_v21, %v1731_v45  ;;  %v8180_v24 = vpop.f32.mrb[79].mxu1 }
 0x277   :  { %v8213_v25 = vpop.f32.mrb[93].mxu0  ;;  %v2479_v24 = vld [vmem:[#allocation4 + $0x328] sm:$0xff] }
 0x278   :  { %v2015_v27 = vadd.f32 %v1997_v22, %v1873_v23  ;;  %v2478_v22 = vld [vmem:[#allocation4 + $0x320] sm:$0xff]  ;;  %v2620_v25 = vld [vmem:[#allocation4 + $0x350] sm:$0xff] }
 0x279   :  { %v1860_v28 = vpop.f32.mrb[80].mxu1 }
 0x27a   :  { %v2002_v29 = vpop.f32.mrb[94].mxu0  ;;  %v1874_v30 = vadd.f32 %v1860_v28, %v1732_v51  ;;  %v8183_v31 = vpop.f32.mrb[81].mxu1 }
 0x27b   :  { %v8216_v32 = vpop.f32.mrb[95].mxu0 }
 0x27c   :  { %v10357_v33 = vadd.f32 %v2002_v29, %v1874_v30  ;;  %v9367_v32 = vpack.c.bf16 %v2479_v24, %v2478_v22 }
 0x27d   :  { %v1865_v34 = vpop.f32.mrb[82].mxu1 }
 0x27e   :  { %v2007_v35 = vpop.f32.mrb[96].mxu0  ;;  %v1875_v36 = vadd.f32 %v1865_v34, %v1733_v57  ;;  %v8186_v37 = vpop.f32.mrb[83].mxu1  ;;  %v2617_v57 = vld [vmem:[#allocation4 + $0x338] sm:$0xff] }
 0x27f   :  { %v8219_v38 = vpop.f32.mrb[97].mxu0  ;;  %v9370_v7 = vpack.c.bf16 %v2617_v57, %v2616_v56  ;;  %v2760_v56 = vld [vmem:[#allocation4 + $0x370] sm:$0xff] }
 0x280   :  { %v10359_v39 = vadd.f32 %v2007_v35, %v1875_v36 }
 0x281   :  { %v2119_v40 = vpop.f32.mrb[84].mxu1 }
 0x282   :  { %v2153_v42 = vadd.f32 %v2119_v40, %v2011_v2  ;;  %v8234_v43 = vpop.f32.mrb[85].mxu1  ;;  %v9361_v2 = vpack.c.bf16 %v2475_v55, %v2474_v54  ;;  %v2901_v54 = vld [vmem:[#allocation4 + $0x398] sm:$0xff] }
 0x284   :  { %v2168_v44 = vadd.f32 %v10364_v41, %v2153_v42 }
 0x285   :  { %v2124_v45 = vpop.f32.mrb[86].mxu1 }
 0x286   :  { %v2175_v46 = vmax.f32 %v2168_v44, 0.0  ;;  %v2154_v47 = vadd.f32 %v2124_v45, %v2012_v9  ;;  %v8237_v48 = vpop.f32.mrb[87].mxu1 }
 0x288   :  { %2189 = vst.msk [vmem:[#allocation3 + $0x8] sm:$0xff] %vm35_vm0, %v2175_v46  ;;  %v2169_v49 = vadd.f32 %v10364_v41, %v2154_v47 }
 0x289   :  { %v2129_v50 = vpop.f32.mrb[88].mxu1 }
 0x28a   :  { %v2176_v51 = vmax.f32 %v2169_v49, 0.0  ;;  %v2155_v53 = vadd.f32 %v2129_v50, %v2013_v14  ;;  %v8240_v52 = vpop.f32.mrb[89].mxu1  ;;  %v2758_v49 = vld [vmem:[#allocation4 + $0x360] sm:$0xff]  ;;  %v2759_v50 = vld [vmem:[#allocation4 + $0x368] sm:$0xff] }
 0x28b   :  { %v2900_v52 = vld [vmem:[#allocation4 + $0x390] sm:$0xff]  ;;  %v9379_v55 = vpack.c.bf16 %v2759_v50, %v2758_v49 }
 0x28c   :  { %2190 = vst.msk [vmem:[#allocation3 + $0x10] sm:$0xff] %vm35_vm0, %v2176_v51  ;;  %v2170_v58 = vadd.f32 %v10364_v41, %v2155_v53 }
 0x28d   :  { %v2134_v60 = vpop.f32.mrb[90].mxu1 }
 0x28e   :  { %v2177_v61 = vmax.f32 %v2170_v58, 0.0  ;;  %v2156_v62 = vadd.f32 %v2134_v60, %v2014_v20  ;;  %v8243_v63 = vpop.f32.mrb[91].mxu1  ;;  %v2761_v60 = vld [vmem:[#allocation4 + $0x378] sm:$0xff] }
 0x28f   :  { %v2210_v59 = vld [vmem:[#allocation3 + $0x6] sm:$0xff] }
 0x290   :  { %v2196_v9 = vld [vmem:[#allocation3 + $0x5] sm:$0xff]  ;;  %v2184_v4 = vmul.f32 %v10171_v26, %v2177_v61  ;;  %v2171_v12 = vadd.f32 %v10364_v41, %v2156_v62  ;;  %8266 = vmatmul.mubr.msk.f32.vlgmr.msra.gmra.mrb[98].mxu0 %vm35_vm0, %v2210_v59  ;;  %v9388_v61 = vpack.c.bf16 %v2901_v54, %v2900_v52 }
 0x291   :  { %8299 = vmatmul.mubr.msk.f32.vlgmr.msra.gmra.mrb[98].mxu1 %vm35_vm0, %v2196_v9  ;;  %v2139_v6 = vpop.f32.mrb[92].mxu1  ;;  %8268 = vmatprep.mubr.msk.f32.mxu0 %vm9753_vm1, %v9752_v1  ;;  %v2466_v57 = vld [vmem:[#allocation3 + $0x7] sm:$0xff]  ;;  %v2904_v9 = vld [vmem:[#allocation4 + $0x3b0] sm:$0xff] }
 0x292   :  { %8301 = vmatprep.mubr.msk.f32.mxu1 %vm9753_vm1, %v9752_v1  ;;  %2191 = vst.msk [vmem:[#allocation3 + $0x18] sm:$0xff] %vm35_vm0, %v2184_v4  ;;  %v2178_v13 = vmax.f32 %v2171_v12, 0.0  ;;  %v2157_v14 = vadd.f32 %v2139_v6, %v2015_v27  ;;  %v8246_v15 = vpop.f32.mrb[93].mxu1  ;;  %9362 = vmatpush3.bf16.msra.mxu0 %v9361_v2  ;;  %v2621_v27 = vld [vmem:[#allocation4 + $0x358] sm:$0xff]  ;;  %v2608_v58 = vld [vmem:[#allocation3 + $0x8] sm:$0xff]  ;;  %v2902_v62 = vld [vmem:[#allocation4 + $0x3a0] sm:$0xff]  ;;  %v9382_v2 = vpack.c.bf16 %v2761_v60, %v2760_v56 }
 0x293   :  { %9371 = vmatpush3.bf16.msra.mxu1 %v9370_v7  ;;  %v2211_v18 = vld [vmem:[#allocation3 + $0xe] sm:$0xff]  ;;  %9363 = vmatprep.subr.bf16.mxu0 %v9751_v0  ;;  %v9376_v34 = vpack.c.bf16 %v2621_v27, %v2620_v25  ;;  %v9385_v4 = vpack.c.bf16 %v2763_v8, %v2762_v3  ;;  %v3234_v52 = vld [vmem:[#allocation4 + $0x420] sm:$0xff] }
 0x294   :  { %v2197_v19 = vld [vmem:[#allocation3 + $0xd] sm:$0xff]  ;;  %9372 = vmatprep.subr.bf16.mxu1 %v9751_v0  ;;  %v2185_v20 = vmul.f32 0.0, %v2178_v13  ;;  %v2172_v21 = vadd.f32 %v10364_v41, %v2157_v14  ;;  %8269 = vmatmul.mubr.msk.f32.gmra.mrb[100].mxu0 %vm35_vm0, %v2211_v18  ;;  %v9394_v13 = vpack.c.bf16 %v2905_v10, %v2904_v9  ;;  %v3225_v9 = vld [vmem:[#allocation4 + $0x418] sm:$0xff] }
 0x295   :  { %8302 = vmatmul.mubr.msk.f32.gmra.mrb[100].mxu1 %vm35_vm0, %v2197_v19  ;;  %v2144_v23 = vpop.f32.mrb[94].mxu1  ;;  %8271 = vmatprep.mubr.msk.f32.mxu0 %vm9753_vm1, %v9752_v1  ;;  %v2903_v63 = vld [vmem:[#allocation4 + $0x3a8] sm:$0xff]  ;;  %v2609_v7 = vld [vmem:[#allocation3 + $0x10] sm:$0xff] }
 0x296   :  { %8304 = vmatprep.mubr.msk.f32.mxu1 %vm9753_vm1, %v9752_v1  ;;  %2192 = vst.msk [vmem:[#allocation3 + $0x20] sm:$0xff] %vm35_vm0, %v2185_v20  ;;  %v2179_v28 = vmax.f32 %v2172_v21, 0.0  ;;  %v2158_v29 = vadd.f32 %v2144_v23, %v10357_v33  ;;  %v8249_v30 = vpop.f32.mrb[95].mxu1  ;;  %9365 = vmatpush3.bf16.msra.mxu0 %v9364_v16  ;;  %v2467_v5 = vld [vmem:[#allocation3 + $0xf] sm:$0xff]  ;;  %v9391_v59 = vpack.c.bf16 %v2903_v63, %v2902_v62  ;;  %v3042_v20 = vld [vmem:[#allocation4 + $0x3c0] sm:$0xff] }
 0x297   :  { %9374 = vmatpush3.bf16.msra.mxu1 %v9373_v17  ;;  %9366 = vmatprep.subr.bf16.mxu0 %v9751_v0  ;;  %v3043_v21 = vld [vmem:[#allocation4 + $0x3c8] sm:$0xff]  ;;  %v3044_v25 = vld [vmem:[#allocation4 + $0x3d0] sm:$0xff]  ;;  %v3222_v63 = vld [vmem:[#allocation4 + $0x400] sm:$0xff] }
 0x298   :  { %9375 = vmatprep.subr.bf16.mxu1 %v9751_v0  ;;  %2193 = vst.msk [vmem:[#allocation3 + $0x28] sm:$0xff] %vm35_vm0, %v2179_v28  ;;  %v2173_v31 = vadd.f32 %v10364_v41, %v2158_v29  ;;  %v9397_v24 = vpack.c.bf16 %v3043_v21, %v3042_v20  ;;  %v2750_v27 = vld [vmem:[#allocation3 + $0x9] sm:$0xff]  ;;  %v3045_v29 = vld [vmem:[#allocation4 + $0x3d8] sm:$0xff] }
 0x299   :  { %v2149_v35 = vpop.f32.mrb[96].mxu1  ;;  %v2212_v36 = vld [vmem:[#allocation3 + $0x16] sm:$0xff]  ;;  %v2892_v28 = vld [vmem:[#allocation3 + $0xa] sm:$0xff]  ;;  %v9400_v30 = vpack.c.bf16 %v3045_v29, %v3044_v25 }
 0x29a   :  { %v2198_v37 = vld [vmem:[#allocation3 + $0x15] sm:$0xff]  ;;  %v2180_v38 = vmax.f32 %v2173_v31, 0.0  ;;  %v2159_v40 = vadd.f32 %v2149_v35, %v10359_v39  ;;  %8272 = vmatmul.mubr.msk.f32.gmra.mrb[102].mxu0 %vm35_vm0, %v2212_v36  ;;  %v8252_v33 = vpop.f32.mrb[97].mxu1  ;;  %v3046_v31 = vld [vmem:[#allocation4 + $0x3e0] sm:$0xff]  ;;  %v3047_v35 = vld [vmem:[#allocation4 + $0x3e8] sm:$0xff] }
 0x29b   :  { %8305 = vmatmul.mubr.msk.f32.gmra.mrb[102].mxu1 %vm35_vm0, %v2198_v37  ;;  %8274 = vmatprep.mubr.msk.f32.mxu0 %vm9753_vm1, %v9752_v1  ;;  %v2468_v12 = vld [vmem:[#allocation3 + $0x17] sm:$0xff]  ;;  %v9403_v36 = vpack.c.bf16 %v3047_v35, %v3046_v31  ;;  %v3235_v54 = vld [vmem:[#allocation4 + $0x428] sm:$0xff] }
 0x29c   :  { %8307 = vmatprep.mubr.msk.f32.mxu1 %vm9753_vm1, %v9752_v1  ;;  %2194 = vst.msk [vmem:[#allocation3 + $0x30] sm:$0xff] %vm35_vm0, %v2180_v38  ;;  %v2174_v42 = vadd.f32 %v10364_v41, %v2159_v40  ;;  %9368 = vmatpush3.bf16.msra.mxu0 %v9367_v32  ;;  %v2610_v6 = vld [vmem:[#allocation3 + $0x18] sm:$0xff]  ;;  %v3220_v56 = vld [vmem:[#allocation4 + $0x3f0] sm:$0xff] }
 0x29d   :  { %9377 = vmatpush3.bf16.msra.mxu1 %v9376_v34  ;;  %v2213_v43 = vld [vmem:[#allocation3 + $0x1e] sm:$0xff]  ;;  %9378 = vmatprep.subr.bf16.mxu0 %v9751_v0  ;;  %v2751_v32 = vld [vmem:[#allocation3 + $0x11] sm:$0xff] }
 0x29e   :  { %v2199_v44 = vld [vmem:[#allocation3 + $0x1d] sm:$0xff]  ;;  %9387 = vmatprep.subr.bf16.mxu1 %v9751_v0  ;;  %v2181_v39 = vmax.f32 %v2174_v42, 0.0  ;;  %8275 = vmatmul.mubr.msk.f32.gmra.mrb[104].mxu0 %vm35_vm0, %v2213_v43  ;;  %v2893_v34 = vld [vmem:[#allocation3 + $0x12] sm:$0xff] }
 0x29f   :  { %8308 = vmatmul.mubr.msk.f32.gmra.mrb[104].mxu1 %vm35_vm0, %v2199_v44  ;;  %8277 = vmatprep.mubr.msk.f32.mxu0 %vm9753_vm1, %v9752_v1  ;;  %v2214_v45 = vld [vmem:[#allocation3 + $0x26] sm:$0xff]  ;;  %v2752_v37 = vld [vmem:[#allocation3 + $0x19] sm:$0xff]  ;;  %v3236_v60 = vld [vmem:[#allocation4 + $0x430] sm:$0xff] }
 0x2a0   :  { %8310 = vmatprep.mubr.msk.f32.mxu1 %vm9753_vm1, %v9752_v1  ;;  %v2188_v41 = vmul.f32 %v10207_v11, %v2181_v39  ;;  %v2200_v46 = vld [vmem:[#allocation3 + $0x25] sm:$0xff]  ;;  %v2894_v38 = vld [vmem:[#allocation3 + $0x1a] sm:$0xff]  ;;  %v3224_v8 = vld [vmem:[#allocation4 + $0x410] sm:$0xff] }
 0x2a1   :  { %v2469_v14 = vld [vmem:[#allocation3 + $0x1f] sm:$0xff]  ;;  %v2470_v16 = vld [vmem:[#allocation3 + $0x27] sm:$0xff]  ;;  %v9421_v10 = vpack.c.bf16 %v3225_v9, %v3224_v8 }
 0x2a2   :  { %2195 = vst.msk [vmem:[#allocation3 + $0x38] sm:$0x3] %vm1178_vm4, %v2188_v41  ;;  %8278 = vmatmul.mubr.msk.f32.gmra.mrb[106].mxu0 %vm35_vm0, %v2214_v45  ;;  %v2611_v15 = vld [vmem:[#allocation3 + $0x20] sm:$0xff]  ;;  %v2612_v17 = vld [vmem:[#allocation3 + $0x28] sm:$0xff]  ;;  %v2898_v41 = vld [vmem:[#allocation3 + $0x3a] sm:$0x3] }
 0x2a3   :  { %8311 = vmatmul.mubr.msk.f32.gmra.mrb[106].mxu1 %vm35_vm0, %v2200_v46  ;;  %8280 = vmatprep.mubr.msk.f32.mxu0 %vm9753_vm1, %v9752_v1  ;;  %v2215_v47 = vld [vmem:[#allocation3 + $0x2e] sm:$0xff]  ;;  %v2216_v51 = vld [vmem:[#allocation3 + $0x36] sm:$0x3]  ;;  %v2753_v40 = vld [vmem:[#allocation3 + $0x21] sm:$0xff] }
 0x2a4   :  { %8313 = vmatprep.mubr.msk.f32.mxu1 %vm9753_vm1, %v9752_v1  ;;  %v2201_v48 = vld [vmem:[#allocation3 + $0x2d] sm:$0xff]  ;;  %v2202_v53 = vld [vmem:[#allocation3 + $0x35] sm:$0x3]  ;;  %v2895_v33 = vld [vmem:[#allocation3 + $0x22] sm:$0xff] }
 0x2a5   :  { %v2471_v18 = vld [vmem:[#allocation3 + $0x2f] sm:$0xff]  ;;  %v3037_v49 = vld [vmem:[#allocation3 + $0x23] sm:$0xff] }
 0x2a6   :  { %8281 = vmatmul.mubr.msk.f32.gmra.mrb[108].mxu0 %vm35_vm0, %v2215_v47  ;;  %v2613_v19 = vld [vmem:[#allocation3 + $0x30] sm:$0xff] }
 0x2a7   :  { %8314 = vmatmul.mubr.msk.f32.gmra.mrb[108].mxu1 %vm35_vm0, %v2201_v48  ;;  %8283 = vmatprep.mubr.msk.f32.mxu0 %vm9753_vm1, %v9752_v1  ;;  %v2754_v42 = vld [vmem:[#allocation3 + $0x29] sm:$0xff]  ;;  %v3035_v47 = vld [vmem:[#allocation3 + $0x13] sm:$0xff]  ;;  %v3036_v48 = vld [vmem:[#allocation3 + $0x1b] sm:$0xff] }
 0x2a8   :  { %8316 = vmatprep.mubr.msk.f32.mxu1 %vm9753_vm1, %v9752_v1  ;;  %v2896_v43 = vld [vmem:[#allocation3 + $0x2a] sm:$0xff] }
 0x2a9   :  { %v2472_v22 = vld [vmem:[#allocation3 + $0x37] sm:$0x3]  ;;  %v2756_v45 = vld [vmem:[#allocation3 + $0x39] sm:$0x3]  ;;  %v3034_v46 = vld [vmem:[#allocation3 + $0xb] sm:$0xff] }
 0x2aa   :  { %8284 = vmatmul.mubr.msk.f32.gmra.mrb[110].mxu0 %vm35_vm0, %v2216_v51  ;;  %v2614_v23 = vld [vmem:[#allocation3 + $0x38] sm:$0x3]  ;;  %v3038_v50 = vld [vmem:[#allocation3 + $0x2b] sm:$0xff] }
 0x2ab   :  { %8317 = vmatmul.mubr.msk.f32.gmra.mrb[110].mxu1 %vm35_vm0, %v2202_v53  ;;  %8331 = vmatprep.mubr.msk.f32.mxu0 %vm9753_vm1, %v9752_v1  ;;  %v2755_v44 = vld [vmem:[#allocation3 + $0x31] sm:$0xff]  ;;  %v3040_v53 = vld [vmem:[#allocation3 + $0x3b] sm:$0x3] }
 0x2ac   :  { %8364 = vmatprep.mubr.msk.f32.mxu1 %vm9753_vm1, %v9752_v1  ;;  %v2897_v39 = vld [vmem:[#allocation3 + $0x32] sm:$0xff] }
 0x2ad   :  { %v3039_v51 = vld [vmem:[#allocation3 + $0x33] sm:$0xff] }
 0x2ae   :  { %8332 = vmatmul.mubr.msk.f32.vlgmr.msra.gmra.mrb[112].mxu0 %vm35_vm0, %v2466_v57  ;;  %v3221_v57 = vld [vmem:[#allocation4 + $0x3f8] sm:$0xff] }
 0x2af   :  { %8365 = vmatmul.mubr.msk.f32.vlgmr.msra.gmra.mrb[112].mxu1 %vm35_vm0, %v2608_v58  ;;  %9380 = vmatpush3.bf16.msra.mxu0 %v9379_v55  ;;  %v9406_v55 = vpack.c.bf16 %v3235_v54, %v3234_v52  ;;  %v9415_v58 = vpack.c.bf16 %v3221_v57, %v3220_v56 }
 0x2b0   :  { %8334 = vmatprep.mubr.msk.f32.mxu0 %vm9753_vm1, %v9752_v1  ;;  %8367 = vmatprep.mubr.msk.f32.mxu1 %vm9753_vm1, %v9752_v1 }
 0x2b1   :  { %9381 = vmatprep.subr.bf16.mxu0 %v9751_v0  ;;  %9389 = vmatpush3.bf16.msra.mxu1 %v9388_v61  ;;  %v3237_v61 = vld [vmem:[#allocation4 + $0x438] sm:$0xff] }
 0x2b2   :  { %8335 = vmatmul.mubr.msk.f32.gmra.mrb[114].mxu0 %vm35_vm0, %v2467_v5  ;;  %9390 = vmatprep.subr.bf16.mxu1 %v9751_v0  ;;  %v9409_v62 = vpack.c.bf16 %v3237_v61, %v3236_v60  ;;  %v3238_v5 = vld [vmem:[#allocation4 + $0x440] sm:$0xff] }
 0x2b3   :  { %8368 = vmatmul.mubr.msk.f32.gmra.mrb[114].mxu1 %vm35_vm0, %v2609_v7  ;;  %8337 = vmatprep.mubr.msk.f32.mxu0 %vm9753_vm1, %v9752_v1  ;;  %v3239_v7 = vld [vmem:[#allocation4 + $0x448] sm:$0xff] }
 0x2b4   :  { %8370 = vmatprep.mubr.msk.f32.mxu1 %vm9753_vm1, %v9752_v1  ;;  %9383 = vmatpush3.bf16.msra.mxu0 %v9382_v2  ;;  %v3223_v2 = vld [vmem:[#allocation4 + $0x408] sm:$0xff] }
 0x2b5   :  { %9384 = vmatprep.subr.bf16.mxu0 %v9751_v0  ;;  %9392 = vmatpush3.bf16.msra.mxu1 %v9391_v59  ;;  %v9418_v3 = vpack.c.bf16 %v3223_v2, %v3222_v63  ;;  %v9412_v59 = vpack.c.bf16 %v3239_v7, %v3238_v5 }
 0x2b6   :  { %8338 = vmatmul.mubr.msk.f32.gmra.mrb[116].mxu0 %vm35_vm0, %v2468_v12  ;;  %9393 = vmatprep.subr.bf16.mxu1 %v9751_v0 }
 0x2b7   :  { %8371 = vmatmul.mubr.msk.f32.gmra.mrb[116].mxu1 %vm35_vm0, %v2610_v6  ;;  %8340 = vmatprep.mubr.msk.f32.mxu0 %vm9753_vm1, %v9752_v1 }
 0x2b8   :  { %8373 = vmatprep.mubr.msk.f32.mxu1 %vm9753_vm1, %v9752_v1  ;;  %9386 = vmatpush3.bf16.msra.mxu0 %v9385_v4 }
 0x2b9   :  { %9395 = vmatpush3.bf16.msra.mxu1 %v9394_v13  ;;  %9396 = vmatprep.subr.bf16.mxu0 %v9751_v0 }
 0x2ba   :  { %8341 = vmatmul.mubr.msk.f32.gmra.mrb[118].mxu0 %vm35_vm0, %v2469_v14  ;;  %9405 = vmatprep.subr.bf16.mxu1 %v9751_v0 }
 0x2bb   :  { %8374 = vmatmul.mubr.msk.f32.gmra.mrb[118].mxu1 %vm35_vm0, %v2611_v15  ;;  %8343 = vmatprep.mubr.msk.f32.mxu0 %vm9753_vm1, %v9752_v1 }
 0x2bc   :  { %8376 = vmatprep.mubr.msk.f32.mxu1 %vm9753_vm1, %v9752_v1 }
 0x2be   :  { %8344 = vmatmul.mubr.msk.f32.gmra.mrb[120].mxu0 %vm35_vm0, %v2470_v16 }
 0x2bf   :  { %8377 = vmatmul.mubr.msk.f32.gmra.mrb[120].mxu1 %vm35_vm0, %v2612_v17  ;;  %8346 = vmatprep.mubr.msk.f32.mxu0 %vm9753_vm1, %v9752_v1 }
 0x2c0   :  { %8379 = vmatprep.mubr.msk.f32.mxu1 %vm9753_vm1, %v9752_v1 }
 0x2c2   :  { %8347 = vmatmul.mubr.msk.f32.gmra.mrb[122].mxu0 %vm35_vm0, %v2471_v18 }
 0x2c3   :  { %8380 = vmatmul.mubr.msk.f32.gmra.mrb[122].mxu1 %vm35_vm0, %v2613_v19  ;;  %8349 = vmatprep.mubr.msk.f32.mxu0 %vm9753_vm1, %v9752_v1 }
 0x2c4   :  { %8382 = vmatprep.mubr.msk.f32.mxu1 %vm9753_vm1, %v9752_v1 }
 0x2c6   :  { %8350 = vmatmul.mubr.msk.f32.gmra.mrb[124].mxu0 %vm35_vm0, %v2472_v22 }
 0x2c7   :  { %8383 = vmatmul.mubr.msk.f32.gmra.mrb[124].mxu1 %vm35_vm0, %v2614_v23  ;;  %8397 = vmatprep.mubr.msk.f32.mxu0 %vm9753_vm1, %v9752_v1 }
 0x2c8   :  { %8430 = vmatprep.mubr.msk.f32.mxu1 %vm9753_vm1, %v9752_v1 }
 0x2ca   :  { %8398 = vmatmul.mubr.msk.f32.vlgmr.msra.gmra.mrb[126].mxu0 %vm35_vm0, %v2750_v27 }
 0x2cb   :  { %8431 = vmatmul.mubr.msk.f32.vlgmr.msra.gmra.mrb[126].mxu1 %vm35_vm0, %v2892_v28  ;;  %9398 = vmatpush3.bf16.msra.mxu0 %v9397_v24 }
 0x2cc   :  { %8400 = vmatprep.mubr.msk.f32.mxu0 %vm9753_vm1, %v9752_v1  ;;  %8433 = vmatprep.mubr.msk.f32.mxu1 %vm9753_vm1, %v9752_v1 }
 0x2cd   :  { %9399 = vmatprep.subr.bf16.mxu0 %v9751_v0  ;;  %9407 = vmatpush3.bf16.msra.mxu1 %v9406_v55 }
 0x2ce   :  { %8401 = vmatmul.mubr.msk.f32.gmra.mrb[128].mxu0 %vm35_vm0, %v2751_v32  ;;  %9408 = vmatprep.subr.bf16.mxu1 %v9751_v0 }
 0x2cf   :  { %8434 = vmatmul.mubr.msk.f32.gmra.mrb[128].mxu1 %vm35_vm0, %v2893_v34  ;;  %8403 = vmatprep.mubr.msk.f32.mxu0 %vm9753_vm1, %v9752_v1 }
 0x2d0   :  { %8436 = vmatprep.mubr.msk.f32.mxu1 %vm9753_vm1, %v9752_v1  ;;  %9401 = vmatpush3.bf16.msra.mxu0 %v9400_v30 }
 0x2d1   :  { %9402 = vmatprep.subr.bf16.mxu0 %v9751_v0  ;;  %9410 = vmatpush3.bf16.msra.mxu1 %v9409_v62 }
 0x2d2   :  { %8404 = vmatmul.mubr.msk.f32.gmra.mrb[130].mxu0 %vm35_vm0, %v2752_v37  ;;  %9411 = vmatprep.subr.bf16.mxu1 %v9751_v0 }
 0x2d3   :  { %8437 = vmatmul.mubr.msk.f32.gmra.mrb[130].mxu1 %vm35_vm0, %v2894_v38  ;;  %8406 = vmatprep.mubr.msk.f32.mxu0 %vm9753_vm1, %v9752_v1 }
 0x2d4   :  { %8439 = vmatprep.mubr.msk.f32.mxu1 %vm9753_vm1, %v9752_v1  ;;  %9404 = vmatpush3.bf16.msra.mxu0 %v9403_v36 }
 0x2d5   :  { %9414 = vmatprep.subr.bf16.mxu0 %v9751_v0  ;;  %9413 = vmatpush3.bf16.msra.mxu1 %v9412_v59 }
 0x2d6   :  { %8407 = vmatmul.mubr.msk.f32.gmra.mrb[132].mxu0 %vm35_vm0, %v2753_v40  ;;  %9423 = vmatprep.subr.bf16.mxu1 %v9751_v0 }
 0x2d7   :  { %8440 = vmatmul.mubr.msk.f32.gmra.mrb[132].mxu1 %vm35_vm0, %v2895_v33  ;;  %8409 = vmatprep.mubr.msk.f32.mxu0 %vm9753_vm1, %v9752_v1 }
 0x2d8   :  { %8442 = vmatprep.mubr.msk.f32.mxu1 %vm9753_vm1, %v9752_v1 }
 0x2da   :  { %8410 = vmatmul.mubr.msk.f32.gmra.mrb[134].mxu0 %vm35_vm0, %v2754_v42 }
 0x2db   :  { %8443 = vmatmul.mubr.msk.f32.gmra.mrb[134].mxu1 %vm35_vm0, %v2896_v43  ;;  %8412 = vmatprep.mubr.msk.f32.mxu0 %vm9753_vm1, %v9752_v1 }
 0x2dc   :  { %8445 = vmatprep.mubr.msk.f32.mxu1 %vm9753_vm1, %v9752_v1 }
 0x2de   :  { %8413 = vmatmul.mubr.msk.f32.gmra.mrb[136].mxu0 %vm35_vm0, %v2755_v44 }
 0x2df   :  { %8446 = vmatmul.mubr.msk.f32.gmra.mrb[136].mxu1 %vm35_vm0, %v2897_v39  ;;  %8415 = vmatprep.mubr.msk.f32.mxu0 %vm9753_vm1, %v9752_v1 }
 0x2e0   :  { %8448 = vmatprep.mubr.msk.f32.mxu1 %vm9753_vm1, %v9752_v1 }
 0x2e2   :  { %8416 = vmatmul.mubr.msk.f32.gmra.mrb[138].mxu0 %vm35_vm0, %v2756_v45 }
 0x2e3   :  { %8449 = vmatmul.mubr.msk.f32.gmra.mrb[138].mxu1 %vm35_vm0, %v2898_v41  ;;  %8463 = vmatprep.mubr.msk.f32.mxu0 %vm9753_vm1, %v9752_v1 }
 0x2e4   :  { %8496 = vmatprep.mubr.msk.f32.mxu1 %vm9753_vm1, %v9752_v1 }
 0x2e6   :  { %8464 = vmatmul.mubr.msk.f32.vlgmr.msra.gmra.mrb[140].mxu0 %vm35_vm0, %v3034_v46 }
 0x2e7   :  { %8466 = vmatprep.mubr.msk.f32.mxu0 %vm9753_vm1, %v9752_v1  ;;  %9416 = vmatpush3.bf16.msra.mxu0 %v9415_v58 }
 0x2e8   :  { %9417 = vmatprep.subr.bf16.mxu0 %v9751_v0 }
 0x2ea   :  { %8467 = vmatmul.mubr.msk.f32.gmra.mrb[142].mxu0 %vm35_vm0, %v3035_v47 }
 0x2eb   :  { %8469 = vmatprep.mubr.msk.f32.mxu0 %vm9753_vm1, %v9752_v1  ;;  %9419 = vmatpush3.bf16.msra.mxu0 %v9418_v3 }
 0x2ec   :  { %9420 = vmatprep.subr.bf16.mxu0 %v9751_v0 }
 0x2ee   :  { %8470 = vmatmul.mubr.msk.f32.gmra.mrb[144].mxu0 %vm35_vm0, %v3036_v48 }
 0x2ef   :  { %8472 = vmatprep.mubr.msk.f32.mxu0 %vm9753_vm1, %v9752_v1  ;;  %9422 = vmatpush3.bf16.msra.mxu0 %v9421_v10 }
 0x2f0   :  { %9432 = vmatprep.subr.bf16.mxu0 %v9751_v0 }
 0x2f2   :  { %8473 = vmatmul.mubr.msk.f32.gmra.mrb[146].mxu0 %vm35_vm0, %v3037_v49 }
 0x2f3   :  { %8475 = vmatprep.mubr.msk.f32.mxu0 %vm9753_vm1, %v9752_v1 }
 0x2f6   :  { %8476 = vmatmul.mubr.msk.f32.gmra.mrb[148].mxu0 %vm35_vm0, %v3038_v50 }
 0x2f7   :  { %8478 = vmatprep.mubr.msk.f32.mxu0 %vm9753_vm1, %v9752_v1 }
 0x2fa   :  { %8479 = vmatmul.mubr.msk.f32.gmra.mrb[150].mxu0 %vm35_vm0, %v3039_v51 }
 0x2fb   :  { %8481 = vmatprep.mubr.msk.f32.mxu0 %vm9753_vm1, %v9752_v1 }
 0x2fe   :  { %8482 = vmatmul.mubr.msk.f32.gmra.mrb[152].mxu0 %vm35_vm0, %v3040_v53 }
 0x2ff   :  { %8529 = vmatprep.mubr.msk.f32.mxu0 %vm9753_vm1, %v9752_v1 }
 0x363   :  { %v2311_v4 = vpop.f32.mrb[98].mxu0 }
 0x364   :  { %v2432_v12 = vpop.f32.mrb[98].mxu1  ;;  %v8267_v13 = vpop.f32.mrb[99].mxu0 }
 0x365   :  { %v2433_v6 = vadd.f32 %v2432_v12, %v2311_v4  ;;  %v8300_v14 = vpop.f32.mrb[99].mxu1 }
 0x367   :  { %v2316_v15 = vpop.f32.mrb[100].mxu0 }
 0x368   :  { %v2437_v16 = vpop.f32.mrb[100].mxu1  ;;  %v8270_v18 = vpop.f32.mrb[101].mxu0 }
 0x369   :  { %v2438_v17 = vadd.f32 %v2437_v16, %v2316_v15  ;;  %v8303_v19 = vpop.f32.mrb[101].mxu1 }
 0x36d   :  { %v2321_v20 = vpop.f32.mrb[102].mxu0 }
 0x36e   :  { %v2442_v21 = vpop.f32.mrb[102].mxu1  ;;  %v8273_v23 = vpop.f32.mrb[103].mxu0 }
 0x36f   :  { %v2443_v22 = vadd.f32 %v2442_v21, %v2321_v20  ;;  %v8306_v24 = vpop.f32.mrb[103].mxu1 }
 0x371   :  { %v2326_v25 = vpop.f32.mrb[104].mxu0 }
 0x372   :  { %v2447_v27 = vpop.f32.mrb[104].mxu1  ;;  %v8276_v29 = vpop.f32.mrb[105].mxu0 }
 0x373   :  { %v2448_v28 = vadd.f32 %v2447_v27, %v2326_v25  ;;  %v8309_v30 = vpop.f32.mrb[105].mxu1 }
 0x375   :  { %v2331_v31 = vpop.f32.mrb[106].mxu0 }
 0x376   :  { %v2452_v32 = vpop.f32.mrb[106].mxu1  ;;  %v8279_v35 = vpop.f32.mrb[107].mxu0 }
 0x377   :  { %v2453_v34 = vadd.f32 %v2452_v32, %v2331_v31  ;;  %v8312_v36 = vpop.f32.mrb[107].mxu1 }
 0x379   :  { %v2336_v37 = vpop.f32.mrb[108].mxu0 }
 0x37a   :  { %v2457_v38 = vpop.f32.mrb[108].mxu1  ;;  %v8282_v33 = vpop.f32.mrb[109].mxu0 }
 0x37b   :  { %v2458_v40 = vadd.f32 %v2457_v38, %v2336_v37  ;;  %v8315_v42 = vpop.f32.mrb[109].mxu1 }
 0x37d   :  { %v2341_v43 = vpop.f32.mrb[110].mxu0 }
 0x37e   :  { %v2462_v44 = vpop.f32.mrb[110].mxu1  ;;  %v8285_v41 = vpop.f32.mrb[111].mxu0 }
 0x37f   :  { %v2463_v39 = vadd.f32 %v2462_v44, %v2341_v43  ;;  %v8318_v45 = vpop.f32.mrb[111].mxu1 }
 0x381   :  { %v2567_v46 = vpop.f32.mrb[112].mxu0 }
 0x382   :  { %v2709_v47 = vpop.f32.mrb[112].mxu1  ;;  %v2601_v48 = vadd.f32 %v2567_v46, %v2433_v6  ;;  %v8333_v49 = vpop.f32.mrb[113].mxu0 }
 0x383   :  { %v8366_v50 = vpop.f32.mrb[113].mxu1 }
 0x384   :  { %v2743_v51 = vadd.f32 %v2709_v47, %v2601_v48 }
 0x385   :  { %v2572_v53 = vpop.f32.mrb[114].mxu0 }
 0x386   :  { %v2714_v52 = vpop.f32.mrb[114].mxu1  ;;  %v2602_v54 = vadd.f32 %v2572_v53, %v2438_v17  ;;  %v8336_v55 = vpop.f32.mrb[115].mxu0 }
 0x387   :  { %v8369_v56 = vpop.f32.mrb[115].mxu1 }
 0x388   :  { %v2744_v57 = vadd.f32 %v2714_v52, %v2602_v54 }
 0x389   :  { %v2577_v58 = vpop.f32.mrb[116].mxu0 }
 0x38a   :  { %v2719_v60 = vpop.f32.mrb[116].mxu1  ;;  %v2603_v61 = vadd.f32 %v2577_v58, %v2443_v22  ;;  %v8339_v62 = vpop.f32.mrb[117].mxu0 }
 0x38b   :  { %v8372_v63 = vpop.f32.mrb[117].mxu1 }
 0x38c   :  { %v2745_v2 = vadd.f32 %v2719_v60, %v2603_v61 }
 0x38d   :  { %v2582_v3 = vpop.f32.mrb[118].mxu0 }
 0x38e   :  { %v2724_v5 = vpop.f32.mrb[118].mxu1  ;;  %v2604_v7 = vadd.f32 %v2582_v3, %v2448_v28  ;;  %v8342_v8 = vpop.f32.mrb[119].mxu0 }
 0x38f   :  { %v8375_v59 = vpop.f32.mrb[119].mxu1 }
 0x390   :  { %v2746_v9 = vadd.f32 %v2724_v5, %v2604_v7 }
 0x391   :  { %v2587_v10 = vpop.f32.mrb[120].mxu0 }
 0x392   :  { %v2729_v4 = vpop.f32.mrb[120].mxu1  ;;  %v2605_v12 = vadd.f32 %v2587_v10, %v2453_v34  ;;  %v8345_v6 = vpop.f32.mrb[121].mxu0 }
 0x393   :  { %v8378_v13 = vpop.f32.mrb[121].mxu1 }
 0x394   :  { %v2747_v14 = vadd.f32 %v2729_v4, %v2605_v12  ;;  %v10559_v4 = vld [vmem:[%s11409_s2 + $0x2] ss:$0 sm:$0xff] }
 0x395   :  { %v2592_v15 = vpop.f32.mrb[122].mxu0 }
 0x396   :  { %v2734_v16 = vpop.f32.mrb[122].mxu1  ;;  %v2606_v17 = vadd.f32 %v2592_v15, %v2458_v40  ;;  %v8348_v18 = vpop.f32.mrb[123].mxu0 }
 0x397   :  { %v8381_v19 = vpop.f32.mrb[123].mxu1 }
 0x398   :  { %v2748_v20 = vadd.f32 %v2734_v16, %v2606_v17 }
 0x399   :  { %v2597_v21 = vpop.f32.mrb[124].mxu0 }
 0x39a   :  { %v2739_v22 = vpop.f32.mrb[124].mxu1  ;;  %v2607_v23 = vadd.f32 %v2597_v21, %v2463_v39  ;;  %v8351_v24 = vpop.f32.mrb[125].mxu0 }
 0x39b   :  { %v8384_v25 = vpop.f32.mrb[125].mxu1  ;;  %v3491_v24 = vld [vmem:[#allocation4 + $0x458] sm:$0xff] }
 0x39c   :  { %v2749_v27 = vadd.f32 %v2739_v22, %v2607_v23  ;;  %v3490_v23 = vld [vmem:[#allocation4 + $0x450] sm:$0xff]  ;;  %v3632_v25 = vld [vmem:[#allocation4 + $0x480] sm:$0xff] }
 0x39d   :  { %v2851_v28 = vpop.f32.mrb[126].mxu0 }
 0x39e   :  { %v2993_v29 = vpop.f32.mrb[126].mxu1  ;;  %v2885_v30 = vadd.f32 %v2851_v28, %v2743_v51  ;;  %v8399_v31 = vpop.f32.mrb[127].mxu0 }
 0x39f   :  { %v8432_v32 = vpop.f32.mrb[127].mxu1 }
 0x3a0   :  { %v3027_v34 = vadd.f32 %v2993_v29, %v2885_v30 }
 0x3a1   :  { %v2856_v35 = vpop.f32.mrb[128].mxu0 }
 0x3a2   :  { %v2998_v36 = vpop.f32.mrb[128].mxu1  ;;  %v2886_v37 = vadd.f32 %v2856_v35, %v2744_v57  ;;  %v8402_v38 = vpop.f32.mrb[129].mxu0  ;;  %v3492_v35 = vld [vmem:[#allocation4 + $0x460] sm:$0xff] }
 0x3a3   :  { %v8435_v40 = vpop.f32.mrb[129].mxu1  ;;  %v3634_v38 = vld [vmem:[#allocation4 + $0x490] sm:$0xff] }
 0x3a4   :  { %v3028_v33 = vadd.f32 %v2998_v36, %v2886_v37  ;;  %v3493_v36 = vld [vmem:[#allocation4 + $0x468] sm:$0xff] }
 0x3a5   :  { %v2861_v42 = vpop.f32.mrb[130].mxu0 }
 0x3a6   :  { %v3003_v43 = vpop.f32.mrb[130].mxu1  ;;  %v2887_v44 = vadd.f32 %v2861_v42, %v2745_v2  ;;  %v8405_v41 = vpop.f32.mrb[131].mxu0  ;;  %v3635_v42 = vld [vmem:[#allocation4 + $0x498] sm:$0xff] }
 0x3a7   :  { %v8438_v39 = vpop.f32.mrb[131].mxu1 }
 0x3a8   :  { %v3029_v45 = vadd.f32 %v3003_v43, %v2887_v44 }
 0x3a9   :  { %v2866_v46 = vpop.f32.mrb[132].mxu0 }
 0x3aa   :  { %v3008_v47 = vpop.f32.mrb[132].mxu1  ;;  %v2888_v48 = vadd.f32 %v2866_v46, %v2746_v9  ;;  %v8408_v49 = vpop.f32.mrb[133].mxu0 }
 0x3ab   :  { %v8441_v50 = vpop.f32.mrb[133].mxu1 }
 0x3ac   :  { %v3030_v51 = vadd.f32 %v3008_v47, %v2888_v48  ;;  %v9427_v47 = vpack.c.bf16 %v3493_v36, %v3492_v35  ;;  %v9436_v48 = vpack.c.bf16 %v3635_v42, %v3634_v38  ;;  %v3778_v35 = vld [vmem:[#allocation4 + $0x4d0] sm:$0xff]  ;;  %v3779_v38 = vld [vmem:[#allocation4 + $0x4d8] sm:$0xff]  ;;  %v3921_v42 = vld [vmem:[#allocation4 + $0x508] sm:$0xff] }
 0x3ad   :  { %v2871_v53 = vpop.f32.mrb[134].mxu0 }
 0x3ae   :  { %v3013_v52 = vpop.f32.mrb[134].mxu1  ;;  %v2889_v54 = vadd.f32 %v2871_v53, %v2747_v14  ;;  %v8411_v55 = vpop.f32.mrb[135].mxu0 }
 0x3af   :  { %v8444_v56 = vpop.f32.mrb[135].mxu1  ;;  %v3495_v55 = vld [vmem:[#allocation4 + $0x478] sm:$0xff] }
 0x3b0   :  { %v3031_v57 = vadd.f32 %v3013_v52, %v2889_v54  ;;  %v3494_v52 = vld [vmem:[#allocation4 + $0x470] sm:$0xff]  ;;  %v3636_v56 = vld [vmem:[#allocation4 + $0x4a0] sm:$0xff] }
 0x3b1   :  { %v2876_v58 = vpop.f32.mrb[136].mxu0 }
 0x3b2   :  { %v3018_v60 = vpop.f32.mrb[136].mxu1  ;;  %v2890_v61 = vadd.f32 %v2876_v58, %v2748_v20  ;;  %v8414_v62 = vpop.f32.mrb[137].mxu0 }
 0x3b3   :  { %v8447_v63 = vpop.f32.mrb[137].mxu1 }
 0x3b4   :  { %v10552_v2 = vadd.f32 %v3018_v60, %v2890_v61  ;;  %v9430_v63 = vpack.c.bf16 %v3495_v55, %v3494_v52 }
 0x3b5   :  { %v2881_v3 = vpop.f32.mrb[138].mxu0 }
 0x3b6   :  { %v3023_v5 = vpop.f32.mrb[138].mxu1  ;;  %v2891_v7 = vadd.f32 %v2881_v3, %v2749_v27  ;;  %v8417_v8 = vpop.f32.mrb[139].mxu0  ;;  %v3633_v27 = vld [vmem:[#allocation4 + $0x488] sm:$0xff] }
 0x3b7   :  { %v8450_v59 = vpop.f32.mrb[139].mxu1  ;;  %v9433_v37 = vpack.c.bf16 %v3633_v27, %v3632_v25  ;;  %v3776_v25 = vld [vmem:[#allocation4 + $0x4c0] sm:$0xff] }
 0x3b8   :  { %v10554_v9 = vadd.f32 %v3023_v5, %v2891_v7 }
 0x3b9   :  { %v3135_v10 = vpop.f32.mrb[140].mxu0 }
 0x3ba   :  { %v3169_v12 = vadd.f32 %v3135_v10, %v3027_v34  ;;  %v8465_v6 = vpop.f32.mrb[141].mxu0  ;;  %v9424_v34 = vpack.c.bf16 %v3491_v24, %v3490_v23  ;;  %v3917_v23 = vld [vmem:[#allocation4 + $0x4e8] sm:$0xff] }
 0x3bc   :  { %v3184_v13 = vadd.f32 %v10559_v4, %v3169_v12 }
 0x3bd   :  { %v3140_v14 = vpop.f32.mrb[142].mxu0 }
 0x3be   :  { %v3191_v15 = vmax.f32 %v3184_v13, 0.0  ;;  %v3170_v16 = vadd.f32 %v3140_v14, %v3028_v33  ;;  %v8468_v17 = vpop.f32.mrb[143].mxu0 }
 0x3c0   :  { %3205 = vst.msk [vmem:[#allocation2 + $0x8] sm:$0xff] %vm35_vm0, %v3191_v15  ;;  %v3185_v18 = vadd.f32 %v10559_v4, %v3170_v16 }
 0x3c1   :  { %v3145_v19 = vpop.f32.mrb[144].mxu0 }
 0x3c2   :  { %v3192_v20 = vmax.f32 %v3185_v18, 0.0  ;;  %v3171_v21 = vadd.f32 %v3145_v19, %v3029_v45  ;;  %v8471_v22 = vpop.f32.mrb[145].mxu0  ;;  %v3774_v18 = vld [vmem:[#allocation4 + $0x4b0] sm:$0xff]  ;;  %v3775_v19 = vld [vmem:[#allocation4 + $0x4b8] sm:$0xff] }
 0x3c3   :  { %v3916_v22 = vld [vmem:[#allocation4 + $0x4e0] sm:$0xff]  ;;  %v9442_v24 = vpack.c.bf16 %v3775_v19, %v3774_v18 }
 0x3c4   :  { %3206 = vst.msk [vmem:[#allocation2 + $0x10] sm:$0xff] %vm35_vm0, %v3192_v20  ;;  %v3186_v28 = vadd.f32 %v10559_v4, %v3171_v21 }
 0x3c5   :  { %v3150_v29 = vpop.f32.mrb[146].mxu0 }
 0x3c6   :  { %v3193_v30 = vmax.f32 %v3186_v28, 0.0  ;;  %v3172_v31 = vadd.f32 %v3150_v29, %v3030_v51  ;;  %v8474_v32 = vpop.f32.mrb[147].mxu0  ;;  %v3777_v29 = vld [vmem:[#allocation4 + $0x4c8] sm:$0xff] }
 0x3c7   :  { %v3226_v40 = vld [vmem:[#allocation2 + $0x6] sm:$0xff]  ;;  %v3919_v32 = vld [vmem:[#allocation4 + $0x4f8] sm:$0xff] }
 0x3c8   :  { %v3212_v33 = vld [vmem:[#allocation2 + $0x5] sm:$0xff]  ;;  %v3200_v43 = vmul.f32 %v10171_v26, %v3193_v30  ;;  %v3187_v44 = vadd.f32 %v10559_v4, %v3172_v31  ;;  %8497 = vmatmul.mubr.msk.f32.vlgmr.msra.gmra.mrb[140].mxu1 %vm35_vm0, %v3226_v40  ;;  %v9451_v30 = vpack.c.bf16 %v3917_v23, %v3916_v22  ;;  %v3918_v31 = vld [vmem:[#allocation4 + $0x4f0] sm:$0xff]  ;;  %v4251_v23 = vld [vmem:[#allocation4 + $0x578] sm:$0xff] }
 0x3c9   :  { %8530 = vmatmul.mubr.msk.f32.vlgmr.msra.gmra.mrb[154].mxu0 %vm35_vm0, %v3212_v33  ;;  %v3155_v41 = vpop.f32.mrb[148].mxu0  ;;  %8499 = vmatprep.mubr.msk.f32.mxu1 %vm9753_vm1, %v9752_v1  ;;  %v3482_v27 = vld [vmem:[#allocation2 + $0x7] sm:$0xff]  ;;  %v9454_v40 = vpack.c.bf16 %v3919_v32, %v3918_v31  ;;  %v4250_v22 = vld [vmem:[#allocation4 + $0x570] sm:$0xff] }
 0x3ca   :  { %8532 = vmatprep.mubr.msk.f32.mxu0 %vm9753_vm1, %v9752_v1  ;;  %3207 = vst.msk [vmem:[#allocation2 + $0x18] sm:$0xff] %vm35_vm0, %v3200_v43  ;;  %v3194_v39 = vmax.f32 %v3187_v44, 0.0  ;;  %v3173_v45 = vadd.f32 %v3155_v41, %v3031_v57  ;;  %v8477_v46 = vpop.f32.mrb[149].mxu0  ;;  %9425 = vmatpush3.bf16.msra.mxu1 %v9424_v34  ;;  %v3637_v57 = vld [vmem:[#allocation4 + $0x4a8] sm:$0xff]  ;;  %v9445_v34 = vpack.c.bf16 %v3777_v29, %v3776_v25  ;;  %v3920_v33 = vld [vmem:[#allocation4 + $0x500] sm:$0xff]  ;;  %v4238_v32 = vld [vmem:[#allocation4 + $0x550] sm:$0xff] }
 0x3cb   :  { %9434 = vmatpush3.bf16.msra.mxu0 %v9433_v37  ;;  %v3227_v49 = vld [vmem:[#allocation2 + $0xe] sm:$0xff]  ;;  %9426 = vmatprep.subr.bf16.mxu1 %v9751_v0  ;;  %v9439_v3 = vpack.c.bf16 %v3637_v57, %v3636_v56  ;;  %v9448_v43 = vpack.c.bf16 %v3779_v38, %v3778_v35  ;;  %v4060_v56 = vld [vmem:[#allocation4 + $0x520] sm:$0xff] }
 0x3cc   :  { %v3213_v50 = vld [vmem:[#allocation2 + $0xd] sm:$0xff]  ;;  %9435 = vmatprep.subr.bf16.mxu0 %v9751_v0  ;;  %v3201_v51 = vmul.f32 0.0, %v3194_v39  ;;  %v3188_v53 = vadd.f32 %v10559_v4, %v3173_v45  ;;  %8500 = vmatmul.mubr.msk.f32.gmra.mrb[142].mxu1 %vm35_vm0, %v3227_v49  ;;  %v9457_v39 = vpack.c.bf16 %v3921_v42, %v3920_v33  ;;  %v4236_v25 = vld [vmem:[#allocation4 + $0x540] sm:$0xff] }
 0x3cd   :  { %8533 = vmatmul.mubr.msk.f32.gmra.mrb[156].mxu0 %vm35_vm0, %v3213_v50  ;;  %v3160_v54 = vpop.f32.mrb[150].mxu0  ;;  %8502 = vmatprep.mubr.msk.f32.mxu1 %vm9753_vm1, %v9752_v1  ;;  %v3624_v28 = vld [vmem:[#allocation2 + $0x8] sm:$0xff]  ;;  %v3625_v37 = vld [vmem:[#allocation2 + $0x10] sm:$0xff]  ;;  %v4252_v29 = vld [vmem:[#allocation4 + $0x580] sm:$0xff] }
 0x3ce   :  { %8535 = vmatprep.mubr.msk.f32.mxu0 %vm9753_vm1, %v9752_v1  ;;  %3208 = vst.msk [vmem:[#allocation2 + $0x20] sm:$0xff] %vm35_vm0, %v3201_v51  ;;  %v3195_v58 = vmax.f32 %v3188_v53, 0.0  ;;  %v3174_v60 = vadd.f32 %v3160_v54, %v10552_v2  ;;  %v8480_v61 = vpop.f32.mrb[151].mxu0  ;;  %9428 = vmatpush3.bf16.msra.mxu1 %v9427_v47  ;;  %v3483_v36 = vld [vmem:[#allocation2 + $0xf] sm:$0xff]  ;;  %v4059_v53 = vld [vmem:[#allocation4 + $0x518] sm:$0xff]  ;;  %v4240_v38 = vld [vmem:[#allocation4 + $0x560] sm:$0xff] }
 0x3cf   :  { %9437 = vmatpush3.bf16.msra.mxu0 %v9436_v48  ;;  %9429 = vmatprep.subr.bf16.mxu1 %v9751_v0  ;;  %v4058_v51 = vld [vmem:[#allocation4 + $0x510] sm:$0xff]  ;;  %v4241_v33 = vld [vmem:[#allocation4 + $0x568] sm:$0xff] }
 0x3d0   :  { %9438 = vmatprep.subr.bf16.mxu0 %v9751_v0  ;;  %3209 = vst.msk [vmem:[#allocation2 + $0x28] sm:$0xff] %vm35_vm0, %v3195_v58  ;;  %v3189_v62 = vadd.f32 %v10559_v4, %v3174_v60  ;;  %v9460_v55 = vpack.c.bf16 %v4059_v53, %v4058_v51  ;;  %v3766_v57 = vld [vmem:[#allocation2 + $0x9] sm:$0xff]  ;;  %v9484_v42 = vpack.c.bf16 %v4241_v33, %v4240_v38 }
 0x3d1   :  { %v3165_v5 = vpop.f32.mrb[152].mxu0  ;;  %v3228_v7 = vld [vmem:[#allocation2 + $0x16] sm:$0xff]  ;;  %v3908_v58 = vld [vmem:[#allocation2 + $0xa] sm:$0xff] }
 0x3d2   :  { %v3214_v8 = vld [vmem:[#allocation2 + $0x15] sm:$0xff]  ;;  %v3196_v59 = vmax.f32 %v3189_v62, 0.0  ;;  %v3175_v10 = vadd.f32 %v3165_v5, %v10554_v9  ;;  %8503 = vmatmul.mubr.msk.f32.gmra.mrb[144].mxu1 %vm35_vm0, %v3228_v7  ;;  %v8483_v2 = vpop.f32.mrb[153].mxu0  ;;  %v4061_v60 = vld [vmem:[#allocation4 + $0x528] sm:$0xff] }
 0x3d3   :  { %8536 = vmatmul.mubr.msk.f32.gmra.mrb[158].mxu0 %vm35_vm0, %v3214_v8  ;;  %8505 = vmatprep.mubr.msk.f32.mxu1 %vm9753_vm1, %v9752_v1  ;;  %v3484_v44 = vld [vmem:[#allocation2 + $0x17] sm:$0xff]  ;;  %v9463_v61 = vpack.c.bf16 %v4061_v60, %v4060_v56 }
 0x3d4   :  { %8538 = vmatprep.mubr.msk.f32.mxu0 %vm9753_vm1, %v9752_v1  ;;  %3210 = vst.msk [vmem:[#allocation2 + $0x30] sm:$0xff] %vm35_vm0, %v3196_v59  ;;  %v3190_v12 = vadd.f32 %v10559_v4, %v3175_v10  ;;  %9431 = vmatpush3.bf16.msra.mxu1 %v9430_v63  ;;  %v3626_v41 = vld [vmem:[#allocation2 + $0x18] sm:$0xff]  ;;  %v4062_v62 = vld [vmem:[#allocation4 + $0x530] sm:$0xff] }
 0x3d5   :  { %9440 = vmatpush3.bf16.msra.mxu0 %v9439_v3  ;;  %v3229_v6 = vld [vmem:[#allocation2 + $0x1e] sm:$0xff]  ;;  %9441 = vmatprep.subr.bf16.mxu1 %v9751_v0  ;;  %v3767_v63 = vld [vmem:[#allocation2 + $0x11] sm:$0xff] }
 0x3d6   :  { %v3215_v13 = vld [vmem:[#allocation2 + $0x1d] sm:$0xff]  ;;  %9450 = vmatprep.subr.bf16.mxu0 %v9751_v0  ;;  %v3197_v9 = vmax.f32 %v3190_v12, 0.0  ;;  %8506 = vmatmul.mubr.msk.f32.gmra.mrb[146].mxu1 %vm35_vm0, %v3229_v6  ;;  %v3909_v3 = vld [vmem:[#allocation2 + $0x12] sm:$0xff] }
 0x3d7   :  { %8539 = vmatmul.mubr.msk.f32.gmra.mrb[160].mxu0 %vm35_vm0, %v3215_v13  ;;  %8508 = vmatprep.mubr.msk.f32.mxu1 %vm9753_vm1, %v9752_v1  ;;  %v3230_v14 = vld [vmem:[#allocation2 + $0x26] sm:$0xff]  ;;  %v4063_v5 = vld [vmem:[#allocation4 + $0x538] sm:$0xff] }
 0x3d8   :  { %8541 = vmatprep.mubr.msk.f32.mxu0 %vm9753_vm1, %v9752_v1  ;;  %v3204_v4 = vmul.f32 %v10207_v11, %v3197_v9  ;;  %v3216_v15 = vld [vmem:[#allocation2 + $0x25] sm:$0xff]  ;;  %v9466_v7 = vpack.c.bf16 %v4063_v5, %v4062_v62  ;;  %v3768_v8 = vld [vmem:[#allocation2 + $0x19] sm:$0xff] }
 0x3d9   :  { %v3485_v45 = vld [vmem:[#allocation2 + $0x1f] sm:$0xff]  ;;  %v3486_v47 = vld [vmem:[#allocation2 + $0x27] sm:$0xff] }
 0x3da   :  { %3211 = vst.msk [vmem:[#allocation2 + $0x38] sm:$0x3] %vm1178_vm4, %v3204_v4  ;;  %8509 = vmatmul.mubr.msk.f32.gmra.mrb[148].mxu1 %vm35_vm0, %v3230_v14  ;;  %v3627_v46 = vld [vmem:[#allocation2 + $0x20] sm:$0xff]  ;;  %v3628_v48 = vld [vmem:[#allocation2 + $0x28] sm:$0xff]  ;;  %v3914_v4 = vld [vmem:[#allocation2 + $0x3a] sm:$0x3] }
 0x3db   :  { %8542 = vmatmul.mubr.msk.f32.gmra.mrb[162].mxu0 %vm35_vm0, %v3216_v15  ;;  %8511 = vmatprep.mubr.msk.f32.mxu1 %vm9753_vm1, %v9752_v1  ;;  %v3231_v16 = vld [vmem:[#allocation2 + $0x2e] sm:$0xff]  ;;  %v3232_v20 = vld [vmem:[#allocation2 + $0x36] sm:$0x3]  ;;  %v3910_v59 = vld [vmem:[#allocation2 + $0x1a] sm:$0xff] }
 0x3dc   :  { %8544 = vmatprep.mubr.msk.f32.mxu0 %vm9753_vm1, %v9752_v1  ;;  %v3217_v17 = vld [vmem:[#allocation2 + $0x2d] sm:$0xff]  ;;  %v3218_v21 = vld [vmem:[#allocation2 + $0x35] sm:$0x3]  ;;  %v3769_v10 = vld [vmem:[#allocation2 + $0x21] sm:$0xff] }
 0x3dd   :  { %v3487_v49 = vld [vmem:[#allocation2 + $0x2f] sm:$0xff]  ;;  %v3911_v2 = vld [vmem:[#allocation2 + $0x22] sm:$0xff] }
 0x3de   :  { %8512 = vmatmul.mubr.msk.f32.gmra.mrb[150].mxu1 %vm35_vm0, %v3231_v16  ;;  %v3629_v50 = vld [vmem:[#allocation2 + $0x30] sm:$0xff]  ;;  %v4053_v18 = vld [vmem:[#allocation2 + $0x23] sm:$0xff] }
 0x3df   :  { %8545 = vmatmul.mubr.msk.f32.gmra.mrb[164].mxu0 %vm35_vm0, %v3217_v17  ;;  %8514 = vmatprep.mubr.msk.f32.mxu1 %vm9753_vm1, %v9752_v1  ;;  %v3770_v12 = vld [vmem:[#allocation2 + $0x29] sm:$0xff]  ;;  %v4051_v16 = vld [vmem:[#allocation2 + $0x13] sm:$0xff]  ;;  %v4052_v17 = vld [vmem:[#allocation2 + $0x1b] sm:$0xff] }
 0x3e0   :  { %8547 = vmatprep.mubr.msk.f32.mxu0 %vm9753_vm1, %v9752_v1  ;;  %v3912_v6 = vld [vmem:[#allocation2 + $0x2a] sm:$0xff] }
 0x3e1   :  { %v3488_v52 = vld [vmem:[#allocation2 + $0x37] sm:$0x3]  ;;  %v3772_v14 = vld [vmem:[#allocation2 + $0x39] sm:$0x3]  ;;  %v4050_v15 = vld [vmem:[#allocation2 + $0xb] sm:$0xff] }
 0x3e2   :  { %8515 = vmatmul.mubr.msk.f32.gmra.mrb[152].mxu1 %vm35_vm0, %v3232_v20  ;;  %v3630_v54 = vld [vmem:[#allocation2 + $0x38] sm:$0x3]  ;;  %v4054_v19 = vld [vmem:[#allocation2 + $0x2b] sm:$0xff] }
 0x3e3   :  { %8548 = vmatmul.mubr.msk.f32.gmra.mrb[166].mxu0 %vm35_vm0, %v3218_v21  ;;  %8562 = vmatprep.mubr.msk.f32.mxu1 %vm9753_vm1, %v9752_v1  ;;  %v3771_v13 = vld [vmem:[#allocation2 + $0x31] sm:$0xff]  ;;  %v4056_v21 = vld [vmem:[#allocation2 + $0x3b] sm:$0x3] }
 0x3e4   :  { %8595 = vmatprep.mubr.msk.f32.mxu0 %vm9753_vm1, %v9752_v1  ;;  %v3913_v9 = vld [vmem:[#allocation2 + $0x32] sm:$0xff] }
 0x3e5   :  { %v4055_v20 = vld [vmem:[#allocation2 + $0x33] sm:$0xff] }
 0x3e6   :  { %8563 = vmatmul.mubr.msk.f32.vlgmr.msra.gmra.mrb[154].mxu1 %vm35_vm0, %v3482_v27  ;;  %v4237_v27 = vld [vmem:[#allocation4 + $0x548] sm:$0xff] }
 0x3e7   :  { %8596 = vmatmul.mubr.msk.f32.vlgmr.msra.gmra.mrb[168].mxu0 %vm35_vm0, %v3624_v28  ;;  %9443 = vmatpush3.bf16.msra.mxu1 %v9442_v24  ;;  %v9469_v24 = vpack.c.bf16 %v4251_v23, %v4250_v22  ;;  %v9478_v28 = vpack.c.bf16 %v4237_v27, %v4236_v25 }
 0x3e8   :  { %8565 = vmatprep.mubr.msk.f32.mxu1 %vm9753_vm1, %v9752_v1  ;;  %8598 = vmatprep.mubr.msk.f32.mxu0 %vm9753_vm1, %v9752_v1 }
 0x3e9   :  { %9444 = vmatprep.subr.bf16.mxu1 %v9751_v0  ;;  %9452 = vmatpush3.bf16.msra.mxu0 %v9451_v30  ;;  %v4253_v30 = vld [vmem:[#allocation4 + $0x588] sm:$0xff] }
 0x3ea   :  { %8566 = vmatmul.mubr.msk.f32.gmra.mrb[156].mxu1 %vm35_vm0, %v3483_v36  ;;  %9453 = vmatprep.subr.bf16.mxu0 %v9751_v0  ;;  %v9472_v31 = vpack.c.bf16 %v4253_v30, %v4252_v29  ;;  %v4254_v36 = vld [vmem:[#allocation4 + $0x590] sm:$0xff] }
 0x3eb   :  { %8599 = vmatmul.mubr.msk.f32.gmra.mrb[170].mxu0 %vm35_vm0, %v3625_v37  ;;  %8568 = vmatprep.mubr.msk.f32.mxu1 %vm9753_vm1, %v9752_v1  ;;  %v4255_v37 = vld [vmem:[#allocation4 + $0x598] sm:$0xff] }
 0x3ec   :  { %8601 = vmatprep.mubr.msk.f32.mxu0 %vm9753_vm1, %v9752_v1  ;;  %9446 = vmatpush3.bf16.msra.mxu1 %v9445_v34  ;;  %v4239_v34 = vld [vmem:[#allocation4 + $0x558] sm:$0xff] }
 0x3ed   :  { %9447 = vmatprep.subr.bf16.mxu1 %v9751_v0  ;;  %9455 = vmatpush3.bf16.msra.mxu0 %v9454_v40  ;;  %v9481_v35 = vpack.c.bf16 %v4239_v34, %v4238_v32  ;;  %v9475_v40 = vpack.c.bf16 %v4255_v37, %v4254_v36 }
 0x3ee   :  { %8569 = vmatmul.mubr.msk.f32.gmra.mrb[158].mxu1 %vm35_vm0, %v3484_v44  ;;  %9456 = vmatprep.subr.bf16.mxu0 %v9751_v0 }
 0x3ef   :  { %8602 = vmatmul.mubr.msk.f32.gmra.mrb[172].mxu0 %vm35_vm0, %v3626_v41  ;;  %8571 = vmatprep.mubr.msk.f32.mxu1 %vm9753_vm1, %v9752_v1 }
 0x3f0   :  { %8604 = vmatprep.mubr.msk.f32.mxu0 %vm9753_vm1, %v9752_v1  ;;  %9449 = vmatpush3.bf16.msra.mxu1 %v9448_v43 }
 0x3f1   :  { %9458 = vmatpush3.bf16.msra.mxu0 %v9457_v39  ;;  %9459 = vmatprep.subr.bf16.mxu1 %v9751_v0 }
 0x3f2   :  { %8572 = vmatmul.mubr.msk.f32.gmra.mrb[160].mxu1 %vm35_vm0, %v3485_v45  ;;  %9468 = vmatprep.subr.bf16.mxu0 %v9751_v0 }
 0x3f3   :  { %8605 = vmatmul.mubr.msk.f32.gmra.mrb[174].mxu0 %vm35_vm0, %v3627_v46  ;;  %8574 = vmatprep.mubr.msk.f32.mxu1 %vm9753_vm1, %v9752_v1 }
 0x3f4   :  { %8607 = vmatprep.mubr.msk.f32.mxu0 %vm9753_vm1, %v9752_v1 }
 0x3f6   :  { %8575 = vmatmul.mubr.msk.f32.gmra.mrb[162].mxu1 %vm35_vm0, %v3486_v47 }
 0x3f7   :  { %8608 = vmatmul.mubr.msk.f32.gmra.mrb[176].mxu0 %vm35_vm0, %v3628_v48  ;;  %8577 = vmatprep.mubr.msk.f32.mxu1 %vm9753_vm1, %v9752_v1 }
 0x3f8   :  { %8610 = vmatprep.mubr.msk.f32.mxu0 %vm9753_vm1, %v9752_v1 }
 0x3fa   :  { %8578 = vmatmul.mubr.msk.f32.gmra.mrb[164].mxu1 %vm35_vm0, %v3487_v49 }
 0x3fb   :  { %8611 = vmatmul.mubr.msk.f32.gmra.mrb[178].mxu0 %vm35_vm0, %v3629_v50  ;;  %8580 = vmatprep.mubr.msk.f32.mxu1 %vm9753_vm1, %v9752_v1 }
 0x3fc   :  { %8613 = vmatprep.mubr.msk.f32.mxu0 %vm9753_vm1, %v9752_v1 }
 0x3fe   :  { %8581 = vmatmul.mubr.msk.f32.gmra.mrb[166].mxu1 %vm35_vm0, %v3488_v52 }
 0x3ff   :  { %8614 = vmatmul.mubr.msk.f32.gmra.mrb[180].mxu0 %vm35_vm0, %v3630_v54  ;;  %8628 = vmatprep.mubr.msk.f32.mxu1 %vm9753_vm1, %v9752_v1 }
 0x400   :  { %8661 = vmatprep.mubr.msk.f32.mxu0 %vm9753_vm1, %v9752_v1 }
 0x402   :  { %8629 = vmatmul.mubr.msk.f32.vlgmr.msra.gmra.mrb[168].mxu1 %vm35_vm0, %v3766_v57 }
 0x403   :  { %8662 = vmatmul.mubr.msk.f32.vlgmr.msra.gmra.mrb[182].mxu0 %vm35_vm0, %v3908_v58  ;;  %9461 = vmatpush3.bf16.msra.mxu1 %v9460_v55 }
 0x404   :  { %8631 = vmatprep.mubr.msk.f32.mxu1 %vm9753_vm1, %v9752_v1  ;;  %8664 = vmatprep.mubr.msk.f32.mxu0 %vm9753_vm1, %v9752_v1 }
 0x405   :  { %9462 = vmatprep.subr.bf16.mxu1 %v9751_v0  ;;  %9470 = vmatpush3.bf16.msra.mxu0 %v9469_v24 }
 0x406   :  { %8632 = vmatmul.mubr.msk.f32.gmra.mrb[170].mxu1 %vm35_vm0, %v3767_v63  ;;  %9471 = vmatprep.subr.bf16.mxu0 %v9751_v0 }
 0x407   :  { %8665 = vmatmul.mubr.msk.f32.gmra.mrb[184].mxu0 %vm35_vm0, %v3909_v3  ;;  %8634 = vmatprep.mubr.msk.f32.mxu1 %vm9753_vm1, %v9752_v1 }
 0x408   :  { %8667 = vmatprep.mubr.msk.f32.mxu0 %vm9753_vm1, %v9752_v1  ;;  %9464 = vmatpush3.bf16.msra.mxu1 %v9463_v61 }
 0x409   :  { %9465 = vmatprep.subr.bf16.mxu1 %v9751_v0  ;;  %9473 = vmatpush3.bf16.msra.mxu0 %v9472_v31 }
 0x40a   :  { %8635 = vmatmul.mubr.msk.f32.gmra.mrb[172].mxu1 %vm35_vm0, %v3768_v8  ;;  %9474 = vmatprep.subr.bf16.mxu0 %v9751_v0 }
 0x40b   :  { %8668 = vmatmul.mubr.msk.f32.gmra.mrb[186].mxu0 %vm35_vm0, %v3910_v59  ;;  %8637 = vmatprep.mubr.msk.f32.mxu1 %vm9753_vm1, %v9752_v1 }
 0x40c   :  { %8670 = vmatprep.mubr.msk.f32.mxu0 %vm9753_vm1, %v9752_v1  ;;  %9467 = vmatpush3.bf16.msra.mxu1 %v9466_v7 }
 0x40d   :  { %9477 = vmatprep.subr.bf16.mxu1 %v9751_v0  ;;  %9476 = vmatpush3.bf16.msra.mxu0 %v9475_v40 }
 0x40e   :  { %8638 = vmatmul.mubr.msk.f32.gmra.mrb[174].mxu1 %vm35_vm0, %v3769_v10  ;;  %9486 = vmatprep.subr.bf16.mxu0 %v9751_v0 }
 0x40f   :  { %8671 = vmatmul.mubr.msk.f32.gmra.mrb[188].mxu0 %vm35_vm0, %v3911_v2  ;;  %8640 = vmatprep.mubr.msk.f32.mxu1 %vm9753_vm1, %v9752_v1 }
 0x410   :  { %8673 = vmatprep.mubr.msk.f32.mxu0 %vm9753_vm1, %v9752_v1 }
 0x412   :  { %8641 = vmatmul.mubr.msk.f32.gmra.mrb[176].mxu1 %vm35_vm0, %v3770_v12 }
 0x413   :  { %8674 = vmatmul.mubr.msk.f32.gmra.mrb[190].mxu0 %vm35_vm0, %v3912_v6  ;;  %8643 = vmatprep.mubr.msk.f32.mxu1 %vm9753_vm1, %v9752_v1 }
 0x414   :  { %8676 = vmatprep.mubr.msk.f32.mxu0 %vm9753_vm1, %v9752_v1 }
 0x416   :  { %8644 = vmatmul.mubr.msk.f32.gmra.mrb[178].mxu1 %vm35_vm0, %v3771_v13 }
 0x417   :  { %8677 = vmatmul.mubr.msk.f32.gmra.mrb[192].mxu0 %vm35_vm0, %v3913_v9  ;;  %8646 = vmatprep.mubr.msk.f32.mxu1 %vm9753_vm1, %v9752_v1 }
 0x418   :  { %8679 = vmatprep.mubr.msk.f32.mxu0 %vm9753_vm1, %v9752_v1 }
 0x41a   :  { %8647 = vmatmul.mubr.msk.f32.gmra.mrb[180].mxu1 %vm35_vm0, %v3772_v14 }
 0x41b   :  { %8680 = vmatmul.mubr.msk.f32.gmra.mrb[194].mxu0 %vm35_vm0, %v3914_v4  ;;  %8694 = vmatprep.mubr.msk.f32.mxu1 %vm9753_vm1, %v9752_v1 }
 0x41c   :  { %8727 = vmatprep.mubr.msk.f32.mxu0 %vm9753_vm1, %v9752_v1 }
 0x41e   :  { %8695 = vmatmul.mubr.msk.f32.vlgmr.msra.gmra.mrb[182].mxu1 %vm35_vm0, %v4050_v15 }
 0x41f   :  { %8697 = vmatprep.mubr.msk.f32.mxu1 %vm9753_vm1, %v9752_v1  ;;  %9479 = vmatpush3.bf16.msra.mxu1 %v9478_v28 }
 0x420   :  { %9480 = vmatprep.subr.bf16.mxu1 %v9751_v0 }
 0x422   :  { %8698 = vmatmul.mubr.msk.f32.gmra.mrb[184].mxu1 %vm35_vm0, %v4051_v16 }
 0x423   :  { %8700 = vmatprep.mubr.msk.f32.mxu1 %vm9753_vm1, %v9752_v1  ;;  %9482 = vmatpush3.bf16.msra.mxu1 %v9481_v35 }
 0x424   :  { %9483 = vmatprep.subr.bf16.mxu1 %v9751_v0 }
 0x426   :  { %8701 = vmatmul.mubr.msk.f32.gmra.mrb[186].mxu1 %vm35_vm0, %v4052_v17 }
 0x427   :  { %8703 = vmatprep.mubr.msk.f32.mxu1 %vm9753_vm1, %v9752_v1  ;;  %9485 = vmatpush3.bf16.msra.mxu1 %v9484_v42 }
 0x428   :  { %9495 = vmatprep.subr.bf16.mxu1 %v9751_v0 }
 0x42a   :  { %8704 = vmatmul.mubr.msk.f32.gmra.mrb[188].mxu1 %vm35_vm0, %v4053_v18 }
 0x42b   :  { %8706 = vmatprep.mubr.msk.f32.mxu1 %vm9753_vm1, %v9752_v1 }
 0x42e   :  { %8707 = vmatmul.mubr.msk.f32.gmra.mrb[190].mxu1 %vm35_vm0, %v4054_v19 }
 0x42f   :  { %8709 = vmatprep.mubr.msk.f32.mxu1 %vm9753_vm1, %v9752_v1 }
 0x432   :  { %8710 = vmatmul.mubr.msk.f32.gmra.mrb[192].mxu1 %vm35_vm0, %v4055_v20 }
 0x433   :  { %8712 = vmatprep.mubr.msk.f32.mxu1 %vm9753_vm1, %v9752_v1 }
 0x436   :  { %8713 = vmatmul.mubr.msk.f32.gmra.mrb[194].mxu1 %vm35_vm0, %v4056_v21 }
 0x437   :  { %8760 = vmatprep.mubr.msk.f32.mxu1 %vm9753_vm1, %v9752_v1 }
 0x49b   :  { %v3327_v43 = vpop.f32.mrb[140].mxu1 }
 0x49c   :  { %v3448_v44 = vpop.f32.mrb[154].mxu0  ;;  %v8498_v39 = vpop.f32.mrb[141].mxu1 }
 0x49d   :  { %v3449_v41 = vadd.f32 %v3448_v44, %v3327_v43  ;;  %v8531_v45 = vpop.f32.mrb[155].mxu0 }
 0x49f   :  { %v3332_v46 = vpop.f32.mrb[142].mxu1 }
 0x4a0   :  { %v3453_v47 = vpop.f32.mrb[156].mxu0  ;;  %v8501_v49 = vpop.f32.mrb[143].mxu1 }
 0x4a1   :  { %v3454_v48 = vadd.f32 %v3453_v47, %v3332_v46  ;;  %v8534_v50 = vpop.f32.mrb[157].mxu0 }
 0x4a5   :  { %v3337_v51 = vpop.f32.mrb[144].mxu1 }
 0x4a6   :  { %v3458_v53 = vpop.f32.mrb[158].mxu0  ;;  %v8504_v54 = vpop.f32.mrb[145].mxu1 }
 0x4a7   :  { %v3459_v52 = vadd.f32 %v3458_v53, %v3337_v51  ;;  %v8537_v55 = vpop.f32.mrb[159].mxu0 }
 0x4a9   :  { %v3342_v56 = vpop.f32.mrb[146].mxu1 }
 0x4aa   :  { %v3463_v57 = vpop.f32.mrb[160].mxu0  ;;  %v8507_v60 = vpop.f32.mrb[147].mxu1 }
 0x4ab   :  { %v3464_v58 = vadd.f32 %v3463_v57, %v3342_v56  ;;  %v8540_v61 = vpop.f32.mrb[161].mxu0 }
 0x4ad   :  { %v3347_v62 = vpop.f32.mrb[148].mxu1 }
 0x4ae   :  { %v3468_v63 = vpop.f32.mrb[162].mxu0  ;;  %v8510_v5 = vpop.f32.mrb[149].mxu1 }
 0x4af   :  { %v3469_v3 = vadd.f32 %v3468_v63, %v3347_v62  ;;  %v8543_v7 = vpop.f32.mrb[163].mxu0 }
 0x4b1   :  { %v3352_v8 = vpop.f32.mrb[150].mxu1 }
 0x4b2   :  { %v3473_v59 = vpop.f32.mrb[164].mxu0  ;;  %v8513_v2 = vpop.f32.mrb[151].mxu1 }
 0x4b3   :  { %v3474_v10 = vadd.f32 %v3473_v59, %v3352_v8  ;;  %v8546_v12 = vpop.f32.mrb[165].mxu0 }
 0x4b5   :  { %v3357_v6 = vpop.f32.mrb[152].mxu1 }
 0x4b6   :  { %v3478_v13 = vpop.f32.mrb[166].mxu0  ;;  %v8516_v4 = vpop.f32.mrb[153].mxu1 }
 0x4b7   :  { %v3479_v9 = vadd.f32 %v3478_v13, %v3357_v6  ;;  %v8549_v14 = vpop.f32.mrb[167].mxu0 }
 0x4b9   :  { %v3583_v15 = vpop.f32.mrb[154].mxu1 }
 0x4ba   :  { %v3725_v16 = vpop.f32.mrb[168].mxu0  ;;  %v3617_v17 = vadd.f32 %v3583_v15, %v3449_v41  ;;  %v8564_v18 = vpop.f32.mrb[155].mxu1 }
 0x4bb   :  { %v8597_v19 = vpop.f32.mrb[169].mxu0 }
 0x4bc   :  { %v3759_v20 = vadd.f32 %v3725_v16, %v3617_v17 }
 0x4bd   :  { %v3588_v21 = vpop.f32.mrb[156].mxu1 }
 0x4be   :  { %v3730_v22 = vpop.f32.mrb[170].mxu0  ;;  %v3618_v23 = vadd.f32 %v3588_v21, %v3454_v48  ;;  %v8567_v24 = vpop.f32.mrb[157].mxu1 }
 0x4bf   :  { %v8600_v25 = vpop.f32.mrb[171].mxu0 }
 0x4c0   :  { %v3760_v27 = vadd.f32 %v3730_v22, %v3618_v23 }
 0x4c1   :  { %v3593_v28 = vpop.f32.mrb[158].mxu1 }
 0x4c2   :  { %v3735_v29 = vpop.f32.mrb[172].mxu0  ;;  %v3619_v30 = vadd.f32 %v3593_v28, %v3459_v52  ;;  %v8570_v31 = vpop.f32.mrb[159].mxu1 }
 0x4c3   :  { %v8603_v32 = vpop.f32.mrb[173].mxu0 }
 0x4c4   :  { %v3761_v34 = vadd.f32 %v3735_v29, %v3619_v30 }
 0x4c5   :  { %v3598_v35 = vpop.f32.mrb[160].mxu1 }
 0x4c6   :  { %v3740_v36 = vpop.f32.mrb[174].mxu0  ;;  %v3620_v37 = vadd.f32 %v3598_v35, %v3464_v58  ;;  %v8573_v38 = vpop.f32.mrb[161].mxu1 }
 0x4c7   :  { %v8606_v40 = vpop.f32.mrb[175].mxu0 }
 0x4c8   :  { %v3762_v33 = vadd.f32 %v3740_v36, %v3620_v37 }
 0x4c9   :  { %v3603_v42 = vpop.f32.mrb[162].mxu1 }
 0x4ca   :  { %v3745_v43 = vpop.f32.mrb[176].mxu0  ;;  %v3621_v44 = vadd.f32 %v3603_v42, %v3469_v3  ;;  %v8576_v41 = vpop.f32.mrb[163].mxu1 }
 0x4cb   :  { %v8609_v39 = vpop.f32.mrb[177].mxu0 }
 0x4cc   :  { %v3763_v45 = vadd.f32 %v3745_v43, %v3621_v44  ;;  %v10754_v43 = vld [vmem:[%s11409_s2 + $0x3] ss:$0 sm:$0xff] }
 0x4cd   :  { %v3608_v46 = vpop.f32.mrb[164].mxu1 }
 0x4ce   :  { %v3750_v47 = vpop.f32.mrb[178].mxu0  ;;  %v3622_v48 = vadd.f32 %v3608_v46, %v3474_v10  ;;  %v8579_v49 = vpop.f32.mrb[165].mxu1 }
 0x4cf   :  { %v8612_v50 = vpop.f32.mrb[179].mxu0 }
 0x4d0   :  { %v3764_v51 = vadd.f32 %v3750_v47, %v3622_v48 }
 0x4d1   :  { %v3613_v53 = vpop.f32.mrb[166].mxu1 }
 0x4d2   :  { %v3755_v52 = vpop.f32.mrb[180].mxu0  ;;  %v3623_v54 = vadd.f32 %v3613_v53, %v3479_v9  ;;  %v8582_v55 = vpop.f32.mrb[167].mxu1 }
 0x4d3   :  { %v8615_v56 = vpop.f32.mrb[181].mxu0  ;;  %v4507_v55 = vld [vmem:[#allocation4 + $0x5a8] sm:$0xff] }
 0x4d4   :  { %v3765_v57 = vadd.f32 %v3755_v52, %v3623_v54  ;;  %v4506_v54 = vld [vmem:[#allocation4 + $0x5a0] sm:$0xff]  ;;  %v4648_v56 = vld [vmem:[#allocation4 + $0x5d0] sm:$0xff] }
 0x4d5   :  { %v3867_v58 = vpop.f32.mrb[168].mxu1 }
 0x4d6   :  { %v4009_v60 = vpop.f32.mrb[182].mxu0  ;;  %v3901_v61 = vadd.f32 %v3867_v58, %v3759_v20  ;;  %v8630_v62 = vpop.f32.mrb[169].mxu1 }
 0x4d7   :  { %v8663_v63 = vpop.f32.mrb[183].mxu0 }
 0x4d8   :  { %v4043_v3 = vadd.f32 %v4009_v60, %v3901_v61 }
 0x4d9   :  { %v3872_v5 = vpop.f32.mrb[170].mxu1 }
 0x4da   :  { %v4014_v7 = vpop.f32.mrb[184].mxu0  ;;  %v3902_v8 = vadd.f32 %v3872_v5, %v3760_v27  ;;  %v8633_v59 = vpop.f32.mrb[171].mxu1  ;;  %v4508_v5 = vld [vmem:[#allocation4 + $0x5b0] sm:$0xff] }
 0x4db   :  { %v8666_v10 = vpop.f32.mrb[185].mxu0  ;;  %v4650_v59 = vld [vmem:[#allocation4 + $0x5e0] sm:$0xff] }
 0x4dc   :  { %v4044_v2 = vadd.f32 %v4014_v7, %v3902_v8  ;;  %v4509_v7 = vld [vmem:[#allocation4 + $0x5b8] sm:$0xff] }
 0x4dd   :  { %v3877_v12 = vpop.f32.mrb[172].mxu1 }
 0x4de   :  { %v4019_v6 = vpop.f32.mrb[186].mxu0  ;;  %v3903_v13 = vadd.f32 %v3877_v12, %v3761_v34  ;;  %v8636_v4 = vpop.f32.mrb[173].mxu1  ;;  %v4651_v12 = vld [vmem:[#allocation4 + $0x5e8] sm:$0xff] }
 0x4df   :  { %v8669_v9 = vpop.f32.mrb[187].mxu0 }
 0x4e0   :  { %v4045_v14 = vadd.f32 %v4019_v6, %v3903_v13 }
 0x4e1   :  { %v3882_v15 = vpop.f32.mrb[174].mxu1 }
 0x4e2   :  { %v4024_v16 = vpop.f32.mrb[188].mxu0  ;;  %v3904_v17 = vadd.f32 %v3882_v15, %v3762_v33  ;;  %v8639_v18 = vpop.f32.mrb[175].mxu1 }
 0x4e3   :  { %v8672_v19 = vpop.f32.mrb[189].mxu0 }
 0x4e4   :  { %v4046_v20 = vadd.f32 %v4024_v16, %v3904_v17  ;;  %v9490_v16 = vpack.c.bf16 %v4509_v7, %v4508_v5  ;;  %v9499_v17 = vpack.c.bf16 %v4651_v12, %v4650_v59  ;;  %v4794_v5 = vld [vmem:[#allocation4 + $0x620] sm:$0xff]  ;;  %v4795_v59 = vld [vmem:[#allocation4 + $0x628] sm:$0xff]  ;;  %v4937_v12 = vld [vmem:[#allocation4 + $0x658] sm:$0xff] }
 0x4e5   :  { %v3887_v21 = vpop.f32.mrb[176].mxu1 }
 0x4e6   :  { %v4029_v22 = vpop.f32.mrb[190].mxu0  ;;  %v3905_v23 = vadd.f32 %v3887_v21, %v3763_v45  ;;  %v8642_v24 = vpop.f32.mrb[177].mxu1 }
 0x4e7   :  { %v8675_v25 = vpop.f32.mrb[191].mxu0  ;;  %v4511_v24 = vld [vmem:[#allocation4 + $0x5c8] sm:$0xff] }
 0x4e8   :  { %v4047_v27 = vadd.f32 %v4029_v22, %v3905_v23  ;;  %v4510_v22 = vld [vmem:[#allocation4 + $0x5c0] sm:$0xff]  ;;  %v4652_v25 = vld [vmem:[#allocation4 + $0x5f0] sm:$0xff] }
 0x4e9   :  { %v3892_v28 = vpop.f32.mrb[178].mxu1 }
 0x4ea   :  { %v4034_v29 = vpop.f32.mrb[192].mxu0  ;;  %v3906_v30 = vadd.f32 %v3892_v28, %v3764_v51  ;;  %v8645_v31 = vpop.f32.mrb[179].mxu1 }
 0x4eb   :  { %v8678_v32 = vpop.f32.mrb[193].mxu0 }
 0x4ec   :  { %v10747_v34 = vadd.f32 %v4034_v29, %v3906_v30  ;;  %v9493_v32 = vpack.c.bf16 %v4511_v24, %v4510_v22 }
 0x4ed   :  { %v3897_v35 = vpop.f32.mrb[180].mxu1 }
 0x4ee   :  { %v4039_v36 = vpop.f32.mrb[194].mxu0  ;;  %v3907_v37 = vadd.f32 %v3897_v35, %v3765_v57  ;;  %v8648_v38 = vpop.f32.mrb[181].mxu1  ;;  %v4649_v57 = vld [vmem:[#allocation4 + $0x5d8] sm:$0xff] }
 0x4ef   :  { %v8681_v40 = vpop.f32.mrb[195].mxu0  ;;  %v9496_v8 = vpack.c.bf16 %v4649_v57, %v4648_v56  ;;  %v4792_v56 = vld [vmem:[#allocation4 + $0x610] sm:$0xff] }
 0x4f0   :  { %v10749_v33 = vadd.f32 %v4039_v36, %v3907_v37 }
 0x4f1   :  { %v4151_v42 = vpop.f32.mrb[182].mxu1 }
 0x4f2   :  { %v4185_v44 = vadd.f32 %v4151_v42, %v4043_v3  ;;  %v8696_v41 = vpop.f32.mrb[183].mxu1  ;;  %v9487_v3 = vpack.c.bf16 %v4507_v55, %v4506_v54  ;;  %v4933_v54 = vld [vmem:[#allocation4 + $0x638] sm:$0xff] }
 0x4f4   :  { %v4200_v39 = vadd.f32 %v10754_v43, %v4185_v44 }
 0x4f5   :  { %v4156_v45 = vpop.f32.mrb[184].mxu1 }
 0x4f6   :  { %v4207_v46 = vmax.f32 %v4200_v39, 0.0  ;;  %v4186_v47 = vadd.f32 %v4156_v45, %v4044_v2  ;;  %v8699_v48 = vpop.f32.mrb[185].mxu1 }
 0x4f8   :  { %4221 = vst.msk [vmem:[#allocation3 + $0x8] sm:$0xff] %vm35_vm0, %v4207_v46  ;;  %v4201_v49 = vadd.f32 %v10754_v43, %v4186_v47 }
 0x4f9   :  { %v4161_v50 = vpop.f32.mrb[186].mxu1 }
 0x4fa   :  { %v4208_v51 = vmax.f32 %v4201_v49, 0.0  ;;  %v4187_v53 = vadd.f32 %v4161_v50, %v4045_v14  ;;  %v8702_v52 = vpop.f32.mrb[187].mxu1  ;;  %v4790_v49 = vld [vmem:[#allocation4 + $0x600] sm:$0xff]  ;;  %v4791_v50 = vld [vmem:[#allocation4 + $0x608] sm:$0xff] }
 0x4fb   :  { %v4932_v52 = vld [vmem:[#allocation4 + $0x630] sm:$0xff]  ;;  %v9505_v55 = vpack.c.bf16 %v4791_v50, %v4790_v49 }
 0x4fc   :  { %4222 = vst.msk [vmem:[#allocation3 + $0x10] sm:$0xff] %vm35_vm0, %v4208_v51  ;;  %v4202_v58 = vadd.f32 %v10754_v43, %v4187_v53 }
 0x4fd   :  { %v4166_v60 = vpop.f32.mrb[188].mxu1 }
 0x4fe   :  { %v4209_v61 = vmax.f32 %v4202_v58, 0.0  ;;  %v4188_v62 = vadd.f32 %v4166_v60, %v4046_v20  ;;  %v8705_v63 = vpop.f32.mrb[189].mxu1  ;;  %v4793_v60 = vld [vmem:[#allocation4 + $0x618] sm:$0xff] }
 0x4ff   :  { %v4242_v10 = vld [vmem:[#allocation3 + $0x6] sm:$0xff] }
 0x500   :  { %v4228_v2 = vld [vmem:[#allocation3 + $0x5] sm:$0xff]  ;;  %v4216_v6 = vmul.f32 %v10171_v26, %v4209_v61  ;;  %v4203_v13 = vadd.f32 %v10754_v43, %v4188_v62  ;;  %8728 = vmatmul.mubr.msk.f32.vlgmr.msra.gmra.mrb[196].mxu0 %vm35_vm0, %v4242_v10  ;;  %v9514_v61 = vpack.c.bf16 %v4933_v54, %v4932_v52  ;;  %v7089_v52 = vld [vmem:[%s11410_s3 + $0x30] sm:$0xff]  ;;  %v7090_v54 = vld [vmem:[%s11410_s3 + $0x38] sm:$0xff] }
 0x501   :  { %8761 = vmatmul.mubr.msk.f32.vlgmr.msra.gmra.mrb[196].mxu1 %vm35_vm0, %v4228_v2  ;;  %v4171_v4 = vpop.f32.mrb[190].mxu1  ;;  %8730 = vmatprep.mubr.msk.f32.mxu0 %vm9753_vm1, %v9752_v1  ;;  %v4498_v57 = vld [vmem:[#allocation3 + $0x7] sm:$0xff]  ;;  %v4936_v2 = vld [vmem:[#allocation4 + $0x650] sm:$0xff] }
 0x502   :  { %8763 = vmatprep.mubr.msk.f32.mxu1 %vm9753_vm1, %v9752_v1  ;;  %4223 = vst.msk [vmem:[#allocation3 + $0x18] sm:$0xff] %vm35_vm0, %v4216_v6  ;;  %v4210_v9 = vmax.f32 %v4203_v13, 0.0  ;;  %v4189_v14 = vadd.f32 %v4171_v4, %v4047_v27  ;;  %v8708_v15 = vpop.f32.mrb[191].mxu1  ;;  %9488 = vmatpush3.bf16.msra.mxu0 %v9487_v3  ;;  %v4653_v27 = vld [vmem:[#allocation4 + $0x5f8] sm:$0xff]  ;;  %v4640_v58 = vld [vmem:[#allocation3 + $0x8] sm:$0xff]  ;;  %v4934_v62 = vld [vmem:[#allocation4 + $0x640] sm:$0xff]  ;;  %v9508_v3 = vpack.c.bf16 %v4793_v60, %v4792_v56 }
 0x503   :  { %9497 = vmatpush3.bf16.msra.mxu1 %v9496_v8  ;;  %v4243_v18 = vld [vmem:[#allocation3 + $0xe] sm:$0xff]  ;;  %9489 = vmatprep.subr.bf16.mxu0 %v9751_v0  ;;  %v9502_v35 = vpack.c.bf16 %v4653_v27, %v4652_v25  ;;  %v9511_v6 = vpack.c.bf16 %v4795_v59, %v4794_v5  ;;  %v7091_v56 = vld [vmem:[%s11410_s3 + $0x40] sm:$0xff] }
 0x504   :  { %v4229_v19 = vld [vmem:[#allocation3 + $0xd] sm:$0xff]  ;;  %9498 = vmatprep.subr.bf16.mxu1 %v9751_v0  ;;  %v4217_v20 = vmul.f32 0.0, %v4210_v9  ;;  %v4204_v21 = vadd.f32 %v10754_v43, %v4189_v14  ;;  %8731 = vmatmul.mubr.msk.f32.gmra.mrb[198].mxu0 %vm35_vm0, %v4243_v18  ;;  %v9520_v9 = vpack.c.bf16 %v4937_v12, %v4936_v2  ;;  %v7109_v2 = vld [vmem:[%s11410_s3 + $0xb8] sm:$0xff] }
 0x505   :  { %8764 = vmatmul.mubr.msk.f32.gmra.mrb[198].mxu1 %vm35_vm0, %v4229_v19  ;;  %v4176_v23 = vpop.f32.mrb[192].mxu1  ;;  %8733 = vmatprep.mubr.msk.f32.mxu0 %vm9753_vm1, %v9752_v1  ;;  %v4935_v63 = vld [vmem:[#allocation4 + $0x648] sm:$0xff]  ;;  %v4641_v8 = vld [vmem:[#allocation3 + $0x10] sm:$0xff] }
 0x506   :  { %8766 = vmatprep.mubr.msk.f32.mxu1 %vm9753_vm1, %v9752_v1  ;;  %4224 = vst.msk [vmem:[#allocation3 + $0x20] sm:$0xff] %vm35_vm0, %v4217_v20  ;;  %v4211_v28 = vmax.f32 %v4204_v21, 0.0  ;;  %v4190_v29 = vadd.f32 %v4176_v23, %v10747_v34  ;;  %v8711_v30 = vpop.f32.mrb[193].mxu1  ;;  %9491 = vmatpush3.bf16.msra.mxu0 %v9490_v16  ;;  %v4499_v7 = vld [vmem:[#allocation3 + $0xf] sm:$0xff]  ;;  %v9517_v10 = vpack.c.bf16 %v4935_v63, %v4934_v62  ;;  %v5074_v20 = vld [vmem:[#allocation4 + $0x660] sm:$0xff] }
 0x507   :  { %9500 = vmatpush3.bf16.msra.mxu1 %v9499_v17  ;;  %9492 = vmatprep.subr.bf16.mxu0 %v9751_v0  ;;  %v5075_v21 = vld [vmem:[#allocation4 + $0x668] sm:$0xff]  ;;  %v5076_v25 = vld [vmem:[#allocation4 + $0x670] sm:$0xff]  ;;  %v7106_v63 = vld [vmem:[%s11410_s3 + $0xa0] sm:$0xff] }
 0x508   :  { %9501 = vmatprep.subr.bf16.mxu1 %v9751_v0  ;;  %4225 = vst.msk [vmem:[#allocation3 + $0x28] sm:$0xff] %vm35_vm0, %v4211_v28  ;;  %v4205_v31 = vadd.f32 %v10754_v43, %v4190_v29  ;;  %v9523_v24 = vpack.c.bf16 %v5075_v21, %v5074_v20  ;;  %v4782_v27 = vld [vmem:[#allocation3 + $0x9] sm:$0xff]  ;;  %v5077_v29 = vld [vmem:[#allocation4 + $0x678] sm:$0xff] }
 0x509   :  { %v4181_v36 = vpop.f32.mrb[194].mxu1  ;;  %v4244_v37 = vld [vmem:[#allocation3 + $0x16] sm:$0xff]  ;;  %v4924_v28 = vld [vmem:[#allocation3 + $0xa] sm:$0xff]  ;;  %v9526_v30 = vpack.c.bf16 %v5077_v29, %v5076_v25 }
 0x50a   :  { %v4230_v38 = vld [vmem:[#allocation3 + $0x15] sm:$0xff]  ;;  %v4212_v40 = vmax.f32 %v4205_v31, 0.0  ;;  %v4191_v42 = vadd.f32 %v4181_v36, %v10749_v33  ;;  %8734 = vmatmul.mubr.msk.f32.gmra.mrb[200].mxu0 %vm35_vm0, %v4244_v37  ;;  %v8714_v34 = vpop.f32.mrb[195].mxu1  ;;  %v5078_v31 = vld [vmem:[#allocation4 + $0x680] sm:$0xff]  ;;  %v5079_v36 = vld [vmem:[#allocation4 + $0x688] sm:$0xff] }
 0x50b   :  { %8767 = vmatmul.mubr.msk.f32.gmra.mrb[200].mxu1 %vm35_vm0, %v4230_v38  ;;  %8736 = vmatprep.mubr.msk.f32.mxu0 %vm9753_vm1, %v9752_v1  ;;  %v4500_v13 = vld [vmem:[#allocation3 + $0x17] sm:$0xff]  ;;  %v9529_v37 = vpack.c.bf16 %v5079_v36, %v5078_v31 }
 0x50c   :  { %8769 = vmatprep.mubr.msk.f32.mxu1 %vm9753_vm1, %v9752_v1  ;;  %4226 = vst.msk [vmem:[#allocation3 + $0x30] sm:$0xff] %vm35_vm0, %v4212_v40  ;;  %v4206_v44 = vadd.f32 %v10754_v43, %v4191_v42  ;;  %9494 = vmatpush3.bf16.msra.mxu0 %v9493_v32  ;;  %v4642_v4 = vld [vmem:[#allocation3 + $0x18] sm:$0xff]  ;;  %v7108_v59 = vld [vmem:[%s11410_s3 + $0xb0] sm:$0xff] }
 0x50d   :  { %9503 = vmatpush3.bf16.msra.mxu1 %v9502_v35  ;;  %v4245_v41 = vld [vmem:[#allocation3 + $0x1e] sm:$0xff]  ;;  %9504 = vmatprep.subr.bf16.mxu0 %v9751_v0  ;;  %v4783_v32 = vld [vmem:[#allocation3 + $0x11] sm:$0xff]  ;;  %v9565_v12 = vpack.c.bf16 %v7109_v2, %v7108_v59 }
 0x50e   :  { %v4231_v39 = vld [vmem:[#allocation3 + $0x1d] sm:$0xff]  ;;  %9513 = vmatprep.subr.bf16.mxu1 %v9751_v0  ;;  %v4213_v33 = vmax.f32 %v4206_v44, 0.0  ;;  %8737 = vmatmul.mubr.msk.f32.gmra.mrb[202].mxu0 %vm35_vm0, %v4245_v41  ;;  %v4925_v35 = vld [vmem:[#allocation3 + $0x12] sm:$0xff] }
 0x50f   :  { %8770 = vmatmul.mubr.msk.f32.gmra.mrb[202].mxu1 %vm35_vm0, %v4231_v39  ;;  %8739 = vmatprep.mubr.msk.f32.mxu0 %vm9753_vm1, %v9752_v1  ;;  %v4246_v45 = vld [vmem:[#allocation3 + $0x26] sm:$0xff]  ;;  %v4784_v38 = vld [vmem:[#allocation3 + $0x19] sm:$0xff] }
 0x510   :  { %8772 = vmatprep.mubr.msk.f32.mxu1 %vm9753_vm1, %v9752_v1  ;;  %v4220_v43 = vmul.f32 %v10207_v11, %v4213_v33  ;;  %v4232_v46 = vld [vmem:[#allocation3 + $0x25] sm:$0xff]  ;;  %v4926_v40 = vld [vmem:[#allocation3 + $0x1a] sm:$0xff] }
 0x511   :  { %v4501_v14 = vld [vmem:[#allocation3 + $0x1f] sm:$0xff]  ;;  %v4502_v16 = vld [vmem:[#allocation3 + $0x27] sm:$0xff] }
 0x512   :  { %4227 = vst.msk [vmem:[#allocation3 + $0x38] sm:$0x3] %vm1178_vm4, %v4220_v43  ;;  %8740 = vmatmul.mubr.msk.f32.gmra.mrb[204].mxu0 %vm35_vm0, %v4246_v45  ;;  %v4643_v15 = vld [vmem:[#allocation3 + $0x20] sm:$0xff]  ;;  %v4644_v17 = vld [vmem:[#allocation3 + $0x28] sm:$0xff]  ;;  %v4930_v43 = vld [vmem:[#allocation3 + $0x3a] sm:$0x3] }
 0x513   :  { %8773 = vmatmul.mubr.msk.f32.gmra.mrb[204].mxu1 %vm35_vm0, %v4232_v46  ;;  %8742 = vmatprep.mubr.msk.f32.mxu0 %vm9753_vm1, %v9752_v1  ;;  %v4247_v47 = vld [vmem:[#allocation3 + $0x2e] sm:$0xff]  ;;  %v4248_v51 = vld [vmem:[#allocation3 + $0x36] sm:$0x3]  ;;  %v4785_v42 = vld [vmem:[#allocation3 + $0x21] sm:$0xff] }
 0x514   :  { %8775 = vmatprep.mubr.msk.f32.mxu1 %vm9753_vm1, %v9752_v1  ;;  %v4233_v48 = vld [vmem:[#allocation3 + $0x2d] sm:$0xff]  ;;  %v4234_v53 = vld [vmem:[#allocation3 + $0x35] sm:$0x3]  ;;  %v4927_v34 = vld [vmem:[#allocation3 + $0x22] sm:$0xff] }
 0x515   :  { %v4503_v18 = vld [vmem:[#allocation3 + $0x2f] sm:$0xff]  ;;  %v5069_v49 = vld [vmem:[#allocation3 + $0x23] sm:$0xff] }
 0x516   :  { %8743 = vmatmul.mubr.msk.f32.gmra.mrb[206].mxu0 %vm35_vm0, %v4247_v47  ;;  %v4645_v19 = vld [vmem:[#allocation3 + $0x30] sm:$0xff] }
 0x517   :  { %8776 = vmatmul.mubr.msk.f32.gmra.mrb[206].mxu1 %vm35_vm0, %v4233_v48  ;;  %8745 = vmatprep.mubr.msk.f32.mxu0 %vm9753_vm1, %v9752_v1  ;;  %v4786_v44 = vld [vmem:[#allocation3 + $0x29] sm:$0xff]  ;;  %v5067_v47 = vld [vmem:[#allocation3 + $0x13] sm:$0xff]  ;;  %v5068_v48 = vld [vmem:[#allocation3 + $0x1b] sm:$0xff] }
 0x518   :  { %8778 = vmatprep.mubr.msk.f32.mxu1 %vm9753_vm1, %v9752_v1  ;;  %v4928_v41 = vld [vmem:[#allocation3 + $0x2a] sm:$0xff] }
 0x519   :  { %v4504_v22 = vld [vmem:[#allocation3 + $0x37] sm:$0x3]  ;;  %v4788_v45 = vld [vmem:[#allocation3 + $0x39] sm:$0x3]  ;;  %v5066_v46 = vld [vmem:[#allocation3 + $0xb] sm:$0xff] }
 0x51a   :  { %8746 = vmatmul.mubr.msk.f32.gmra.mrb[208].mxu0 %vm35_vm0, %v4248_v51  ;;  %v4646_v23 = vld [vmem:[#allocation3 + $0x38] sm:$0x3]  ;;  %v5070_v50 = vld [vmem:[#allocation3 + $0x2b] sm:$0xff] }
 0x51b   :  { %8779 = vmatmul.mubr.msk.f32.gmra.mrb[208].mxu1 %vm35_vm0, %v4234_v53  ;;  %8793 = vmatprep.mubr.msk.f32.mxu0 %vm9753_vm1, %v9752_v1  ;;  %v4787_v39 = vld [vmem:[#allocation3 + $0x31] sm:$0xff]  ;;  %v5072_v53 = vld [vmem:[#allocation3 + $0x3b] sm:$0x3] }
 0x51c   :  { %8826 = vmatprep.mubr.msk.f32.mxu1 %vm9753_vm1, %v9752_v1  ;;  %v4929_v33 = vld [vmem:[#allocation3 + $0x32] sm:$0xff] }
 0x51d   :  { %v5071_v51 = vld [vmem:[#allocation3 + $0x33] sm:$0xff] }
 0x51e   :  { %8794 = vmatmul.mubr.msk.f32.vlgmr.msra.gmra.mrb[210].mxu0 %vm35_vm0, %v4498_v57  ;;  %v7092_v57 = vld [vmem:[%s11410_s3 + $0x48] sm:$0xff] }
 0x51f   :  { %8827 = vmatmul.mubr.msk.f32.vlgmr.msra.gmra.mrb[210].mxu1 %vm35_vm0, %v4640_v58  ;;  %9506 = vmatpush3.bf16.msra.mxu0 %v9505_v55  ;;  %v9532_v55 = vpack.c.bf16 %v7090_v54, %v7089_v52  ;;  %v7104_v58 = vld [vmem:[%s11410_s3 + $0x90] sm:$0xff]  ;;  %v9535_v60 = vpack.c.bf16 %v7092_v57, %v7091_v56 }
 0x520   :  { %8796 = vmatprep.mubr.msk.f32.mxu0 %vm9753_vm1, %v9752_v1  ;;  %8829 = vmatprep.mubr.msk.f32.mxu1 %vm9753_vm1, %v9752_v1 }
 0x521   :  { %9507 = vmatprep.subr.bf16.mxu0 %v9751_v0  ;;  %9515 = vmatpush3.bf16.msra.mxu1 %v9514_v61  ;;  %v7105_v61 = vld [vmem:[%s11410_s3 + $0x98] sm:$0xff] }
 0x522   :  { %8797 = vmatmul.mubr.msk.f32.gmra.mrb[212].mxu0 %vm35_vm0, %v4499_v7  ;;  %9516 = vmatprep.subr.bf16.mxu1 %v9751_v0  ;;  %v9559_v62 = vpack.c.bf16 %v7105_v61, %v7104_v58  ;;  %v7093_v7 = vld [vmem:[%s11410_s3 + $0x50] sm:$0xff] }
 0x523   :  { %8830 = vmatmul.mubr.msk.f32.gmra.mrb[212].mxu1 %vm35_vm0, %v4641_v8  ;;  %8799 = vmatprep.mubr.msk.f32.mxu0 %vm9753_vm1, %v9752_v1  ;;  %v7094_v8 = vld [vmem:[%s11410_s3 + $0x58] sm:$0xff] }
 0x524   :  { %8832 = vmatprep.mubr.msk.f32.mxu1 %vm9753_vm1, %v9752_v1  ;;  %9509 = vmatpush3.bf16.msra.mxu0 %v9508_v3  ;;  %v7107_v3 = vld [vmem:[%s11410_s3 + $0xa8] sm:$0xff] }
 0x525   :  { %9510 = vmatprep.subr.bf16.mxu0 %v9751_v0  ;;  %9518 = vmatpush3.bf16.msra.mxu1 %v9517_v10  ;;  %v9562_v5 = vpack.c.bf16 %v7107_v3, %v7106_v63  ;;  %v9538_v10 = vpack.c.bf16 %v7094_v8, %v7093_v7 }
 0x526   :  { %8800 = vmatmul.mubr.msk.f32.gmra.mrb[214].mxu0 %vm35_vm0, %v4500_v13  ;;  %9519 = vmatprep.subr.bf16.mxu1 %v9751_v0 }
 0x527   :  { %8833 = vmatmul.mubr.msk.f32.gmra.mrb[214].mxu1 %vm35_vm0, %v4642_v4  ;;  %8802 = vmatprep.mubr.msk.f32.mxu0 %vm9753_vm1, %v9752_v1 }
 0x528   :  { %8835 = vmatprep.mubr.msk.f32.mxu1 %vm9753_vm1, %v9752_v1  ;;  %9512 = vmatpush3.bf16.msra.mxu0 %v9511_v6 }
 0x529   :  { %9521 = vmatpush3.bf16.msra.mxu1 %v9520_v9  ;;  %9522 = vmatprep.subr.bf16.mxu0 %v9751_v0 }
 0x52a   :  { %8803 = vmatmul.mubr.msk.f32.gmra.mrb[216].mxu0 %vm35_vm0, %v4501_v14  ;;  %9531 = vmatprep.subr.bf16.mxu1 %v9751_v0 }
 0x52b   :  { %8836 = vmatmul.mubr.msk.f32.gmra.mrb[216].mxu1 %vm35_vm0, %v4643_v15  ;;  %8805 = vmatprep.mubr.msk.f32.mxu0 %vm9753_vm1, %v9752_v1 }
 0x52c   :  { %8838 = vmatprep.mubr.msk.f32.mxu1 %vm9753_vm1, %v9752_v1 }
 0x52e   :  { %8806 = vmatmul.mubr.msk.f32.gmra.mrb[218].mxu0 %vm35_vm0, %v4502_v16 }
 0x52f   :  { %8839 = vmatmul.mubr.msk.f32.gmra.mrb[218].mxu1 %vm35_vm0, %v4644_v17  ;;  %8808 = vmatprep.mubr.msk.f32.mxu0 %vm9753_vm1, %v9752_v1 }
 0x530   :  { %8841 = vmatprep.mubr.msk.f32.mxu1 %vm9753_vm1, %v9752_v1 }
 0x532   :  { %8809 = vmatmul.mubr.msk.f32.gmra.mrb[220].mxu0 %vm35_vm0, %v4503_v18 }
 0x533   :  { %8842 = vmatmul.mubr.msk.f32.gmra.mrb[220].mxu1 %vm35_vm0, %v4645_v19  ;;  %8811 = vmatprep.mubr.msk.f32.mxu0 %vm9753_vm1, %v9752_v1 }
 0x534   :  { %8844 = vmatprep.mubr.msk.f32.mxu1 %vm9753_vm1, %v9752_v1 }
 0x536   :  { %8812 = vmatmul.mubr.msk.f32.gmra.mrb[222].mxu0 %vm35_vm0, %v4504_v22 }
 0x537   :  { %8845 = vmatmul.mubr.msk.f32.gmra.mrb[222].mxu1 %vm35_vm0, %v4646_v23  ;;  %8859 = vmatprep.mubr.msk.f32.mxu0 %vm9753_vm1, %v9752_v1 }
 0x538   :  { %8892 = vmatprep.mubr.msk.f32.mxu1 %vm9753_vm1, %v9752_v1 }
 0x53a   :  { %8860 = vmatmul.mubr.msk.f32.vlgmr.msra.gmra.mrb[224].mxu0 %vm35_vm0, %v4782_v27 }
 0x53b   :  { %8893 = vmatmul.mubr.msk.f32.vlgmr.msra.gmra.mrb[224].mxu1 %vm35_vm0, %v4924_v28  ;;  %9524 = vmatpush3.bf16.msra.mxu0 %v9523_v24 }
 0x53c   :  { %8862 = vmatprep.mubr.msk.f32.mxu0 %vm9753_vm1, %v9752_v1  ;;  %8895 = vmatprep.mubr.msk.f32.mxu1 %vm9753_vm1, %v9752_v1 }
 0x53d   :  { %9525 = vmatprep.subr.bf16.mxu0 %v9751_v0  ;;  %9533 = vmatpush3.bf16.msra.mxu1 %v9532_v55 }
 0x53e   :  { %8863 = vmatmul.mubr.msk.f32.gmra.mrb[226].mxu0 %vm35_vm0, %v4783_v32  ;;  %9534 = vmatprep.subr.bf16.mxu1 %v9751_v0 }
 0x53f   :  { %8896 = vmatmul.mubr.msk.f32.gmra.mrb[226].mxu1 %vm35_vm0, %v4925_v35  ;;  %8865 = vmatprep.mubr.msk.f32.mxu0 %vm9753_vm1, %v9752_v1 }
 0x540   :  { %8898 = vmatprep.mubr.msk.f32.mxu1 %vm9753_vm1, %v9752_v1  ;;  %9527 = vmatpush3.bf16.msra.mxu0 %v9526_v30 }
 0x541   :  { %9528 = vmatprep.subr.bf16.mxu0 %v9751_v0  ;;  %9536 = vmatpush3.bf16.msra.mxu1 %v9535_v60 }
 0x542   :  { %8866 = vmatmul.mubr.msk.f32.gmra.mrb[228].mxu0 %vm35_vm0, %v4784_v38  ;;  %9537 = vmatprep.subr.bf16.mxu1 %v9751_v0 }
 0x543   :  { %8899 = vmatmul.mubr.msk.f32.gmra.mrb[228].mxu1 %vm35_vm0, %v4926_v40  ;;  %8868 = vmatprep.mubr.msk.f32.mxu0 %vm9753_vm1, %v9752_v1 }
 0x544   :  { %8901 = vmatprep.mubr.msk.f32.mxu1 %vm9753_vm1, %v9752_v1  ;;  %9530 = vmatpush3.bf16.msra.mxu0 %v9529_v37 }
 0x545   :  { %9558 = vmatprep.subr.bf16.mxu0 %v9751_v0  ;;  %9539 = vmatpush3.bf16.msra.mxu1 %v9538_v10 }
 0x546   :  { %8869 = vmatmul.mubr.msk.f32.gmra.mrb[230].mxu0 %vm35_vm0, %v4785_v42  ;;  %9540 = vmatprep.subr.bf16.mxu1 %v9751_v0 }
 0x547   :  { %8902 = vmatmul.mubr.msk.f32.gmra.mrb[230].mxu1 %vm35_vm0, %v4927_v34  ;;  %8871 = vmatprep.mubr.msk.f32.mxu0 %vm9753_vm1, %v9752_v1 }
 0x548   :  { %8904 = vmatprep.mubr.msk.f32.mxu1 %vm9753_vm1, %v9752_v1 }
 0x54a   :  { %8872 = vmatmul.mubr.msk.f32.gmra.mrb[232].mxu0 %vm35_vm0, %v4786_v44 }
 0x54b   :  { %8905 = vmatmul.mubr.msk.f32.gmra.mrb[232].mxu1 %vm35_vm0, %v4928_v41  ;;  %8874 = vmatprep.mubr.msk.f32.mxu0 %vm9753_vm1, %v9752_v1 }
 0x54c   :  { %8907 = vmatprep.mubr.msk.f32.mxu1 %vm9753_vm1, %v9752_v1 }
 0x54e   :  { %8875 = vmatmul.mubr.msk.f32.gmra.mrb[234].mxu0 %vm35_vm0, %v4787_v39 }
 0x54f   :  { %8908 = vmatmul.mubr.msk.f32.gmra.mrb[234].mxu1 %vm35_vm0, %v4929_v33  ;;  %8877 = vmatprep.mubr.msk.f32.mxu0 %vm9753_vm1, %v9752_v1 }
 0x550   :  { %8910 = vmatprep.mubr.msk.f32.mxu1 %vm9753_vm1, %v9752_v1 }
 0x552   :  { %8878 = vmatmul.mubr.msk.f32.gmra.mrb[236].mxu0 %vm35_vm0, %v4788_v45 }
 0x553   :  { %8911 = vmatmul.mubr.msk.f32.gmra.mrb[236].mxu1 %vm35_vm0, %v4930_v43  ;;  %8925 = vmatprep.mubr.msk.f32.mxu0 %vm9753_vm1, %v9752_v1 }
 0x554   :  { %8958 = vmatprep.mubr.msk.f32.mxu1 %vm9753_vm1, %v9752_v1 }
 0x556   :  { %8926 = vmatmul.mubr.msk.f32.vlgmr.msra.gmra.mrb[238].mxu0 %vm35_vm0, %v5066_v46 }
 0x557   :  { %8928 = vmatprep.mubr.msk.f32.mxu0 %vm9753_vm1, %v9752_v1  ;;  %9560 = vmatpush3.bf16.msra.mxu0 %v9559_v62 }
 0x558   :  { %9561 = vmatprep.subr.bf16.mxu0 %v9751_v0 }
 0x55a   :  { %8929 = vmatmul.mubr.msk.f32.gmra.mrb[240].mxu0 %vm35_vm0, %v5067_v47 }
 0x55b   :  { %8931 = vmatprep.mubr.msk.f32.mxu0 %vm9753_vm1, %v9752_v1  ;;  %9563 = vmatpush3.bf16.msra.mxu0 %v9562_v5 }
 0x55c   :  { %9564 = vmatprep.subr.bf16.mxu0 %v9751_v0 }
 0x55e   :  { %8932 = vmatmul.mubr.msk.f32.gmra.mrb[242].mxu0 %vm35_vm0, %v5068_v48 }
 0x55f   :  { %8934 = vmatprep.mubr.msk.f32.mxu0 %vm9753_vm1, %v9752_v1  ;;  %9566 = vmatpush3.bf16.msra.mxu0 %v9565_v12 }
 0x560   :  { %9576 = vmatprep.subr.bf16.mxu0 %v9751_v0 }
 0x562   :  { %8935 = vmatmul.mubr.msk.f32.gmra.mrb[244].mxu0 %vm35_vm0, %v5069_v49 }
 0x563   :  { %8937 = vmatprep.mubr.msk.f32.mxu0 %vm9753_vm1, %v9752_v1 }
 0x566   :  { %8938 = vmatmul.mubr.msk.f32.gmra.mrb[246].mxu0 %vm35_vm0, %v5070_v50 }
 0x567   :  { %8940 = vmatprep.mubr.msk.f32.mxu0 %vm9753_vm1, %v9752_v1 }
 0x56a   :  { %8941 = vmatmul.mubr.msk.f32.gmra.mrb[248].mxu0 %vm35_vm0, %v5071_v51 }
 0x56b   :  { %8943 = vmatprep.mubr.msk.f32.mxu0 %vm9753_vm1, %v9752_v1 }
 0x56e   :  { %8944 = vmatmul.mubr.msk.f32.gmra.mrb[250].mxu0 %vm35_vm0, %v5072_v53 }
 0x56f   :  { %9003 = vmatprep.mubr.msk.f32.mxu0 %vm9753_vm1, %v9752_v1 }
 0x5d3   :  { %v4343_v6 = vpop.f32.mrb[196].mxu0 }
 0x5d4   :  { %v4464_v13 = vpop.f32.mrb[196].mxu1  ;;  %v8729_v9 = vpop.f32.mrb[197].mxu0 }
 0x5d5   :  { %v4465_v4 = vadd.f32 %v4464_v13, %v4343_v6  ;;  %v8762_v14 = vpop.f32.mrb[197].mxu1 }
 0x5d7   :  { %v4348_v15 = vpop.f32.mrb[198].mxu0 }
 0x5d8   :  { %v4469_v16 = vpop.f32.mrb[198].mxu1  ;;  %v8732_v18 = vpop.f32.mrb[199].mxu0 }
 0x5d9   :  { %v4470_v17 = vadd.f32 %v4469_v16, %v4348_v15  ;;  %v8765_v19 = vpop.f32.mrb[199].mxu1 }
 0x5dd   :  { %v4353_v20 = vpop.f32.mrb[200].mxu0 }
 0x5de   :  { %v4474_v21 = vpop.f32.mrb[200].mxu1  ;;  %v8735_v23 = vpop.f32.mrb[201].mxu0 }
 0x5df   :  { %v4475_v22 = vadd.f32 %v4474_v21, %v4353_v20  ;;  %v8768_v24 = vpop.f32.mrb[201].mxu1 }
 0x5e1   :  { %v4358_v25 = vpop.f32.mrb[202].mxu0 }
 0x5e2   :  { %v4479_v27 = vpop.f32.mrb[202].mxu1  ;;  %v8738_v29 = vpop.f32.mrb[203].mxu0 }
 0x5e3   :  { %v4480_v28 = vadd.f32 %v4479_v27, %v4358_v25  ;;  %v8771_v30 = vpop.f32.mrb[203].mxu1 }
 0x5e5   :  { %v4363_v31 = vpop.f32.mrb[204].mxu0 }
 0x5e6   :  { %v4484_v32 = vpop.f32.mrb[204].mxu1  ;;  %v8741_v36 = vpop.f32.mrb[205].mxu0 }
 0x5e7   :  { %v4485_v35 = vadd.f32 %v4484_v32, %v4363_v31  ;;  %v8774_v37 = vpop.f32.mrb[205].mxu1 }
 0x5e9   :  { %v4368_v38 = vpop.f32.mrb[206].mxu0 }
 0x5ea   :  { %v4489_v40 = vpop.f32.mrb[206].mxu1  ;;  %v8744_v34 = vpop.f32.mrb[207].mxu0 }
 0x5eb   :  { %v4490_v42 = vadd.f32 %v4489_v40, %v4368_v38  ;;  %v8777_v44 = vpop.f32.mrb[207].mxu1 }
 0x5ed   :  { %v4373_v41 = vpop.f32.mrb[208].mxu0 }
 0x5ee   :  { %v4494_v39 = vpop.f32.mrb[208].mxu1  ;;  %v8747_v43 = vpop.f32.mrb[209].mxu0 }
 0x5ef   :  { %v4495_v33 = vadd.f32 %v4494_v39, %v4373_v41  ;;  %v8780_v45 = vpop.f32.mrb[209].mxu1 }
 0x5f1   :  { %v4599_v46 = vpop.f32.mrb[210].mxu0 }
 0x5f2   :  { %v4741_v47 = vpop.f32.mrb[210].mxu1  ;;  %v4633_v48 = vadd.f32 %v4599_v46, %v4465_v4  ;;  %v8795_v49 = vpop.f32.mrb[211].mxu0 }
 0x5f3   :  { %v8828_v50 = vpop.f32.mrb[211].mxu1 }
 0x5f4   :  { %v4775_v51 = vadd.f32 %v4741_v47, %v4633_v48 }
 0x5f5   :  { %v4604_v53 = vpop.f32.mrb[212].mxu0 }
 0x5f6   :  { %v4746_v52 = vpop.f32.mrb[212].mxu1  ;;  %v4634_v54 = vadd.f32 %v4604_v53, %v4470_v17  ;;  %v8798_v55 = vpop.f32.mrb[213].mxu0 }
 0x5f7   :  { %v8831_v56 = vpop.f32.mrb[213].mxu1 }
 0x5f8   :  { %v4776_v57 = vadd.f32 %v4746_v52, %v4634_v54 }
 0x5f9   :  { %v4609_v58 = vpop.f32.mrb[214].mxu0 }
 0x5fa   :  { %v4751_v60 = vpop.f32.mrb[214].mxu1  ;;  %v4635_v61 = vadd.f32 %v4609_v58, %v4475_v22  ;;  %v8801_v62 = vpop.f32.mrb[215].mxu0 }
 0x5fb   :  { %v8834_v63 = vpop.f32.mrb[215].mxu1 }
 0x5fc   :  { %v4777_v3 = vadd.f32 %v4751_v60, %v4635_v61 }
 0x5fd   :  { %v4614_v5 = vpop.f32.mrb[216].mxu0 }
 0x5fe   :  { %v4756_v7 = vpop.f32.mrb[216].mxu1  ;;  %v4636_v8 = vadd.f32 %v4614_v5, %v4480_v28  ;;  %v8804_v59 = vpop.f32.mrb[217].mxu0 }
 0x5ff   :  { %v8837_v10 = vpop.f32.mrb[217].mxu1 }
 0x600   :  { %v4778_v2 = vadd.f32 %v4756_v7, %v4636_v8 }
 0x601   :  { %v4619_v12 = vpop.f32.mrb[218].mxu0 }
 0x602   :  { %v4761_v6 = vpop.f32.mrb[218].mxu1  ;;  %v4637_v13 = vadd.f32 %v4619_v12, %v4485_v35  ;;  %v8807_v4 = vpop.f32.mrb[219].mxu0 }
 0x603   :  { %v8840_v9 = vpop.f32.mrb[219].mxu1 }
 0x604   :  { %v4779_v14 = vadd.f32 %v4761_v6, %v4637_v13  ;;  %v7088_v6 = vld [vmem:[%s11409_s2 + $0x4] ss:$0 sm:$0xff] }
 0x605   :  { %v4624_v15 = vpop.f32.mrb[220].mxu0 }
 0x606   :  { %v4766_v16 = vpop.f32.mrb[220].mxu1  ;;  %v4638_v17 = vadd.f32 %v4624_v15, %v4490_v42  ;;  %v8810_v18 = vpop.f32.mrb[221].mxu0 }
 0x607   :  { %v8843_v19 = vpop.f32.mrb[221].mxu1 }
 0x608   :  { %v4780_v20 = vadd.f32 %v4766_v16, %v4638_v17 }
 0x609   :  { %v4629_v21 = vpop.f32.mrb[222].mxu0 }
 0x60a   :  { %v4771_v22 = vpop.f32.mrb[222].mxu1  ;;  %v4639_v23 = vadd.f32 %v4629_v21, %v4495_v33  ;;  %v8813_v24 = vpop.f32.mrb[223].mxu0 }
 0x60b   :  { %v8846_v25 = vpop.f32.mrb[223].mxu1 }
 0x60c   :  { %v4781_v27 = vadd.f32 %v4771_v22, %v4639_v23 }
 0x60d   :  { %v4883_v28 = vpop.f32.mrb[224].mxu0 }
 0x60e   :  { %v5025_v29 = vpop.f32.mrb[224].mxu1  ;;  %v4917_v30 = vadd.f32 %v4883_v28, %v4775_v51  ;;  %v8861_v31 = vpop.f32.mrb[225].mxu0 }
 0x60f   :  { %v8894_v32 = vpop.f32.mrb[225].mxu1 }
 0x610   :  { %v5059_v35 = vadd.f32 %v5025_v29, %v4917_v30 }
 0x611   :  { %v4888_v36 = vpop.f32.mrb[226].mxu0 }
 0x612   :  { %v5030_v37 = vpop.f32.mrb[226].mxu1  ;;  %v4918_v38 = vadd.f32 %v4888_v36, %v4776_v57  ;;  %v8864_v40 = vpop.f32.mrb[227].mxu0 }
 0x613   :  { %v8897_v42 = vpop.f32.mrb[227].mxu1 }
 0x614   :  { %v5060_v34 = vadd.f32 %v5030_v37, %v4918_v38 }
 0x615   :  { %v4893_v44 = vpop.f32.mrb[228].mxu0 }
 0x616   :  { %v5035_v41 = vpop.f32.mrb[228].mxu1  ;;  %v4919_v39 = vadd.f32 %v4893_v44, %v4777_v3  ;;  %v8867_v43 = vpop.f32.mrb[229].mxu0 }
 0x617   :  { %v8900_v33 = vpop.f32.mrb[229].mxu1 }
 0x618   :  { %v5061_v45 = vadd.f32 %v5035_v41, %v4919_v39 }
 0x619   :  { %v4898_v46 = vpop.f32.mrb[230].mxu0 }
 0x61a   :  { %v5040_v47 = vpop.f32.mrb[230].mxu1  ;;  %v4920_v48 = vadd.f32 %v4898_v46, %v4778_v2  ;;  %v8870_v49 = vpop.f32.mrb[231].mxu0  ;;  %v5251_v46 = vld [vmem:[%s11410_s3] sm:$0xff] }
 0x61b   :  { %v8903_v50 = vpop.f32.mrb[231].mxu1  ;;  %v7119_v49 = vld [vmem:[%s11410_s3 + $0xf8] sm:$0xff] }
 0x61c   :  { %v5062_v51 = vadd.f32 %v5040_v47, %v4920_v48  ;;  %v5252_v47 = vld [vmem:[%s11410_s3 + $0x8] sm:$0xff]  ;;  %v7118_v48 = vld [vmem:[%s11410_s3 + $0xf0] sm:$0xff] }
 0x61d   :  { %v4903_v53 = vpop.f32.mrb[232].mxu0 }
 0x61e   :  { %v5045_v52 = vpop.f32.mrb[232].mxu1  ;;  %v4921_v54 = vadd.f32 %v4903_v53, %v4779_v14  ;;  %v8873_v55 = vpop.f32.mrb[233].mxu0  ;;  %v9541_v53 = vpack.c.bf16 %v5252_v47, %v5251_v46 }
 0x61f   :  { %v8906_v56 = vpop.f32.mrb[233].mxu1 }
 0x620   :  { %v5063_v57 = vadd.f32 %v5045_v52, %v4921_v54 }
 0x621   :  { %v4908_v58 = vpop.f32.mrb[234].mxu0 }
 0x622   :  { %v5050_v60 = vpop.f32.mrb[234].mxu1  ;;  %v4922_v61 = vadd.f32 %v4908_v58, %v4780_v20  ;;  %v8876_v62 = vpop.f32.mrb[235].mxu0  ;;  %v5253_v58 = vld [vmem:[%s11410_s3 + $0x10] sm:$0xff] }
 0x623   :  { %v8909_v63 = vpop.f32.mrb[235].mxu1 }
 0x624   :  { %v5064_v3 = vadd.f32 %v5050_v60, %v4922_v61  ;;  %v5254_v60 = vld [vmem:[%s11410_s3 + $0x18] sm:$0xff]  ;;  %v7120_v61 = vld [vmem:[%s11410_s3 + $0x100] sm:$0xff] }
 0x625   :  { %v4913_v5 = vpop.f32.mrb[236].mxu0 }
 0x626   :  { %v5055_v7 = vpop.f32.mrb[236].mxu1  ;;  %v4923_v8 = vadd.f32 %v4913_v5, %v4781_v27  ;;  %v8879_v59 = vpop.f32.mrb[237].mxu0 }
 0x627   :  { %v8912_v10 = vpop.f32.mrb[237].mxu1  ;;  %v5255_v59 = vld [vmem:[%s11410_s3 + $0x20] sm:$0xff] }
 0x628   :  { %v5065_v2 = vadd.f32 %v5055_v7, %v4923_v8  ;;  %v9544_v7 = vpack.c.bf16 %v5254_v60, %v5253_v58  ;;  %v5256_v10 = vld [vmem:[%s11410_s3 + $0x28] sm:$0xff]  ;;  %v7115_v58 = vld [vmem:[%s11410_s3 + $0xe0] sm:$0xff] }
 0x629   :  { %v5167_v12 = vpop.f32.mrb[238].mxu0  ;;  %v7116_v60 = vld [vmem:[%s11410_s3 + $0xe8] sm:$0xff] }
 0x62a   :  { %v5201_v13 = vadd.f32 %v5167_v12, %v5059_v35  ;;  %v8927_v4 = vpop.f32.mrb[239].mxu0  ;;  %v7123_v12 = vld [vmem:[%s11410_s3 + $0x118] sm:$0xff] }
 0x62b   :  { %v9547_v4 = vpack.c.bf16 %v5256_v10, %v5255_v59  ;;  %v7160_v59 = vld [vmem:[%s11410_s3 + $0x210] sm:$0xff]  ;;  %v7161_v10 = vld [vmem:[%s11410_s3 + $0x218] sm:$0xff] }
 0x62c   :  { %v5216_v9 = vadd.f32 %v7088_v6, %v5201_v13 }
 0x62d   :  { %v5172_v14 = vpop.f32.mrb[240].mxu0 }
 0x62e   :  { %v5223_v15 = vmax.f32 %v5216_v9, 0.0  ;;  %v5202_v16 = vadd.f32 %v5172_v14, %v5060_v34  ;;  %v8930_v17 = vpop.f32.mrb[241].mxu0  ;;  %v7097_v14 = vld [vmem:[%s11410_s3 + $0x60] sm:$0xff] }
 0x62f   :  { %v7133_v17 = vld [vmem:[%s11410_s3 + $0x158] sm:$0xff] }
 0x630   :  { %5237 = vst.msk [vmem:[#allocation2 + $0x8] sm:$0xff] %vm35_vm0, %v5223_v15  ;;  %v5217_v18 = vadd.f32 %v7088_v6, %v5202_v16  ;;  %v7098_v15 = vld [vmem:[%s11410_s3 + $0x68] sm:$0xff]  ;;  %v7132_v16 = vld [vmem:[%s11410_s3 + $0x150] sm:$0xff] }
 0x631   :  { %v5177_v19 = vpop.f32.mrb[242].mxu0 }
 0x632   :  { %v5224_v20 = vmax.f32 %v5217_v18, 0.0  ;;  %v5203_v21 = vadd.f32 %v5177_v19, %v5061_v45  ;;  %v8933_v22 = vpop.f32.mrb[243].mxu0 }
 0x633   :  { %v7099_v22 = vld [vmem:[%s11410_s3 + $0x70] sm:$0xff] }
 0x634   :  { %5238 = vst.msk [vmem:[#allocation2 + $0x10] sm:$0xff] %vm35_vm0, %v5224_v20  ;;  %v5218_v23 = vadd.f32 %v7088_v6, %v5203_v21  ;;  %v9550_v20 = vpack.c.bf16 %v7098_v15, %v7097_v14  ;;  %v9595_v21 = vpack.c.bf16 %v7133_v17, %v7132_v16  ;;  %v7162_v14 = vld [vmem:[%s11410_s3 + $0x220] sm:$0xff]  ;;  %v7163_v17 = vld [vmem:[%s11410_s3 + $0x228] sm:$0xff] }
 0x635   :  { %v5182_v24 = vpop.f32.mrb[244].mxu0 }
 0x636   :  { %v5225_v25 = vmax.f32 %v5218_v23, 0.0  ;;  %v5204_v27 = vadd.f32 %v5182_v24, %v5062_v51  ;;  %v8936_v28 = vpop.f32.mrb[245].mxu0  ;;  %v7100_v23 = vld [vmem:[%s11410_s3 + $0x78] sm:$0xff]  ;;  %v7134_v24 = vld [vmem:[%s11410_s3 + $0x160] sm:$0xff] }
 0x637   :  { %v5257_v62 = vld [vmem:[#allocation2 + $0x9] sm:$0x1]  ;;  %v5503_v63 = vld [vmem:[#allocation2 + $0xb] sm:$0x1]  ;;  %v5590_v15 = vld [vmem:[#allocation2 + $0xc] sm:$0x1] }
 0x638   :  { %v5232_v29 = vmul.f32 %v10171_v26, %v5225_v25  ;;  %v5219_v30 = vadd.f32 %v7088_v6, %v5204_v27  ;;  %v5244_v25 = vld [vmem:[#allocation2 + $0x8] sm:$0x1]  ;;  %v5677_v27 = vld [vmem:[#allocation2 + $0xd] sm:$0x1] }
 0x639   :  { %v5187_v31 = vpop.f32.mrb[246].mxu0  ;;  %v7135_v28 = vld [vmem:[%s11410_s3 + $0x168] sm:$0xff] }
 0x63a   :  { %5239 = vst.msk [vmem:[#allocation2 + $0x18] sm:$0xff] %vm35_vm0, %v5232_v29  ;;  %v5226_v32 = vmax.f32 %v5219_v30, 0.0  ;;  %v5205_v35 = vadd.f32 %v5187_v31, %v5063_v57  ;;  %v8939_v36 = vpop.f32.mrb[247].mxu0  ;;  %v9577_v57 = vpack.c.bf16 %v7119_v49, %v7118_v48  ;;  %v9553_v31 = vpack.c.bf16 %v7100_v23, %v7099_v22  ;;  %v7113_v48 = vld [vmem:[%s11410_s3 + $0xd0] sm:$0xff]  ;;  %v7114_v49 = vld [vmem:[%s11410_s3 + $0xd8] sm:$0xff]  ;;  %v7129_v22 = vld [vmem:[%s11410_s3 + $0x140] sm:$0xff] }
 0x63b   :  { %v7102_v36 = vld [vmem:[%s11410_s3 + $0x88] sm:$0xff]  ;;  %v6025_v16 = vld [vmem:[#allocation2 + $0x11] sm:$0x1] }
 0x63c   :  { %v5233_v37 = vmul.f32 0.0, %v5226_v32  ;;  %v5220_v38 = vadd.f32 %v7088_v6, %v5205_v35  ;;  %v9598_v32 = vpack.c.bf16 %v7135_v28, %v7134_v24  ;;  %v7101_v35 = vld [vmem:[%s11410_s3 + $0x80] sm:$0xff]  ;;  %v7130_v23 = vld [vmem:[%s11410_s3 + $0x148] sm:$0xff]  ;;  %v7164_v24 = vld [vmem:[%s11410_s3 + $0x230] sm:$0xff] }
 0x63d   :  { %v5192_v40 = vpop.f32.mrb[248].mxu0 }
 0x63e   :  { %5240 = vst.msk [vmem:[#allocation2 + $0x20] sm:$0xff] %vm35_vm0, %v5233_v37  ;;  %v5227_v42 = vmax.f32 %v5220_v38, 0.0  ;;  %v5206_v34 = vadd.f32 %v5192_v40, %v5064_v3  ;;  %v8942_v44 = vpop.f32.mrb[249].mxu0  ;;  %v7136_v37 = vld [vmem:[%s11410_s3 + $0x170] sm:$0xff]  ;;  %v7137_v38 = vld [vmem:[%s11410_s3 + $0x178] sm:$0xff] }
 0x63f   :  { %v9601_v44 = vpack.c.bf16 %v7137_v38, %v7136_v37 }
 0x640   :  { %5241 = vst.msk [vmem:[#allocation2 + $0x28] sm:$0xff] %vm35_vm0, %v5227_v42  ;;  %v5221_v41 = vadd.f32 %v7088_v6, %v5206_v34  ;;  %v9556_v34 = vpack.c.bf16 %v7102_v36, %v7101_v35  ;;  %v7174_v35 = vld [vmem:[%s11410_s3 + $0x270] sm:$0xff]  ;;  %v7175_v36 = vld [vmem:[%s11410_s3 + $0x278] sm:$0xff] }
 0x641   :  { %v5197_v39 = vpop.f32.mrb[250].mxu0 }
 0x642   :  { %v5228_v26 = vmax.f32 %v5221_v41, 0.0  ;;  %v5207_v43 = vadd.f32 %v5197_v39, %v5065_v2  ;;  %v8945_v33 = vpop.f32.mrb[251].mxu0  ;;  %v7122_v2 = vld [vmem:[%s11410_s3 + $0x110] sm:$0xff]  ;;  %v7111_v41 = vld [vmem:[%s11410_s3 + $0xc0] sm:$0xff]  ;;  %v7112_v39 = vld [vmem:[%s11410_s3 + $0xc8] sm:$0xff] }
 0x643   :  { %v9583_v9 = vpack.c.bf16 %v7123_v12, %v7122_v2  ;;  %v9568_v46 = vpack.c.bf16 %v7112_v39, %v7111_v41  ;;  %v7176_v41 = vld [vmem:[%s11410_s3 + $0x280] sm:$0xff]  ;;  %v5764_v39 = vld [vmem:[#allocation2 + $0xe] sm:$0x1] }
 0x644   :  { %5242 = vst.msk [vmem:[#allocation2 + $0x30] sm:$0xff] %vm35_vm0, %v5228_v26  ;;  %v5222_v45 = vadd.f32 %v7088_v6, %v5207_v43  ;;  %v7146_v26 = vld [vmem:[%s11410_s3 + $0x1b0] sm:$0xff]  ;;  %v7147_v43 = vld [vmem:[%s11410_s3 + $0x1b8] sm:$0xff] }
 0x645   :  { %v9613_v47 = vpack.c.bf16 %v7147_v43, %v7146_v26  ;;  %v6199_v26 = vld [vmem:[#allocation2 + $0x13] sm:$0x1]  ;;  %v7177_v43 = vld [vmem:[%s11410_s3 + $0x288] sm:$0xff] }
 0x646   :  { %v5229_v50 = vmax.f32 %v5222_v45, 0.0 }
 0x647   :  { %v5258_v51 = vld [vmem:[#allocation2 + $0x29] sm:$0x1]  ;;  %v5504_v52 = vld [vmem:[#allocation2 + $0x2b] sm:$0x1]  ;;  %v5245_v6 = vld [vmem:[#allocation2 + $0x28] sm:$0x1] }
 0x648   :  { %v5236_v54 = vmul.f32 %v10207_v11, %v5229_v50  ;;  %v5260_v55 = vrot.slane %v5258_v51, 7  ;;  %v5506_v56 = vrot.slane %v5504_v52, 7  ;;  %v7121_v11 = vld [vmem:[%s11410_s3 + $0x108] sm:$0xff]  ;;  %v5247_v18 = vrot.slane %v5245_v6, 7  ;;  %v7148_v50 = vld [vmem:[%s11410_s3 + $0x1c0] sm:$0xff] }
 0x649   :  { %v9580_v8 = vpack.c.bf16 %v7121_v11, %v7120_v61  ;;  %v5678_v13 = vld [vmem:[#allocation2 + $0x2d] sm:$0x1]  ;;  %v5417_v40 = vld [vmem:[#allocation2 + $0x2a] sm:$0x1]  ;;  %v5852_v42 = vld [vmem:[#allocation2 + $0x2f] sm:$0x1] }
 0x64a   :  { %5243 = vst.msk [vmem:[#allocation2 + $0x38] sm:$0x3] %vm1178_vm4, %v5236_v54  ;;  %v5262_v3 = vsel %vm5249_vm5, %v5257_v62, %v5260_v55  ;;  %v5508_v5 = vsel %vm5249_vm5, %v5503_v63, %v5506_v56  ;;  %v5680_v19 = vrot.slane %v5678_v13, 7  ;;  %v5250_v29 = vsel %vm5249_vm5, %v5244_v25, %v5247_v18  ;;  %v5416_v51 = vld [vmem:[#allocation2 + $0xa] sm:$0x1]  ;;  %v7150_v61 = vld [vmem:[%s11410_s3 + $0x1d0] sm:$0xff] }
 0x64b   :  { %8959 = vmatmul.mubr.msk.f32.vlgmr.msra.gmra.mrb[238].mxu1 %vm35_vm0, %v5262_v3  ;;  %9004 = vmatmul.mubr.msk.f32.vlgmr.msra.gmra.mrb[252].mxu0 %vm35_vm0, %v5508_v5  ;;  %v5419_v33 = vrot.slane %v5417_v40, 7  ;;  %v5854_v45 = vrot.slane %v5852_v42, 7  ;;  %v7149_v52 = vld [vmem:[%s11410_s3 + $0x1c8] sm:$0xff]  ;;  %v9571_v56 = vpack.c.bf16 %v7114_v49, %v7113_v48  ;;  %v7151_v62 = vld [vmem:[%s11410_s3 + $0x1d8] sm:$0xff]  ;;  %v6026_v11 = vld [vmem:[#allocation2 + $0x31] sm:$0x1]  ;;  %v9574_v3 = vpack.c.bf16 %v7116_v60, %v7115_v58 }
 0x64c   :  { %9542 = vmatpush3.bf16.msra.mxu1 %v9541_v53  ;;  %9578 = vmatpush3.bf16.msra.mxu0 %v9577_v57  ;;  %v5682_v30 = vsel %vm5249_vm5, %v5677_v27, %v5680_v19  ;;  %v5851_v53 = vld [vmem:[#allocation2 + $0xf] sm:$0x1]  ;;  %v9616_v57 = vpack.c.bf16 %v7149_v52, %v7148_v50  ;;  %v5591_v63 = vld [vmem:[#allocation2 + $0x2c] sm:$0x1]  ;;  %v9619_v5 = vpack.c.bf16 %v7151_v62, %v7150_v61  ;;  %v6028_v12 = vrot.slane %v6026_v11, 7  ;;  %v7165_v25 = vld [vmem:[%s11410_s3 + $0x238] sm:$0xff] }
 0x64d   :  { %9543 = vmatprep.subr.bf16.mxu1 %v9751_v0  ;;  %9579 = vmatprep.subr.bf16.mxu0 %v9751_v0  ;;  %v5421_v54 = vsel %vm5249_vm5, %v5416_v51, %v5419_v33  ;;  %v5856_v55 = vsel %vm5249_vm5, %v5851_v53, %v5854_v45  ;;  %v5593_v2 = vrot.slane %v5591_v63, 7  ;;  %v9631_v13 = vpack.c.bf16 %v7161_v10, %v7160_v59  ;;  %v5765_v27 = vld [vmem:[#allocation2 + $0x2e] sm:$0x1]  ;;  %v6200_v28 = vld [vmem:[#allocation2 + $0x33] sm:$0x1]  ;;  %v7143_v48 = vld [vmem:[%s11410_s3 + $0x1a0] sm:$0xff] }
 0x64e   :  { %8973 = vmatprep.mubr.msk.f32.mxu1 %vm9753_vm1, %v9752_v1  ;;  %9033 = vmatprep.mubr.msk.f32.mxu0 %vm9753_vm1, %v9752_v1  ;;  %v6030_v19 = vsel %vm5249_vm5, %v6025_v16, %v6028_v12  ;;  %v5767_v37 = vrot.slane %v5765_v27, 7  ;;  %v6202_v38 = vrot.slane %v6200_v28, 7  ;;  %v9649_v42 = vpack.c.bf16 %v7175_v36, %v7174_v35  ;;  %v7144_v49 = vld [vmem:[%s11410_s3 + $0x1a8] sm:$0xff]  ;;  %v7178_v50 = vld [vmem:[%s11410_s3 + $0x290] sm:$0xff]  ;;  %v7179_v51 = vld [vmem:[%s11410_s3 + $0x298] sm:$0xff] }
 0x64f   :  { %v5595_v18 = vsel %vm5249_vm5, %v5590_v15, %v5593_v2  ;;  %v5939_v53 = vld [vmem:[#allocation2 + $0x30] sm:$0x1]  ;;  %v6374_v52 = vld [vmem:[#allocation2 + $0x35] sm:$0x1]  ;;  %v7189_v60 = vld [vmem:[%s11410_s3 + $0x2d8] sm:$0xff] }
 0x650   :  { %9545 = vmatpush3.bf16.msra.mxu1 %v9544_v7  ;;  %9581 = vmatpush3.bf16.msra.mxu0 %v9580_v8  ;;  %v7125_v7 = vld [vmem:[%s11410_s3 + $0x120] sm:$0xff]  ;;  %v7126_v8 = vld [vmem:[%s11410_s3 + $0x128] sm:$0xff]  ;;  %v5769_v33 = vsel %vm5249_vm5, %v5764_v39, %v5767_v37  ;;  %v6204_v45 = vsel %vm5249_vm5, %v6199_v26, %v6202_v38  ;;  %v7188_v58 = vld [vmem:[%s11410_s3 + $0x2d0] sm:$0xff]  ;;  %v5941_v61 = vrot.slane %v5939_v53, 7  ;;  %v6376_v62 = vrot.slane %v6374_v52, 7 }
 0x651   :  { %9546 = vmatprep.subr.bf16.mxu1 %v9751_v0  ;;  %9582 = vmatprep.subr.bf16.mxu0 %v9751_v0  ;;  %v9586_v6 = vpack.c.bf16 %v7126_v8, %v7125_v7  ;;  %v9667_v11 = vpack.c.bf16 %v7189_v60, %v7188_v58  ;;  %v7190_v7 = vld [vmem:[%s11410_s3 + $0x2e0] sm:$0xff]  ;;  %v5938_v8 = vld [vmem:[#allocation2 + $0x10] sm:$0x1]  ;;  %v6373_v59 = vld [vmem:[#allocation2 + $0x15] sm:$0x1] }
 0x652   :  { %v7191_v10 = vld [vmem:[%s11410_s3 + $0x2e8] sm:$0xff]  ;;  %v5943_v2 = vsel %vm5249_vm5, %v5938_v8, %v5941_v61  ;;  %v6378_v12 = vsel %vm5249_vm5, %v6373_v59, %v6376_v62  ;;  %v7193_v15 = vld [vmem:[%s11410_s3 + $0x2f8] sm:$0xff]  ;;  %v6113_v16 = vld [vmem:[#allocation2 + $0x32] sm:$0x1] }
 0x653   :  { %v6547_v35 = vld [vmem:[#allocation2 + $0x17] sm:$0x1]  ;;  %v7205_v36 = vld [vmem:[%s11410_s3 + $0x348] sm:$0xff]  ;;  %v7207_v39 = vld [vmem:[%s11410_s3 + $0x358] sm:$0xff] }
 0x654   :  { %9548 = vmatpush3.bf16.msra.mxu1 %v9547_v4  ;;  %9584 = vmatpush3.bf16.msra.mxu0 %v9583_v9  ;;  %v7127_v4 = vld [vmem:[%s11410_s3 + $0x130] sm:$0xff]  ;;  %v7128_v9 = vld [vmem:[%s11410_s3 + $0x138] sm:$0xff]  ;;  %v7185_v58 = vld [vmem:[%s11410_s3 + $0x2c0] sm:$0xff] }
 0x655   :  { %9549 = vmatprep.subr.bf16.mxu1 %v9751_v0  ;;  %9594 = vmatprep.subr.bf16.mxu0 %v9751_v0  ;;  %v6287_v26 = vld [vmem:[#allocation2 + $0x34] sm:$0x1]  ;;  %v6721_v52 = vld [vmem:[#allocation2 + $0x19] sm:$0x1]  ;;  %v7186_v60 = vld [vmem:[%s11410_s3 + $0x2c8] sm:$0xff] }
 0x656   :  { %v6286_v53 = vld [vmem:[#allocation2 + $0x14] sm:$0x1]  ;;  %v6461_v61 = vld [vmem:[#allocation2 + $0x36] sm:$0x1]  ;;  %v9664_v62 = vpack.c.bf16 %v7186_v60, %v7185_v58  ;;  %v7198_v59 = vld [vmem:[%s11410_s3 + $0x318] sm:$0xff] }
 0x657   :  { %8974 = vmatmul.mubr.msk.f32.vlgmr.msra.gmra.mrb[240].mxu1 %vm35_vm0, %v5250_v29  ;;  %9034 = vmatmul.mubr.msk.f32.vlgmr.msra.gmra.mrb[254].mxu0 %vm35_vm0, %v5682_v30  ;;  %v9592_v29 = vpack.c.bf16 %v7130_v23, %v7129_v22  ;;  %v9637_v30 = vpack.c.bf16 %v7165_v25, %v7164_v24  ;;  %v7202_v22 = vld [vmem:[%s11410_s3 + $0x330] sm:$0xff]  ;;  %v7203_v23 = vld [vmem:[%s11410_s3 + $0x338] sm:$0xff]  ;;  %v6115_v24 = vrot.slane %v6113_v16, 7 }
 0x658   :  { %9551 = vmatpush3.bf16.msra.mxu1 %v9550_v20  ;;  %9596 = vmatpush3.bf16.msra.mxu0 %v9595_v21  ;;  %v9589_v20 = vpack.c.bf16 %v7128_v9, %v7127_v4  ;;  %v9634_v21 = vpack.c.bf16 %v7163_v17, %v7162_v14  ;;  %v7157_v4 = vld [vmem:[%s11410_s3 + $0x200] sm:$0xff]  ;;  %v7158_v9 = vld [vmem:[%s11410_s3 + $0x208] sm:$0xff]  ;;  %v7192_v14 = vld [vmem:[%s11410_s3 + $0x2f0] sm:$0xff]  ;;  %v9685_v28 = vpack.c.bf16 %v7203_v23, %v7202_v22 }
 0x659   :  { %9552 = vmatprep.subr.bf16.mxu1 %v9751_v0  ;;  %9597 = vmatprep.subr.bf16.mxu0 %v9751_v0  ;;  %v6548_v17 = vld [vmem:[#allocation2 + $0x37] sm:$0x1] }
 0x65a   :  { %8988 = vmatprep.mubr.msk.f32.mxu1 %vm9753_vm1, %v9752_v1  ;;  %9063 = vmatprep.mubr.msk.f32.mxu0 %vm9753_vm1, %v9752_v1  ;;  %v6550_v25 = vrot.slane %v6548_v17, 7  ;;  %v7197_v8 = vld [vmem:[%s11410_s3 + $0x310] sm:$0xff] }
 0x65c   :  { %9554 = vmatpush3.bf16.msra.mxu1 %v9553_v31  ;;  %9599 = vmatpush3.bf16.msra.mxu0 %v9598_v32  ;;  %v7139_v31 = vld [vmem:[%s11410_s3 + $0x180] sm:$0xff]  ;;  %v7140_v32 = vld [vmem:[%s11410_s3 + $0x188] sm:$0xff]  ;;  %v6552_v38 = vsel %vm5249_vm5, %v6547_v35, %v6550_v25 }
 0x65d   :  { %9555 = vmatprep.subr.bf16.mxu1 %v9751_v0  ;;  %9600 = vmatprep.subr.bf16.mxu0 %v9751_v0  ;;  %v9604_v40 = vpack.c.bf16 %v7140_v32, %v7139_v31  ;;  %v7204_v31 = vld [vmem:[%s11410_s3 + $0x340] sm:$0xff]  ;;  %v6112_v32 = vld [vmem:[#allocation2 + $0x12] sm:$0x1] }
 0x65e   :  { %v6117_v37 = vsel %vm5249_vm5, %v6112_v32, %v6115_v24 }
 0x660   :  { %9557 = vmatpush3.bf16.msra.mxu1 %v9556_v34  ;;  %9602 = vmatpush3.bf16.msra.mxu0 %v9601_v44  ;;  %v7141_v34 = vld [vmem:[%s11410_s3 + $0x190] sm:$0xff]  ;;  %v7142_v44 = vld [vmem:[%s11410_s3 + $0x198] sm:$0xff] }
 0x661   :  { %9567 = vmatprep.subr.bf16.mxu1 %v9751_v0  ;;  %9612 = vmatprep.subr.bf16.mxu0 %v9751_v0 }
 0x663   :  { %8989 = vmatmul.mubr.msk.f32.vlgmr.msra.gmra.mrb[242].mxu1 %vm35_vm0, %v5421_v54  ;;  %9064 = vmatmul.mubr.msk.f32.vlgmr.msra.gmra.mrb[0].mxu0 %vm35_vm0, %v5856_v55  ;;  %v9610_v54 = vpack.c.bf16 %v7144_v49, %v7143_v48  ;;  %v9655_v55 = vpack.c.bf16 %v7179_v51, %v7178_v50  ;;  %v6289_v48 = vrot.slane %v6287_v26, 7  ;;  %v7183_v51 = vld [vmem:[%s11410_s3 + $0x2b0] sm:$0xff] }
 0x664   :  { %9569 = vmatpush3.bf16.msra.mxu1 %v9568_v46  ;;  %9614 = vmatpush3.bf16.msra.mxu0 %v9613_v47  ;;  %v9607_v46 = vpack.c.bf16 %v7142_v44, %v7141_v34  ;;  %v9652_v47 = vpack.c.bf16 %v7177_v43, %v7176_v41  ;;  %v7171_v34 = vld [vmem:[%s11410_s3 + $0x260] sm:$0xff]  ;;  %v7172_v44 = vld [vmem:[%s11410_s3 + $0x268] sm:$0xff]  ;;  %v7206_v41 = vld [vmem:[%s11410_s3 + $0x350] sm:$0xff] }
 0x665   :  { %9570 = vmatprep.subr.bf16.mxu1 %v9751_v0  ;;  %9615 = vmatprep.subr.bf16.mxu0 %v9751_v0  ;;  %v6722_v43 = vld [vmem:[#allocation2 + $0x39] sm:$0x1] }
 0x666   :  { %9018 = vmatprep.mubr.msk.f32.mxu1 %vm9753_vm1, %v9752_v1  ;;  %9093 = vmatprep.mubr.msk.f32.mxu0 %vm9753_vm1, %v9752_v1  ;;  %v6724_v49 = vrot.slane %v6722_v43, 7 }
 0x668   :  { %9572 = vmatpush3.bf16.msra.mxu1 %v9571_v56  ;;  %9617 = vmatpush3.bf16.msra.mxu0 %v9616_v57  ;;  %v7153_v56 = vld [vmem:[%s11410_s3 + $0x1e0] sm:$0xff]  ;;  %v7154_v57 = vld [vmem:[%s11410_s3 + $0x1e8] sm:$0xff] }
 0x669   :  { %9573 = vmatprep.subr.bf16.mxu1 %v9751_v0  ;;  %9618 = vmatprep.subr.bf16.mxu0 %v9751_v0  ;;  %v9622_v63 = vpack.c.bf16 %v7154_v57, %v7153_v56  ;;  %v6726_v56 = vsel %vm5249_vm5, %v6721_v52, %v6724_v49 }
 0x66c   :  { %9575 = vmatpush3.bf16.msra.mxu1 %v9574_v3  ;;  %9620 = vmatpush3.bf16.msra.mxu0 %v9619_v5  ;;  %v7155_v3 = vld [vmem:[%s11410_s3 + $0x1f0] sm:$0xff]  ;;  %v7156_v5 = vld [vmem:[%s11410_s3 + $0x1f8] sm:$0xff] }
 0x66d   :  { %9585 = vmatprep.subr.bf16.mxu1 %v9751_v0  ;;  %9630 = vmatprep.subr.bf16.mxu0 %v9751_v0 }
 0x66f   :  { %9019 = vmatmul.mubr.msk.f32.vlgmr.msra.gmra.mrb[244].mxu1 %vm35_vm0, %v5595_v18  ;;  %9094 = vmatmul.mubr.msk.f32.vlgmr.msra.gmra.mrb[2].mxu0 %vm35_vm0, %v6030_v19  ;;  %v9628_v18 = vpack.c.bf16 %v7158_v9, %v7157_v4  ;;  %v9673_v19 = vpack.c.bf16 %v7193_v15, %v7192_v14  ;;  %v6634_v14 = vld [vmem:[#allocation2 + $0x18] sm:$0x1] }
 0x670   :  { %9587 = vmatpush3.bf16.msra.mxu1 %v9586_v6  ;;  %9632 = vmatpush3.bf16.msra.mxu0 %v9631_v13  ;;  %v9625_v6 = vpack.c.bf16 %v7156_v5, %v7155_v3  ;;  %v9670_v13 = vpack.c.bf16 %v7191_v10, %v7190_v7  ;;  %v6463_v3 = vrot.slane %v6461_v61, 7  ;;  %v6460_v7 = vld [vmem:[#allocation2 + $0x16] sm:$0x1] }
 0x671   :  { %9588 = vmatprep.subr.bf16.mxu1 %v9751_v0  ;;  %9633 = vmatprep.subr.bf16.mxu0 %v9751_v0 }
 0x672   :  { %9048 = vmatprep.mubr.msk.f32.mxu1 %vm9753_vm1, %v9752_v1  ;;  %9123 = vmatprep.mubr.msk.f32.mxu0 %vm9753_vm1, %v9752_v1  ;;  %v6465_v10 = vsel %vm5249_vm5, %v6460_v7, %v6463_v3  ;;  %v7209_v7 = vld [vmem:[%s11411_s4] ss:$0 sm:$0xff] }
 0x674   :  { %9590 = vmatpush3.bf16.msra.mxu1 %v9589_v20  ;;  %9635 = vmatpush3.bf16.msra.mxu0 %v9634_v21  ;;  %v7167_v20 = vld [vmem:[%s11410_s3 + $0x240] sm:$0xff]  ;;  %v7168_v21 = vld [vmem:[%s11410_s3 + $0x248] sm:$0xff] }
 0x675   :  { %9591 = vmatprep.subr.bf16.mxu1 %v9751_v0  ;;  %9636 = vmatprep.subr.bf16.mxu0 %v9751_v0  ;;  %v9640_v27 = vpack.c.bf16 %v7168_v21, %v7167_v20 }
 0x678   :  { %9593 = vmatpush3.bf16.msra.mxu1 %v9592_v29  ;;  %9638 = vmatpush3.bf16.msra.mxu0 %v9637_v30  ;;  %v7169_v29 = vld [vmem:[%s11410_s3 + $0x250] sm:$0xff]  ;;  %v7170_v30 = vld [vmem:[%s11410_s3 + $0x258] sm:$0xff] }
 0x679   :  { %9603 = vmatprep.subr.bf16.mxu1 %v9751_v0  ;;  %9648 = vmatprep.subr.bf16.mxu0 %v9751_v0 }
 0x67b   :  { %9049 = vmatmul.mubr.msk.f32.vlgmr.msra.gmra.mrb[246].mxu1 %vm35_vm0, %v5769_v33  ;;  %9124 = vmatmul.mubr.msk.f32.vlgmr.msra.gmra.mrb[4].mxu0 %vm35_vm0, %v6204_v45  ;;  %v9646_v33 = vpack.c.bf16 %v7172_v44, %v7171_v34  ;;  %v9691_v45 = vpack.c.bf16 %v7207_v39, %v7206_v41 }
 0x67c   :  { %9605 = vmatpush3.bf16.msra.mxu1 %v9604_v40  ;;  %9650 = vmatpush3.bf16.msra.mxu0 %v9649_v42  ;;  %v9643_v40 = vpack.c.bf16 %v7170_v30, %v7169_v29  ;;  %v9688_v42 = vpack.c.bf16 %v7205_v36, %v7204_v31 }
 0x67d   :  { %9606 = vmatprep.subr.bf16.mxu1 %v9751_v0  ;;  %9651 = vmatprep.subr.bf16.mxu0 %v9751_v0 }
 0x67e   :  { %9078 = vmatprep.mubr.msk.f32.mxu1 %vm9753_vm1, %v9752_v1  ;;  %9153 = vmatprep.mubr.msk.f32.mxu0 %vm9753_vm1, %v9752_v1 }
 0x680   :  { %9608 = vmatpush3.bf16.msra.mxu1 %v9607_v46  ;;  %9653 = vmatpush3.bf16.msra.mxu0 %v9652_v47  ;;  %v7181_v46 = vld [vmem:[%s11410_s3 + $0x2a0] sm:$0xff]  ;;  %v7182_v47 = vld [vmem:[%s11410_s3 + $0x2a8] sm:$0xff] }
 0x681   :  { %9609 = vmatprep.subr.bf16.mxu1 %v9751_v0  ;;  %9654 = vmatprep.subr.bf16.mxu0 %v9751_v0  ;;  %v9658_v50 = vpack.c.bf16 %v7182_v47, %v7181_v46 }
 0x684   :  { %9611 = vmatpush3.bf16.msra.mxu1 %v9610_v54  ;;  %9656 = vmatpush3.bf16.msra.mxu0 %v9655_v55  ;;  %v7184_v54 = vld [vmem:[%s11410_s3 + $0x2b8] sm:$0xff]  ;;  %v6291_v55 = vsel %vm5249_vm5, %v6286_v53, %v6289_v48 }
 0x685   :  { %9621 = vmatprep.subr.bf16.mxu1 %v9751_v0  ;;  %9666 = vmatprep.subr.bf16.mxu0 %v9751_v0  ;;  %v9661_v57 = vpack.c.bf16 %v7184_v54, %v7183_v51 }
 0x687   :  { %9079 = vmatmul.mubr.msk.f32.vlgmr.msra.gmra.mrb[248].mxu1 %vm35_vm0, %v5943_v2  ;;  %9154 = vmatmul.mubr.msk.f32.vlgmr.msra.gmra.mrb[6].mxu0 %vm35_vm0, %v6378_v12  ;;  %v9679_v2 = vpack.c.bf16 %v7198_v59, %v7197_v8  ;;  %v7199_v12 = vld [vmem:[%s11410_s3 + $0x320] sm:$0xff] }
 0x688   :  { %9623 = vmatpush3.bf16.msra.mxu1 %v9622_v63  ;;  %9668 = vmatpush3.bf16.msra.mxu0 %v9667_v11  ;;  %v7195_v63 = vld [vmem:[%s11410_s3 + $0x300] sm:$0xff]  ;;  %v7196_v11 = vld [vmem:[%s11410_s3 + $0x308] sm:$0xff] }
 0x689   :  { %9624 = vmatprep.subr.bf16.mxu1 %v9751_v0  ;;  %9669 = vmatprep.subr.bf16.mxu0 %v9751_v0  ;;  %v9676_v5 = vpack.c.bf16 %v7196_v11, %v7195_v63 }
 0x68a   :  { %9108 = vmatprep.mubr.msk.f32.mxu1 %vm9753_vm1, %v9752_v1  ;;  %9183 = vmatprep.mubr.msk.f32.mxu0 %vm9753_vm1, %v9752_v1 }
 0x68c   :  { %9626 = vmatpush3.bf16.msra.mxu1 %v9625_v6  ;;  %9671 = vmatpush3.bf16.msra.mxu0 %v9670_v13  ;;  %v7200_v6 = vld [vmem:[%s11410_s3 + $0x328] sm:$0xff]  ;;  %v6635_v13 = vld [vmem:[#allocation2 + $0x38] sm:$0x1] }
 0x68d   :  { %9627 = vmatprep.subr.bf16.mxu1 %v9751_v0  ;;  %9672 = vmatprep.subr.bf16.mxu0 %v9751_v0  ;;  %v9682_v4 = vpack.c.bf16 %v7200_v6, %v7199_v12  ;;  %v6637_v9 = vrot.slane %v6635_v13, 7 }
 0x690   :  { %9629 = vmatpush3.bf16.msra.mxu1 %v9628_v18  ;;  %9674 = vmatpush3.bf16.msra.mxu0 %v9673_v19 }
 0x691   :  { %9639 = vmatprep.subr.bf16.mxu1 %v9751_v0  ;;  %9684 = vmatprep.subr.bf16.mxu0 %v9751_v0 }
 0x693   :  { %9109 = vmatmul.mubr.msk.f32.vlgmr.msra.gmra.mrb[250].mxu1 %vm35_vm0, %v6117_v37  ;;  %9184 = vmatmul.mubr.msk.f32.vlgmr.msra.gmra.mrb[8].mxu0 %vm35_vm0, %v6552_v38 }
 0x694   :  { %9641 = vmatpush3.bf16.msra.mxu1 %v9640_v27  ;;  %9686 = vmatpush3.bf16.msra.mxu0 %v9685_v28 }
 0x695   :  { %9642 = vmatprep.subr.bf16.mxu1 %v9751_v0  ;;  %9687 = vmatprep.subr.bf16.mxu0 %v9751_v0 }
 0x696   :  { %9138 = vmatprep.mubr.msk.f32.mxu1 %vm9753_vm1, %v9752_v1  ;;  %9213 = vmatprep.mubr.msk.f32.mxu0 %vm9753_vm1, %v9752_v1 }
 0x698   :  { %9644 = vmatpush3.bf16.msra.mxu1 %v9643_v40  ;;  %9689 = vmatpush3.bf16.msra.mxu0 %v9688_v42 }
 0x699   :  { %9645 = vmatprep.subr.bf16.mxu1 %v9751_v0  ;;  %9690 = vmatprep.subr.bf16.mxu0 %v9751_v0 }
 0x69c   :  { %9647 = vmatpush3.bf16.msra.mxu1 %v9646_v33  ;;  %9692 = vmatpush3.bf16.msra.mxu0 %v9691_v45 }
 0x69d   :  { %9657 = vmatprep.subr.bf16.mxu1 %v9751_v0 }
 0x69f   :  { %9139 = vmatmul.mubr.msk.f32.vlgmr.msra.gmra.mrb[252].mxu1 %vm35_vm0, %v6291_v55  ;;  %9214 = vmatmul.mubr.msk.f32.vlgmr.msra.gmra.mrb[10].mxu0 %vm35_vm0, %v6726_v56 }
 0x6a0   :  { %9659 = vmatpush3.bf16.msra.mxu1 %v9658_v50  ;;  %9168 = vmatprep.mubr.msk.f32.mxu1 %vm9753_vm1, %v9752_v1 }
 0x6a1   :  { %9660 = vmatprep.subr.bf16.mxu1 %v9751_v0 }
 0x6a4   :  { %9662 = vmatpush3.bf16.msra.mxu1 %v9661_v57 }
 0x6a5   :  { %9663 = vmatprep.subr.bf16.mxu1 %v9751_v0 }
 0x6a8   :  { %9665 = vmatpush3.bf16.msra.mxu1 %v9664_v62 }
 0x6a9   :  { %9675 = vmatprep.subr.bf16.mxu1 %v9751_v0 }
 0x6ab   :  { %9169 = vmatmul.mubr.msk.f32.vlgmr.msra.gmra.mrb[254].mxu1 %vm35_vm0, %v6465_v10 }
 0x6ac   :  { %9677 = vmatpush3.bf16.msra.mxu1 %v9676_v5  ;;  %9198 = vmatprep.mubr.msk.f32.mxu1 %vm9753_vm1, %v9752_v1  ;;  %v6639_v1 = vsel %vm5249_vm5, %v6634_v14, %v6637_v9 }
 0x6ad   :  { %9678 = vmatprep.subr.bf16.mxu1 %v9751_v0 }
 0x6b0   :  { %9680 = vmatpush3.bf16.msra.mxu1 %v9679_v2 }
 0x6b1   :  { %9681 = vmatprep.subr.bf16.mxu1 %v9751_v0 }
 0x6b4   :  { %9683 = vmatpush3.bf16.msra.mxu1 %v9682_v4 }
 0x6b7   :  { %9199 = vmatmul.mubr.msk.f32.vlgmr.msra.gmra.mrb[0].mxu1 %vm35_vm0, %v6639_v1 }
 0x71e   :  { %v5339_v15 = vpop.f32.mrb[238].mxu1  ;;  %v5585_v16 = vpop.f32.mrb[252].mxu0 }
 0x71f   :  { %v8960_v17 = vpop.f32.mrb[239].mxu1  ;;  %v9005_v18 = vpop.f32.mrb[253].mxu0 }
 0x72a   :  { %v5412_v19 = vpop.f32.mrb[240].mxu1  ;;  %v5759_v20 = vpop.f32.mrb[254].mxu0 }
 0x72b   :  { %v5413_v21 = vadd.f32 %v5412_v19, %v5339_v15  ;;  %v8975_v22 = vpop.f32.mrb[241].mxu1  ;;  %v9035_v23 = vpop.f32.mrb[255].mxu0 }
 0x736   :  { %v5498_v24 = vpop.f32.mrb[242].mxu1  ;;  %v5933_v25 = vpop.f32.mrb[0].mxu0 }
 0x737   :  { %v5502_v27 = vadd.f32 %v5498_v24, %v5413_v21  ;;  %v8990_v0 = vpop.f32.mrb[243].mxu1  ;;  %v9065_v28 = vpop.f32.mrb[1].mxu0 }
 0x739   :  { %v5589_v29 = vadd.f32 %v5585_v16, %v5502_v27 }
 0x742   :  { %v5672_v30 = vpop.f32.mrb[244].mxu1  ;;  %v6107_v31 = vpop.f32.mrb[2].mxu0 }
 0x743   :  { %v5676_v32 = vadd.f32 %v5672_v30, %v5589_v29  ;;  %v9020_v35 = vpop.f32.mrb[245].mxu1  ;;  %v9095_v36 = vpop.f32.mrb[3].mxu0 }
 0x745   :  { %v5763_v37 = vadd.f32 %v5759_v20, %v5676_v32 }
 0x74e   :  { %v5846_v38 = vpop.f32.mrb[246].mxu1  ;;  %v6281_v40 = vpop.f32.mrb[4].mxu0 }
 0x74f   :  { %v5850_v42 = vadd.f32 %v5846_v38, %v5763_v37  ;;  %v9050_v34 = vpop.f32.mrb[247].mxu1  ;;  %v9125_v44 = vpop.f32.mrb[5].mxu0 }
 0x751   :  { %v5937_v41 = vadd.f32 %v5933_v25, %v5850_v42 }
 0x75a   :  { %v6020_v39 = vpop.f32.mrb[248].mxu1  ;;  %v6455_v26 = vpop.f32.mrb[6].mxu0 }
 0x75b   :  { %v6024_v43 = vadd.f32 %v6020_v39, %v5937_v41  ;;  %v9080_v33 = vpop.f32.mrb[249].mxu1  ;;  %v9155_v45 = vpop.f32.mrb[7].mxu0 }
 0x75d   :  { %v6111_v46 = vadd.f32 %v6107_v31, %v6024_v43 }
 0x766   :  { %v6194_v47 = vpop.f32.mrb[250].mxu1  ;;  %v6629_v48 = vpop.f32.mrb[8].mxu0 }
 0x767   :  { %v6198_v49 = vadd.f32 %v6194_v47, %v6111_v46  ;;  %v9110_v50 = vpop.f32.mrb[251].mxu1  ;;  %v9185_v51 = vpop.f32.mrb[9].mxu0 }
 0x769   :  { %v6285_v53 = vadd.f32 %v6281_v40, %v6198_v49 }
 0x772   :  { %v6368_v52 = vpop.f32.mrb[252].mxu1  ;;  %v6803_v54 = vpop.f32.mrb[10].mxu0 }
 0x773   :  { %v6372_v55 = vadd.f32 %v6368_v52, %v6285_v53  ;;  %v9140_v56 = vpop.f32.mrb[253].mxu1  ;;  %v9215_v57 = vpop.f32.mrb[11].mxu0 }
 0x775   :  { %v6459_v58 = vadd.f32 %v6455_v26, %v6372_v55 }
 0x77e   :  { %v6542_v60 = vpop.f32.mrb[254].mxu1 }
 0x77f   :  { %v6546_v61 = vadd.f32 %v6542_v60, %v6459_v58  ;;  %v9170_v62 = vpop.f32.mrb[255].mxu1 }
 0x781   :  { %v6633_v63 = vadd.f32 %v6629_v48, %v6546_v61 }
 0x78a   :  { %v6716_v11 = vpop.f32.mrb[0].mxu1 }
 0x78b   :  { %v6720_v3 = vadd.f32 %v6716_v11, %v6633_v63  ;;  %v9200_v5 = vpop.f32.mrb[1].mxu1 }
 0x78d   :  { %v6807_v8 = vadd.f32 %v6803_v54, %v6720_v3 }
 0x78f   :  { %v6815_v59 = vadd.f32 %v7209_v7, %v6807_v8 }
 0x791   :  { %6817 = vst.msk [vmem:[#allocation7] sm:$0x3] %vm6816_vm6, %v6815_v59 }
 0x792   :  { %9733 = shalt.err (!%p9730_p12)
}
 0x793   :  { %s9734_s7 = scalar_lea.hbm %s11412_s5, 32 }
 0x794   :  { %p9735_p13 = scmp.ne.s32.totalorder %s11412_s5, %s9734_s7  ;;  %p9738_p0 = scmp.lt.u32.totalorder %s9734_s7, %s11412_s5 }
 0x796   :  { %p9740_p1 = pnand %p9738_p0, %p9735_p13 }
 0x798   :  { %9743 = shalt.err (!%p9740_p1)
}
 0x799   :  { %6827 = dma.vmem_to_hbm [thread:$0]  %s6825_s30, 32, %s11412_s5, [#allocation6]  }
 0x79a   :  { %9746 = dma.done.wait [#allocation6], 32  }
 0x79b   :  { %9747 = vsyncadd [#allocation6], 4294967264 }
 0x79c   :  { %6831 = vsyncpa [#allocation5], 1 }
 0x79d   :  { %6832 = vsyncpa [#allocation6], 1 }

</bundles_post_ra>
